<compile_context>
chip_gen: v7x
topology: tpu7x:2x2x1
jax: 0.10.0
libtpu: 0.0.40
codegen_flags: <defaults>
</compile_context>

<pallas_src>
import functools

import jax
import jax.numpy as jnp
from jax.experimental import pallas as pl
from jax.experimental.pallas import tpu as pltpu

VMEM = pltpu.MemorySpace.VMEM
BN_EPS = 1e-5
K1, K2 = 4, 2        # conv kernel heights/widths
POOL1 = 8            # first maxpool window & stride (second pool is global 4x4)


# ------------------------------ fused Pallas kernel ------------------------------

def _fused_cnn_kernel(x_ref, w1_ref, s1_ref, s1t_ref, g1_ref, be1_ref,
                      w2_ref, s2_ref, s2t_ref, g2_ref, be2_ref,
                      fcw_ref, fcb_ref, o_ref, *,
                      n_img, img_h, oh1, ow1, c1, ph1, oh2, c2):
    f32 = jnp.float32

    # ---- Conv1: K1 accumulating Toeplitz matmuls (MXU), bias folded out by BN ----
    # x_ref      : (N*H, W*Cin)      rows=(n,h)   lanes=(w,cin)
    # w1_ref[ky] : (W*Cin, OW1*C1)   rows=(w,cin) lanes=(ow,c)
    z1 = None
    for ky in range(K1):
        lhs = jnp.concatenate(
            [x_ref[n * img_h + ky: n * img_h + ky + oh1, :] for n in range(n_img)],
            axis=0)                                               # (N*OH1, W*Cin)
        part = jnp.dot(lhs, w1_ref[ky], preferred_element_type=f32)
        z1 = part if z1 is None else z1 + part                    # (N*OH1, OW1*C1)

    # ---- BN1 (training-mode batch stats, single pass) + ReLU ----
    sums1 = jnp.concatenate([jnp.sum(z1, axis=0, keepdims=True),
                             jnp.sum(z1 * z1, axis=0, keepdims=True)], axis=0)
    ch1 = jnp.dot(sums1, s1_ref[...], preferred_element_type=f32)   # (2, C1)
    inv1 = 1.0 / float(n_img * oh1 * ow1)
    m1 = ch1[0:1, :] * inv1
    v1 = ch1[1:2, :] * inv1 - m1 * m1                               # biased variance
    sc1 = g1_ref[...] * jax.lax.rsqrt(v1 + BN_EPS)                  # (1, C1)
    sh1 = be1_ref[...] - m1 * sc1
    ss1 = jnp.dot(jnp.concatenate([sc1, sh1], axis=0), s1t_ref[...],
                  preferred_element_type=f32)                       # (2, OW1*C1)
    a1 = jnp.maximum(z1 * ss1[0:1, :] + ss1[1:2, :], 0.0)           # (N*OH1, OW1*C1)

    # ---- MaxPool1 8x8 stride 8: reduce rows per pool-row, then lane groups ----
    rowmax = jnp.concatenate(
        [jnp.max(a1[n * oh1 + p * POOL1: n * oh1 + (p + 1) * POOL1, :],
                 axis=0, keepdims=True)
         for n in range(n_img) for p in range(ph1)], axis=0)        # (N*PH1, OW1*C1)
    cols = []
    for pw in range(ph1):
        blk = rowmax[:, pw * POOL1 * c1:(pw + 1) * POOL1 * c1]      # (N*PH1, 8*C1)
        m = blk[:, 0:c1]
        for wx in range(1, POOL1):
            m = jnp.maximum(m, blk[:, wx * c1:(wx + 1) * c1])
        cols.append(m)
    pooled = jnp.concatenate(cols, axis=1)                          # (N*PH1, PH1*C1)

    # ---- Conv2: in-register height-im2col + one Toeplitz matmul ----
    p2 = jnp.concatenate(
        [jnp.concatenate(
            [pooled[n * ph1 + dy: n * ph1 + dy + oh2, :] for n in range(n_img)],
            axis=0)
         for dy in range(K2)], axis=1)                              # (N*OH2, K2*PH1*C1)
    z2 = jnp.dot(p2, w2_ref[...], preferred_element_type=f32)       # (N*OH2, OH2*C2)

    # ---- BN2 + ReLU ----
    sums2 = jnp.concatenate([jnp.sum(z2, axis=0, keepdims=True),
                             jnp.sum(z2 * z2, axis=0, keepdims=True)], axis=0)
    ch2 = jnp.dot(sums2, s2_ref[...], preferred_element_type=f32)   # (2, C2)
    inv2 = 1.0 / float(n_img * oh2 * oh2)
    m2 = ch2[0:1, :] * inv2
    v2 = ch2[1:2, :] * inv2 - m2 * m2
    sc2 = g2_ref[...] * jax.lax.rsqrt(v2 + BN_EPS)
    sh2 = be2_ref[...] - m2 * sc2
    ss2 = jnp.dot(jnp.concatenate([sc2, sh2], axis=0), s2t_ref[...],
                  preferred_element_type=f32)                       # (2, OH2*C2)
    a2 = jnp.maximum(z2 * ss2[0:1, :] + ss2[1:2, :], 0.0)           # (N*OH2, OH2*C2)

    # ---- MaxPool2 (global 4x4) + Linear ----
    rows2 = jnp.concatenate(
        [jnp.max(a2[n * oh2:(n + 1) * oh2, :], axis=0, keepdims=True)
         for n in range(n_img)], axis=0)                            # (N, OH2*C2)
    feat = rows2[:, 0:c2]
    for k in range(1, oh2):
        feat = jnp.maximum(feat, rows2[:, k * c2:(k + 1) * c2])     # (N, C2)

    o_ref[...] = jnp.dot(feat, fcw_ref[...],
                         preferred_element_type=f32) + fcb_ref[...]  # (N, Out)


# ------------------------------ plain-JAX weight prep ------------------------------

def _toeplitz_conv_weight(w, in_w, out_w):
    """(Cout, Cin, KH, KW) conv weight -> (KH, in_w*Cin, out_w*Cout) width-Toeplitz
    matrices (one per kernel row).  Row order (w, cin), column order (ow, cout)."""
    cout, cin, kh, kw = w.shape
    wt = jnp.transpose(w, (2, 3, 1, 0))                           # (KH, KW, Cin, Cout)
    kx = jnp.arange(in_w)[:, None] - jnp.arange(out_w)[None, :]   # (in_w, out_w)
    valid = ((kx >= 0) & (kx < kw)).astype(w.dtype)
    t = wt[:, jnp.clip(kx, 0, kw - 1), :, :]                      # (KH, in_w, out_w, Cin, Cout)
    t = t * valid[None, :, :, None, None]
    t = jnp.transpose(t, (0, 1, 3, 2, 4))                         # (KH, in_w, Cin, out_w, Cout)
    return t.reshape(kh, in_w * cin, out_w * cout)


def _chan_select(width, c):
    """(width*c, c) 0/1 matrix mapping lane (col, ch) -> channel (lane % c)."""
    j = jnp.arange(width * c)
    return (j[:, None] % c == jnp.arange(c)[None, :]).astype(jnp.float32)


def cnn_forward(x_nchw, params):
    (w1, b1, g1, be1, w2, b2, g2, be2, fcw, fcb) = params
    del b1, b2  # conv bias cancels exactly under training-mode BatchNorm

    N, Cin, H, W = x_nchw.shape
    C1, C2, Out = w1.shape[0], w2.shape[0], fcw.shape[0]
    OH1, OW1 = H - (K1 - 1), W - (K1 - 1)
    PH1 = OH1 // POOL1
    OH2 = PH1 - (K2 - 1)
    assert H == W and OH2 == 4 and fcw.shape[1] == C2, \
        "module requires conv2 output 4x4 (flatten size 16) -> 48x48 inputs"

    # whole image as a lane-dense 2D ref: rows=(n,h), lanes=(w,cin)
    x2d = jnp.transpose(x_nchw, (0, 2, 3, 1)).astype(jnp.float32).reshape(N * H, W * Cin)

    w1t = _toeplitz_conv_weight(w1.astype(jnp.float32), W, OW1)        # (K1, W*Cin, OW1*C1)
    w2t = _toeplitz_conv_weight(w2.astype(jnp.float32), PH1, OH2
                                ).reshape(K2 * PH1 * C1, OH2 * C2)      # (K2*PH1*C1, OH2*C2)
    s1 = _chan_select(OW1, C1)                                          # (OW1*C1, C1)
    s2 = _chan_select(OH2, C2)                                          # (OH2*C2, C2)

    kernel = functools.partial(
        _fused_cnn_kernel, n_img=N, img_h=H, oh1=OH1, ow1=OW1,
        c1=C1, ph1=PH1, oh2=OH2, c2=C2)

    return pl.pallas_call(
        kernel,
        out_shape=jax.ShapeDtypeStruct((N, Out), jnp.float32),
        in_specs=[pl.BlockSpec(memory_space=VMEM)] * 13,
        out_specs=pl.BlockSpec(memory_space=VMEM),
    )(x2d, w1t, s1, s1.T, g1.reshape(1, -1), be1.reshape(1, -1),
      w2t, s2, s2.T, g2.reshape(1, -1), be2.reshape(1, -1),
      fcw.T.astype(jnp.float32), fcb.reshape(1, -1))


# ------------------------------ pure-JAX reference ------------------------------

def torch_reference(x_nchw, params):
    (w1, b1, g1, be1, w2, b2, g2, be2, fcw, fcb) = params

    def bn_relu(y, g, be):
        m = jnp.mean(y, axis=(0, 2, 3), keepdims=True)
        v = jnp.mean((y - m) ** 2, axis=(0, 2, 3), keepdims=True)
        y = (y - m) * jax.lax.rsqrt(v + BN_EPS)
        y = y * g[None, :, None, None] + be[None, :, None, None]
        return jnp.maximum(y, 0.0)

    dn = ('NCHW', 'OIHW', 'NCHW')
    y = jax.lax.conv_general_dilated(x_nchw, w1, (1, 1), 'VALID',
                                     dimension_numbers=dn) + b1[None, :, None, None]
    y = bn_relu(y, g1, be1)
    y = jax.lax.reduce_window(y, -jnp.inf, jax.lax.max,
                              (1, 1, 8, 8), (1, 1, 8, 8), 'VALID')
    y = jax.lax.conv_general_dilated(y, w2, (1, 1), 'VALID',
                                     dimension_numbers=dn) + b2[None, :, None, None]
    y = bn_relu(y, g2, be2)
    y = jax.lax.reduce_window(y, -jnp.inf, jax.lax.max,
                              (1, 1, 4, 4), (1, 1, 4, 4), 'VALID')
    y = y.reshape(y.shape[0], -1)
    return y @ fcw.T + fcb


# ------------------------------------ main ------------------------------------

if __name__ == "__main__":
    N, Cin, H, W, Out_ch = 2, 3, 48, 48, 10   # 48x48 input -> flatten size 16
    key = jax.random.PRNGKey(0)
    ks = jax.random.split(key, 7)
    x = jax.random.normal(ks[0], (N, Cin, H, W), jnp.float32)

    w1 = jax.random.normal(ks[1], (8, Cin, 4, 4), jnp.float32) * 0.1
    b1 = jax.random.normal(ks[2], (8,), jnp.float32) * 0.1
    w2 = jax.random.normal(ks[3], (16, 8, 2, 2), jnp.float32) * 0.1
    b2 = jax.random.normal(ks[4], (16,), jnp.float32) * 0.1
    fcw = jax.random.normal(ks[5], (Out_ch, 16), jnp.float32) * 0.1
    fcb = jax.random.normal(ks[6], (Out_ch,), jnp.float32) * 0.1
    g1 = jnp.ones((8,), jnp.float32); be1 = jnp.zeros((8,), jnp.float32)   # fresh BN params
    g2 = jnp.ones((16,), jnp.float32); be2 = jnp.zeros((16,), jnp.float32)
    params = (w1, b1, g1, be1, w2, b2, g2, be2, fcw, fcb)

    out = jax.jit(cnn_forward)(x, params)
    out = jax.block_until_ready(out)

    ref = torch_reference(x, params)
    assert out.shape == (N, Out_ch)
    assert jnp.allclose(out, ref, atol=2e-3, rtol=2e-3), (out, ref)
    print("KERNEL_OK")
</pallas_src>

<mosaic_0001>
module attributes {stable_mosaic.version = 11 : i64} {
  func.func @_fused_cnn_kernel(%arg0: memref<96x144xf32, #tpu.memory_space<vmem>>, %arg1: memref<4x144x360xf32, #tpu.memory_space<vmem>>, %arg2: memref<360x8xf32, #tpu.memory_space<vmem>>, %arg3: memref<8x360xf32, #tpu.memory_space<vmem>>, %arg4: memref<1x8xf32, #tpu.memory_space<vmem>>, %arg5: memref<1x8xf32, #tpu.memory_space<vmem>>, %arg6: memref<80x64xf32, #tpu.memory_space<vmem>>, %arg7: memref<64x16xf32, #tpu.memory_space<vmem>>, %arg8: memref<16x64xf32, #tpu.memory_space<vmem>>, %arg9: memref<1x16xf32, #tpu.memory_space<vmem>>, %arg10: memref<1x16xf32, #tpu.memory_space<vmem>>, %arg11: memref<16x10xf32, #tpu.memory_space<vmem>>, %arg12: memref<1x10xf32, #tpu.memory_space<vmem>>, %arg13: memref<2x10xf32, #tpu.memory_space<vmem>>) attributes {dimension_semantics = [], scalar_prefetch = 0 : i64, scratch_operands = 0 : i64, tpu.core_type = #tpu.core_type<tc>} {
    %c0 = arith.constant 0 : index
    %c0_0 = arith.constant 0 : index
    %0 = vector.load %arg0[%c0, %c0_0] : memref<96x144xf32, #tpu.memory_space<vmem>>, vector<45x144xf32>
    %c48 = arith.constant 48 : index
    %c0_1 = arith.constant 0 : index
    %1 = vector.load %arg0[%c48, %c0_1] : memref<96x144xf32, #tpu.memory_space<vmem>>, vector<45x144xf32>
    %2 = tpu.concatenate %0, %1 in 0 : vector<45x144xf32>, vector<45x144xf32> -> vector<90x144xf32>
    %c0_2 = arith.constant 0 : index
    %c0_3 = arith.constant 0 : index
    %c0_4 = arith.constant 0 : index
    %3 = vector.load %arg1[%c0_2, %c0_3, %c0_4] : memref<4x144x360xf32, #tpu.memory_space<vmem>>, vector<1x144x360xf32>
    %4 = vector.shape_cast %3 : vector<1x144x360xf32> to vector<144x360xf32>
    %cst = arith.constant dense<0.000000e+00> : vector<90x360xf32>
    %5 = tpu.matmul %2, %4, %cst {dimension_numbers = #tpu.dot_dimension_numbers<[1], [0], [0], [1], [0, 0, 1, 1], [], []>} : vector<90x144xf32>, vector<144x360xf32>, vector<90x360xf32> -> vector<90x360xf32>
    %c1 = arith.constant 1 : index
    %c0_5 = arith.constant 0 : index
    %6 = vector.load %arg0[%c1, %c0_5] : memref<96x144xf32, #tpu.memory_space<vmem>>, vector<45x144xf32>
    %c49 = arith.constant 49 : index
    %c0_6 = arith.constant 0 : index
    %7 = vector.load %arg0[%c49, %c0_6] : memref<96x144xf32, #tpu.memory_space<vmem>>, vector<45x144xf32>
    %8 = tpu.concatenate %6, %7 in 0 : vector<45x144xf32>, vector<45x144xf32> -> vector<90x144xf32>
    %c1_7 = arith.constant 1 : index
    %c0_8 = arith.constant 0 : index
    %c0_9 = arith.constant 0 : index
    %9 = vector.load %arg1[%c1_7, %c0_8, %c0_9] : memref<4x144x360xf32, #tpu.memory_space<vmem>>, vector<1x144x360xf32>
    %10 = vector.shape_cast %9 : vector<1x144x360xf32> to vector<144x360xf32>
    %cst_10 = arith.constant dense<0.000000e+00> : vector<90x360xf32>
    %11 = tpu.matmul %8, %10, %cst_10 {dimension_numbers = #tpu.dot_dimension_numbers<[1], [0], [0], [1], [0, 0, 1, 1], [], []>} : vector<90x144xf32>, vector<144x360xf32>, vector<90x360xf32> -> vector<90x360xf32>
    %12 = arith.addf %5, %11 : vector<90x360xf32>
    %c2 = arith.constant 2 : index
    %c0_11 = arith.constant 0 : index
    %13 = vector.load %arg0[%c2, %c0_11] : memref<96x144xf32, #tpu.memory_space<vmem>>, vector<45x144xf32>
    %c50 = arith.constant 50 : index
    %c0_12 = arith.constant 0 : index
    %14 = vector.load %arg0[%c50, %c0_12] : memref<96x144xf32, #tpu.memory_space<vmem>>, vector<45x144xf32>
    %15 = tpu.concatenate %13, %14 in 0 : vector<45x144xf32>, vector<45x144xf32> -> vector<90x144xf32>
    %c2_13 = arith.constant 2 : index
    %c0_14 = arith.constant 0 : index
    %c0_15 = arith.constant 0 : index
    %16 = vector.load %arg1[%c2_13, %c0_14, %c0_15] : memref<4x144x360xf32, #tpu.memory_space<vmem>>, vector<1x144x360xf32>
    %17 = vector.shape_cast %16 : vector<1x144x360xf32> to vector<144x360xf32>
    %cst_16 = arith.constant dense<0.000000e+00> : vector<90x360xf32>
    %18 = tpu.matmul %15, %17, %cst_16 {dimension_numbers = #tpu.dot_dimension_numbers<[1], [0], [0], [1], [0, 0, 1, 1], [], []>} : vector<90x144xf32>, vector<144x360xf32>, vector<90x360xf32> -> vector<90x360xf32>
    %19 = arith.addf %12, %18 : vector<90x360xf32>
    %c3 = arith.constant 3 : index
    %c0_17 = arith.constant 0 : index
    %20 = vector.load %arg0[%c3, %c0_17] : memref<96x144xf32, #tpu.memory_space<vmem>>, vector<45x144xf32>
    %c51 = arith.constant 51 : index
    %c0_18 = arith.constant 0 : index
    %21 = vector.load %arg0[%c51, %c0_18] : memref<96x144xf32, #tpu.memory_space<vmem>>, vector<45x144xf32>
    %22 = tpu.concatenate %20, %21 in 0 : vector<45x144xf32>, vector<45x144xf32> -> vector<90x144xf32>
    %c3_19 = arith.constant 3 : index
    %c0_20 = arith.constant 0 : index
    %c0_21 = arith.constant 0 : index
    %23 = vector.load %arg1[%c3_19, %c0_20, %c0_21] : memref<4x144x360xf32, #tpu.memory_space<vmem>>, vector<1x144x360xf32>
    %24 = vector.shape_cast %23 : vector<1x144x360xf32> to vector<144x360xf32>
    %cst_22 = arith.constant dense<0.000000e+00> : vector<90x360xf32>
    %25 = tpu.matmul %22, %24, %cst_22 {dimension_numbers = #tpu.dot_dimension_numbers<[1], [0], [0], [1], [0, 0, 1, 1], [], []>} : vector<90x144xf32>, vector<144x360xf32>, vector<90x360xf32> -> vector<90x360xf32>
    %26 = arith.addf %19, %25 : vector<90x360xf32>
    %cst_23 = arith.constant dense<0.000000e+00> : vector<360xf32>
    %27 = vector.multi_reduction <add>, %26, %cst_23 [0] : vector<90x360xf32> to vector<360xf32>
    %28 = vector.shape_cast %27 : vector<360xf32> to vector<1x360xf32>
    %29 = arith.mulf %26, %26 : vector<90x360xf32>
    %cst_24 = arith.constant dense<0.000000e+00> : vector<360xf32>
    %30 = vector.multi_reduction <add>, %29, %cst_24 [0] : vector<90x360xf32> to vector<360xf32>
    %31 = vector.shape_cast %30 : vector<360xf32> to vector<1x360xf32>
    %32 = tpu.concatenate %28, %31 in 0 : vector<1x360xf32>, vector<1x360xf32> -> vector<2x360xf32>
    %c0_25 = arith.constant 0 : index
    %c0_26 = arith.constant 0 : index
    %33 = vector.load %arg2[%c0_25, %c0_26] : memref<360x8xf32, #tpu.memory_space<vmem>>, vector<360x8xf32>
    %cst_27 = arith.constant dense<0.000000e+00> : vector<2x8xf32>
    %34 = tpu.matmul %32, %33, %cst_27 {dimension_numbers = #tpu.dot_dimension_numbers<[1], [0], [0], [1], [0, 0, 1, 1], [], []>} : vector<2x360xf32>, vector<360x8xf32>, vector<2x8xf32> -> vector<2x8xf32>
    %35 = vector.extract_strided_slice %34 {offsets = [0, 0], sizes = [1, 8], strides = [1, 1]} : vector<2x8xf32> to vector<1x8xf32>
    %cst_28 = arith.constant 2.4691358E-4 : f32
    %36 = vector.broadcast %cst_28 : f32 to vector<1x8xf32>
    %37 = arith.mulf %35, %36 : vector<1x8xf32>
    %38 = vector.extract_strided_slice %34 {offsets = [1, 0], sizes = [1, 8], strides = [1, 1]} : vector<2x8xf32> to vector<1x8xf32>
    %cst_29 = arith.constant 2.4691358E-4 : f32
    %39 = vector.broadcast %cst_29 : f32 to vector<1x8xf32>
    %40 = arith.mulf %38, %39 : vector<1x8xf32>
    %41 = arith.mulf %37, %37 : vector<1x8xf32>
    %42 = arith.subf %40, %41 : vector<1x8xf32>
    %c0_30 = arith.constant 0 : index
    %c0_31 = arith.constant 0 : index
    %43 = vector.load %arg4[%c0_30, %c0_31] : memref<1x8xf32, #tpu.memory_space<vmem>>, vector<1x8xf32>
    %cst_32 = arith.constant 9.99999974E-6 : f32
    %44 = vector.broadcast %cst_32 : f32 to vector<1x8xf32>
    %45 = arith.addf %42, %44 : vector<1x8xf32>
    %46 = math.rsqrt %45 : vector<1x8xf32>
    %47 = arith.mulf %43, %46 : vector<1x8xf32>
    %c0_33 = arith.constant 0 : index
    %c0_34 = arith.constant 0 : index
    %48 = vector.load %arg5[%c0_33, %c0_34] : memref<1x8xf32, #tpu.memory_space<vmem>>, vector<1x8xf32>
    %49 = arith.mulf %37, %47 : vector<1x8xf32>
    %50 = arith.subf %48, %49 : vector<1x8xf32>
    %51 = tpu.concatenate %47, %50 in 0 : vector<1x8xf32>, vector<1x8xf32> -> vector<2x8xf32>
    %c0_35 = arith.constant 0 : index
    %c0_36 = arith.constant 0 : index
    %52 = vector.load %arg3[%c0_35, %c0_36] : memref<8x360xf32, #tpu.memory_space<vmem>>, vector<8x360xf32>
    %cst_37 = arith.constant dense<0.000000e+00> : vector<2x360xf32>
    %53 = tpu.matmul %51, %52, %cst_37 {dimension_numbers = #tpu.dot_dimension_numbers<[1], [0], [0], [1], [0, 0, 1, 1], [], []>} : vector<2x8xf32>, vector<8x360xf32>, vector<2x360xf32> -> vector<2x360xf32>
    %54 = vector.extract_strided_slice %53 {offsets = [0, 0], sizes = [1, 360], strides = [1, 1]} : vector<2x360xf32> to vector<1x360xf32>
    %55 = vector.broadcast %54 : vector<1x360xf32> to vector<90x360xf32>
    %56 = arith.mulf %26, %55 : vector<90x360xf32>
    %57 = vector.extract_strided_slice %53 {offsets = [1, 0], sizes = [1, 360], strides = [1, 1]} : vector<2x360xf32> to vector<1x360xf32>
    %58 = vector.broadcast %57 : vector<1x360xf32> to vector<90x360xf32>
    %59 = arith.addf %56, %58 : vector<90x360xf32>
    %cst_38 = arith.constant 0.000000e+00 : f32
    %60 = vector.broadcast %cst_38 : f32 to vector<90x360xf32>
    %61 = arith.maximumf %59, %60 : vector<90x360xf32>
    %62 = vector.extract_strided_slice %61 {offsets = [0, 0], sizes = [8, 360], strides = [1, 1]} : vector<90x360xf32> to vector<8x360xf32>
    %cst_39 = arith.constant dense<0xFF800000> : vector<360xf32>
    %63 = vector.multi_reduction <maximumf>, %62, %cst_39 [0] : vector<8x360xf32> to vector<360xf32>
    %64 = vector.shape_cast %63 : vector<360xf32> to vector<1x360xf32>
    %65 = vector.extract_strided_slice %61 {offsets = [8, 0], sizes = [8, 360], strides = [1, 1]} : vector<90x360xf32> to vector<8x360xf32>
    %cst_40 = arith.constant dense<0xFF800000> : vector<360xf32>
    %66 = vector.multi_reduction <maximumf>, %65, %cst_40 [0] : vector<8x360xf32> to vector<360xf32>
    %67 = vector.shape_cast %66 : vector<360xf32> to vector<1x360xf32>
    %68 = vector.extract_strided_slice %61 {offsets = [16, 0], sizes = [8, 360], strides = [1, 1]} : vector<90x360xf32> to vector<8x360xf32>
    %cst_41 = arith.constant dense<0xFF800000> : vector<360xf32>
    %69 = vector.multi_reduction <maximumf>, %68, %cst_41 [0] : vector<8x360xf32> to vector<360xf32>
    %70 = vector.shape_cast %69 : vector<360xf32> to vector<1x360xf32>
    %71 = vector.extract_strided_slice %61 {offsets = [24, 0], sizes = [8, 360], strides = [1, 1]} : vector<90x360xf32> to vector<8x360xf32>
    %cst_42 = arith.constant dense<0xFF800000> : vector<360xf32>
    %72 = vector.multi_reduction <maximumf>, %71, %cst_42 [0] : vector<8x360xf32> to vector<360xf32>
    %73 = vector.shape_cast %72 : vector<360xf32> to vector<1x360xf32>
    %74 = vector.extract_strided_slice %61 {offsets = [32, 0], sizes = [8, 360], strides = [1, 1]} : vector<90x360xf32> to vector<8x360xf32>
    %cst_43 = arith.constant dense<0xFF800000> : vector<360xf32>
    %75 = vector.multi_reduction <maximumf>, %74, %cst_43 [0] : vector<8x360xf32> to vector<360xf32>
    %76 = vector.shape_cast %75 : vector<360xf32> to vector<1x360xf32>
    %77 = vector.extract_strided_slice %61 {offsets = [45, 0], sizes = [8, 360], strides = [1, 1]} : vector<90x360xf32> to vector<8x360xf32>
    %cst_44 = arith.constant dense<0xFF800000> : vector<360xf32>
    %78 = vector.multi_reduction <maximumf>, %77, %cst_44 [0] : vector<8x360xf32> to vector<360xf32>
    %79 = vector.shape_cast %78 : vector<360xf32> to vector<1x360xf32>
    %80 = vector.extract_strided_slice %61 {offsets = [53, 0], sizes = [8, 360], strides = [1, 1]} : vector<90x360xf32> to vector<8x360xf32>
    %cst_45 = arith.constant dense<0xFF800000> : vector<360xf32>
    %81 = vector.multi_reduction <maximumf>, %80, %cst_45 [0] : vector<8x360xf32> to vector<360xf32>
    %82 = vector.shape_cast %81 : vector<360xf32> to vector<1x360xf32>
    %83 = vector.extract_strided_slice %61 {offsets = [61, 0], sizes = [8, 360], strides = [1, 1]} : vector<90x360xf32> to vector<8x360xf32>
    %cst_46 = arith.constant dense<0xFF800000> : vector<360xf32>
    %84 = vector.multi_reduction <maximumf>, %83, %cst_46 [0] : vector<8x360xf32> to vector<360xf32>
    %85 = vector.shape_cast %84 : vector<360xf32> to vector<1x360xf32>
    %86 = vector.extract_strided_slice %61 {offsets = [69, 0], sizes = [8, 360], strides = [1, 1]} : vector<90x360xf32> to vector<8x360xf32>
    %cst_47 = arith.constant dense<0xFF800000> : vector<360xf32>
    %87 = vector.multi_reduction <maximumf>, %86, %cst_47 [0] : vector<8x360xf32> to vector<360xf32>
    %88 = vector.shape_cast %87 : vector<360xf32> to vector<1x360xf32>
    %89 = vector.extract_strided_slice %61 {offsets = [77, 0], sizes = [8, 360], strides = [1, 1]} : vector<90x360xf32> to vector<8x360xf32>
    %cst_48 = arith.constant dense<0xFF800000> : vector<360xf32>
    %90 = vector.multi_reduction <maximumf>, %89, %cst_48 [0] : vector<8x360xf32> to vector<360xf32>
    %91 = vector.shape_cast %90 : vector<360xf32> to vector<1x360xf32>
    %92 = tpu.concatenate %64, %67, %70, %73, %76, %79, %82, %85, %88, %91 in 0 : vector<1x360xf32>, vector<1x360xf32>, vector<1x360xf32>, vector<1x360xf32>, vector<1x360xf32>, vector<1x360xf32>, vector<1x360xf32>, vector<1x360xf32>, vector<1x360xf32>, vector<1x360xf32> -> vector<10x360xf32>
    %93 = vector.extract_strided_slice %92 {offsets = [0, 0], sizes = [10, 64], strides = [1, 1]} : vector<10x360xf32> to vector<10x64xf32>
    %94 = vector.extract_strided_slice %93 {offsets = [0, 0], sizes = [10, 8], strides = [1, 1]} : vector<10x64xf32> to vector<10x8xf32>
    %95 = vector.extract_strided_slice %93 {offsets = [0, 8], sizes = [10, 8], strides = [1, 1]} : vector<10x64xf32> to vector<10x8xf32>
    %96 = arith.maximumf %94, %95 : vector<10x8xf32>
    %97 = vector.extract_strided_slice %93 {offsets = [0, 16], sizes = [10, 8], strides = [1, 1]} : vector<10x64xf32> to vector<10x8xf32>
    %98 = arith.maximumf %96, %97 : vector<10x8xf32>
    %99 = vector.extract_strided_slice %93 {offsets = [0, 24], sizes = [10, 8], strides = [1, 1]} : vector<10x64xf32> to vector<10x8xf32>
    %100 = arith.maximumf %98, %99 : vector<10x8xf32>
    %101 = vector.extract_strided_slice %93 {offsets = [0, 32], sizes = [10, 8], strides = [1, 1]} : vector<10x64xf32> to vector<10x8xf32>
    %102 = arith.maximumf %100, %101 : vector<10x8xf32>
    %103 = vector.extract_strided_slice %93 {offsets = [0, 40], sizes = [10, 8], strides = [1, 1]} : vector<10x64xf32> to vector<10x8xf32>
    %104 = arith.maximumf %102, %103 : vector<10x8xf32>
    %105 = vector.extract_strided_slice %93 {offsets = [0, 48], sizes = [10, 8], strides = [1, 1]} : vector<10x64xf32> to vector<10x8xf32>
    %106 = arith.maximumf %104, %105 : vector<10x8xf32>
    %107 = vector.extract_strided_slice %93 {offsets = [0, 56], sizes = [10, 8], strides = [1, 1]} : vector<10x64xf32> to vector<10x8xf32>
    %108 = arith.maximumf %106, %107 : vector<10x8xf32>
    %109 = vector.extract_strided_slice %92 {offsets = [0, 64], sizes = [10, 64], strides = [1, 1]} : vector<10x360xf32> to vector<10x64xf32>
    %110 = vector.extract_strided_slice %109 {offsets = [0, 0], sizes = [10, 8], strides = [1, 1]} : vector<10x64xf32> to vector<10x8xf32>
    %111 = vector.extract_strided_slice %109 {offsets = [0, 8], sizes = [10, 8], strides = [1, 1]} : vector<10x64xf32> to vector<10x8xf32>
    %112 = arith.maximumf %110, %111 : vector<10x8xf32>
    %113 = vector.extract_strided_slice %109 {offsets = [0, 16], sizes = [10, 8], strides = [1, 1]} : vector<10x64xf32> to vector<10x8xf32>
    %114 = arith.maximumf %112, %113 : vector<10x8xf32>
    %115 = vector.extract_strided_slice %109 {offsets = [0, 24], sizes = [10, 8], strides = [1, 1]} : vector<10x64xf32> to vector<10x8xf32>
    %116 = arith.maximumf %114, %115 : vector<10x8xf32>
    %117 = vector.extract_strided_slice %109 {offsets = [0, 32], sizes = [10, 8], strides = [1, 1]} : vector<10x64xf32> to vector<10x8xf32>
    %118 = arith.maximumf %116, %117 : vector<10x8xf32>
    %119 = vector.extract_strided_slice %109 {offsets = [0, 40], sizes = [10, 8], strides = [1, 1]} : vector<10x64xf32> to vector<10x8xf32>
    %120 = arith.maximumf %118, %119 : vector<10x8xf32>
    %121 = vector.extract_strided_slice %109 {offsets = [0, 48], sizes = [10, 8], strides = [1, 1]} : vector<10x64xf32> to vector<10x8xf32>
    %122 = arith.maximumf %120, %121 : vector<10x8xf32>
    %123 = vector.extract_strided_slice %109 {offsets = [0, 56], sizes = [10, 8], strides = [1, 1]} : vector<10x64xf32> to vector<10x8xf32>
    %124 = arith.maximumf %122, %123 : vector<10x8xf32>
    %125 = vector.extract_strided_slice %92 {offsets = [0, 128], sizes = [10, 64], strides = [1, 1]} : vector<10x360xf32> to vector<10x64xf32>
    %126 = vector.extract_strided_slice %125 {offsets = [0, 0], sizes = [10, 8], strides = [1, 1]} : vector<10x64xf32> to vector<10x8xf32>
    %127 = vector.extract_strided_slice %125 {offsets = [0, 8], sizes = [10, 8], strides = [1, 1]} : vector<10x64xf32> to vector<10x8xf32>
    %128 = arith.maximumf %126, %127 : vector<10x8xf32>
    %129 = vector.extract_strided_slice %125 {offsets = [0, 16], sizes = [10, 8], strides = [1, 1]} : vector<10x64xf32> to vector<10x8xf32>
    %130 = arith.maximumf %128, %129 : vector<10x8xf32>
    %131 = vector.extract_strided_slice %125 {offsets = [0, 24], sizes = [10, 8], strides = [1, 1]} : vector<10x64xf32> to vector<10x8xf32>
    %132 = arith.maximumf %130, %131 : vector<10x8xf32>
    %133 = vector.extract_strided_slice %125 {offsets = [0, 32], sizes = [10, 8], strides = [1, 1]} : vector<10x64xf32> to vector<10x8xf32>
    %134 = arith.maximumf %132, %133 : vector<10x8xf32>
    %135 = vector.extract_strided_slice %125 {offsets = [0, 40], sizes = [10, 8], strides = [1, 1]} : vector<10x64xf32> to vector<10x8xf32>
    %136 = arith.maximumf %134, %135 : vector<10x8xf32>
    %137 = vector.extract_strided_slice %125 {offsets = [0, 48], sizes = [10, 8], strides = [1, 1]} : vector<10x64xf32> to vector<10x8xf32>
    %138 = arith.maximumf %136, %137 : vector<10x8xf32>
    %139 = vector.extract_strided_slice %125 {offsets = [0, 56], sizes = [10, 8], strides = [1, 1]} : vector<10x64xf32> to vector<10x8xf32>
    %140 = arith.maximumf %138, %139 : vector<10x8xf32>
    %141 = vector.extract_strided_slice %92 {offsets = [0, 192], sizes = [10, 64], strides = [1, 1]} : vector<10x360xf32> to vector<10x64xf32>
    %142 = vector.extract_strided_slice %141 {offsets = [0, 0], sizes = [10, 8], strides = [1, 1]} : vector<10x64xf32> to vector<10x8xf32>
    %143 = vector.extract_strided_slice %141 {offsets = [0, 8], sizes = [10, 8], strides = [1, 1]} : vector<10x64xf32> to vector<10x8xf32>
    %144 = arith.maximumf %142, %143 : vector<10x8xf32>
    %145 = vector.extract_strided_slice %141 {offsets = [0, 16], sizes = [10, 8], strides = [1, 1]} : vector<10x64xf32> to vector<10x8xf32>
    %146 = arith.maximumf %144, %145 : vector<10x8xf32>
    %147 = vector.extract_strided_slice %141 {offsets = [0, 24], sizes = [10, 8], strides = [1, 1]} : vector<10x64xf32> to vector<10x8xf32>
    %148 = arith.maximumf %146, %147 : vector<10x8xf32>
    %149 = vector.extract_strided_slice %141 {offsets = [0, 32], sizes = [10, 8], strides = [1, 1]} : vector<10x64xf32> to vector<10x8xf32>
    %150 = arith.maximumf %148, %149 : vector<10x8xf32>
    %151 = vector.extract_strided_slice %141 {offsets = [0, 40], sizes = [10, 8], strides = [1, 1]} : vector<10x64xf32> to vector<10x8xf32>
    %152 = arith.maximumf %150, %151 : vector<10x8xf32>
    %153 = vector.extract_strided_slice %141 {offsets = [0, 48], sizes = [10, 8], strides = [1, 1]} : vector<10x64xf32> to vector<10x8xf32>
    %154 = arith.maximumf %152, %153 : vector<10x8xf32>
    %155 = vector.extract_strided_slice %141 {offsets = [0, 56], sizes = [10, 8], strides = [1, 1]} : vector<10x64xf32> to vector<10x8xf32>
    %156 = arith.maximumf %154, %155 : vector<10x8xf32>
    %157 = vector.extract_strided_slice %92 {offsets = [0, 256], sizes = [10, 64], strides = [1, 1]} : vector<10x360xf32> to vector<10x64xf32>
    %158 = vector.extract_strided_slice %157 {offsets = [0, 0], sizes = [10, 8], strides = [1, 1]} : vector<10x64xf32> to vector<10x8xf32>
    %159 = vector.extract_strided_slice %157 {offsets = [0, 8], sizes = [10, 8], strides = [1, 1]} : vector<10x64xf32> to vector<10x8xf32>
    %160 = arith.maximumf %158, %159 : vector<10x8xf32>
    %161 = vector.extract_strided_slice %157 {offsets = [0, 16], sizes = [10, 8], strides = [1, 1]} : vector<10x64xf32> to vector<10x8xf32>
    %162 = arith.maximumf %160, %161 : vector<10x8xf32>
    %163 = vector.extract_strided_slice %157 {offsets = [0, 24], sizes = [10, 8], strides = [1, 1]} : vector<10x64xf32> to vector<10x8xf32>
    %164 = arith.maximumf %162, %163 : vector<10x8xf32>
    %165 = vector.extract_strided_slice %157 {offsets = [0, 32], sizes = [10, 8], strides = [1, 1]} : vector<10x64xf32> to vector<10x8xf32>
    %166 = arith.maximumf %164, %165 : vector<10x8xf32>
    %167 = vector.extract_strided_slice %157 {offsets = [0, 40], sizes = [10, 8], strides = [1, 1]} : vector<10x64xf32> to vector<10x8xf32>
    %168 = arith.maximumf %166, %167 : vector<10x8xf32>
    %169 = vector.extract_strided_slice %157 {offsets = [0, 48], sizes = [10, 8], strides = [1, 1]} : vector<10x64xf32> to vector<10x8xf32>
    %170 = arith.maximumf %168, %169 : vector<10x8xf32>
    %171 = vector.extract_strided_slice %157 {offsets = [0, 56], sizes = [10, 8], strides = [1, 1]} : vector<10x64xf32> to vector<10x8xf32>
    %172 = arith.maximumf %170, %171 : vector<10x8xf32>
    %173 = tpu.concatenate %108, %124, %140, %156, %172 in 1 : vector<10x8xf32>, vector<10x8xf32>, vector<10x8xf32>, vector<10x8xf32>, vector<10x8xf32> -> vector<10x40xf32>
    %174 = vector.extract_strided_slice %173 {offsets = [0, 0], sizes = [4, 40], strides = [1, 1]} : vector<10x40xf32> to vector<4x40xf32>
    %175 = vector.extract_strided_slice %173 {offsets = [5, 0], sizes = [4, 40], strides = [1, 1]} : vector<10x40xf32> to vector<4x40xf32>
    %176 = tpu.concatenate %174, %175 in 0 : vector<4x40xf32>, vector<4x40xf32> -> vector<8x40xf32>
    %177 = vector.extract_strided_slice %173 {offsets = [1, 0], sizes = [4, 40], strides = [1, 1]} : vector<10x40xf32> to vector<4x40xf32>
    %178 = vector.extract_strided_slice %173 {offsets = [6, 0], sizes = [4, 40], strides = [1, 1]} : vector<10x40xf32> to vector<4x40xf32>
    %179 = tpu.concatenate %177, %178 in 0 : vector<4x40xf32>, vector<4x40xf32> -> vector<8x40xf32>
    %180 = tpu.concatenate %176, %179 in 1 : vector<8x40xf32>, vector<8x40xf32> -> vector<8x80xf32>
    %c0_49 = arith.constant 0 : index
    %c0_50 = arith.constant 0 : index
    %181 = vector.load %arg6[%c0_49, %c0_50] : memref<80x64xf32, #tpu.memory_space<vmem>>, vector<80x64xf32>
    %cst_51 = arith.constant dense<0.000000e+00> : vector<8x64xf32>
    %182 = tpu.matmul %180, %181, %cst_51 {dimension_numbers = #tpu.dot_dimension_numbers<[1], [0], [0], [1], [0, 0, 1, 1], [], []>} : vector<8x80xf32>, vector<80x64xf32>, vector<8x64xf32> -> vector<8x64xf32>
    %cst_52 = arith.constant dense<0.000000e+00> : vector<64xf32>
    %183 = vector.multi_reduction <add>, %182, %cst_52 [0] : vector<8x64xf32> to vector<64xf32>
    %184 = vector.shape_cast %183 : vector<64xf32> to vector<1x64xf32>
    %185 = arith.mulf %182, %182 : vector<8x64xf32>
    %cst_53 = arith.constant dense<0.000000e+00> : vector<64xf32>
    %186 = vector.multi_reduction <add>, %185, %cst_53 [0] : vector<8x64xf32> to vector<64xf32>
    %187 = vector.shape_cast %186 : vector<64xf32> to vector<1x64xf32>
    %188 = tpu.concatenate %184, %187 in 0 : vector<1x64xf32>, vector<1x64xf32> -> vector<2x64xf32>
    %c0_54 = arith.constant 0 : index
    %c0_55 = arith.constant 0 : index
    %189 = vector.load %arg7[%c0_54, %c0_55] : memref<64x16xf32, #tpu.memory_space<vmem>>, vector<64x16xf32>
    %cst_56 = arith.constant dense<0.000000e+00> : vector<2x16xf32>
    %190 = tpu.matmul %188, %189, %cst_56 {dimension_numbers = #tpu.dot_dimension_numbers<[1], [0], [0], [1], [0, 0, 1, 1], [], []>} : vector<2x64xf32>, vector<64x16xf32>, vector<2x16xf32> -> vector<2x16xf32>
    %191 = vector.extract_strided_slice %190 {offsets = [0, 0], sizes = [1, 16], strides = [1, 1]} : vector<2x16xf32> to vector<1x16xf32>
    %cst_57 = arith.constant 3.125000e-02 : f32
    %192 = vector.broadcast %cst_57 : f32 to vector<1x16xf32>
    %193 = arith.mulf %191, %192 : vector<1x16xf32>
    %194 = vector.extract_strided_slice %190 {offsets = [1, 0], sizes = [1, 16], strides = [1, 1]} : vector<2x16xf32> to vector<1x16xf32>
    %cst_58 = arith.constant 3.125000e-02 : f32
    %195 = vector.broadcast %cst_58 : f32 to vector<1x16xf32>
    %196 = arith.mulf %194, %195 : vector<1x16xf32>
    %197 = arith.mulf %193, %193 : vector<1x16xf32>
    %198 = arith.subf %196, %197 : vector<1x16xf32>
    %c0_59 = arith.constant 0 : index
    %c0_60 = arith.constant 0 : index
    %199 = vector.load %arg9[%c0_59, %c0_60] : memref<1x16xf32, #tpu.memory_space<vmem>>, vector<1x16xf32>
    %cst_61 = arith.constant 9.99999974E-6 : f32
    %200 = vector.broadcast %cst_61 : f32 to vector<1x16xf32>
    %201 = arith.addf %198, %200 : vector<1x16xf32>
    %202 = math.rsqrt %201 : vector<1x16xf32>
    %203 = arith.mulf %199, %202 : vector<1x16xf32>
    %c0_62 = arith.constant 0 : index
    %c0_63 = arith.constant 0 : index
    %204 = vector.load %arg10[%c0_62, %c0_63] : memref<1x16xf32, #tpu.memory_space<vmem>>, vector<1x16xf32>
    %205 = arith.mulf %193, %203 : vector<1x16xf32>
    %206 = arith.subf %204, %205 : vector<1x16xf32>
    %207 = tpu.concatenate %203, %206 in 0 : vector<1x16xf32>, vector<1x16xf32> -> vector<2x16xf32>
    %c0_64 = arith.constant 0 : index
    %c0_65 = arith.constant 0 : index
    %208 = vector.load %arg8[%c0_64, %c0_65] : memref<16x64xf32, #tpu.memory_space<vmem>>, vector<16x64xf32>
    %cst_66 = arith.constant dense<0.000000e+00> : vector<2x64xf32>
    %209 = tpu.matmul %207, %208, %cst_66 {dimension_numbers = #tpu.dot_dimension_numbers<[1], [0], [0], [1], [0, 0, 1, 1], [], []>} : vector<2x16xf32>, vector<16x64xf32>, vector<2x64xf32> -> vector<2x64xf32>
    %210 = vector.extract_strided_slice %209 {offsets = [0, 0], sizes = [1, 64], strides = [1, 1]} : vector<2x64xf32> to vector<1x64xf32>
    %211 = vector.broadcast %210 : vector<1x64xf32> to vector<8x64xf32>
    %212 = arith.mulf %182, %211 : vector<8x64xf32>
    %213 = vector.extract_strided_slice %209 {offsets = [1, 0], sizes = [1, 64], strides = [1, 1]} : vector<2x64xf32> to vector<1x64xf32>
    %214 = vector.broadcast %213 : vector<1x64xf32> to vector<8x64xf32>
    %215 = arith.addf %212, %214 : vector<8x64xf32>
    %cst_67 = arith.constant 0.000000e+00 : f32
    %216 = vector.broadcast %cst_67 : f32 to vector<8x64xf32>
    %217 = arith.maximumf %215, %216 : vector<8x64xf32>
    %218 = vector.extract_strided_slice %217 {offsets = [0, 0], sizes = [4, 64], strides = [1, 1]} : vector<8x64xf32> to vector<4x64xf32>
    %cst_68 = arith.constant dense<0xFF800000> : vector<64xf32>
    %219 = vector.multi_reduction <maximumf>, %218, %cst_68 [0] : vector<4x64xf32> to vector<64xf32>
    %220 = vector.shape_cast %219 : vector<64xf32> to vector<1x64xf32>
    %221 = vector.extract_strided_slice %217 {offsets = [4, 0], sizes = [4, 64], strides = [1, 1]} : vector<8x64xf32> to vector<4x64xf32>
    %cst_69 = arith.constant dense<0xFF800000> : vector<64xf32>
    %222 = vector.multi_reduction <maximumf>, %221, %cst_69 [0] : vector<4x64xf32> to vector<64xf32>
    %223 = vector.shape_cast %222 : vector<64xf32> to vector<1x64xf32>
    %224 = tpu.concatenate %220, %223 in 0 : vector<1x64xf32>, vector<1x64xf32> -> vector<2x64xf32>
    %225 = vector.extract_strided_slice %224 {offsets = [0, 0], sizes = [2, 16], strides = [1, 1]} : vector<2x64xf32> to vector<2x16xf32>
    %226 = vector.extract_strided_slice %224 {offsets = [0, 16], sizes = [2, 16], strides = [1, 1]} : vector<2x64xf32> to vector<2x16xf32>
    %227 = arith.maximumf %225, %226 : vector<2x16xf32>
    %228 = vector.extract_strided_slice %224 {offsets = [0, 32], sizes = [2, 16], strides = [1, 1]} : vector<2x64xf32> to vector<2x16xf32>
    %229 = arith.maximumf %227, %228 : vector<2x16xf32>
    %230 = vector.extract_strided_slice %224 {offsets = [0, 48], sizes = [2, 16], strides = [1, 1]} : vector<2x64xf32> to vector<2x16xf32>
    %231 = arith.maximumf %229, %230 : vector<2x16xf32>
    %c0_70 = arith.constant 0 : index
    %c0_71 = arith.constant 0 : index
    %232 = vector.load %arg11[%c0_70, %c0_71] : memref<16x10xf32, #tpu.memory_space<vmem>>, vector<16x10xf32>
    %cst_72 = arith.constant dense<0.000000e+00> : vector<2x10xf32>
    %233 = tpu.matmul %231, %232, %cst_72 {dimension_numbers = #tpu.dot_dimension_numbers<[1], [0], [0], [1], [0, 0, 1, 1], [], []>} : vector<2x16xf32>, vector<16x10xf32>, vector<2x10xf32> -> vector<2x10xf32>
    %c0_73 = arith.constant 0 : index
    %c0_74 = arith.constant 0 : index
    %234 = vector.load %arg12[%c0_73, %c0_74] : memref<1x10xf32, #tpu.memory_space<vmem>>, vector<1x10xf32>
    %235 = vector.broadcast %234 : vector<1x10xf32> to vector<2x10xf32>
    %236 = arith.addf %233, %235 : vector<2x10xf32>
    %c0_75 = arith.constant 0 : index
    %c0_76 = arith.constant 0 : index
    %237 = vector.load %arg13[%c0_75, %c0_76] : memref<2x10xf32, #tpu.memory_space<vmem>>, vector<2x10xf32>
    tpu.vector_store %arg13[%c0_75, %c0_76], %236 {strides = array<i32>} : memref<2x10xf32, #tpu.memory_space<vmem>>, vector<2x10xf32>,
    return
  }
}

</mosaic_0001>

<bundles_post_ra>
// kernel: cnn_forward.1
= control target key start
LH: loop header
LB: loop body
LE: loop exit
PB: predicated region body
PF: predicated region fallthrough
CT: control target
= control target key end

     0   :  { %v6493_v3 = vmov 0.0|0.0   ;;  %vm188_vm0 = vcmask 1046528   ;;  %vm310_vm1 = vcmask 130048   ;;  %vm932_vm2 = vcmask 1042432   ;;  %s6479_s0 = inlined_call_operand.vmem [shape: f32[96,144], index: 0, kind: input, shape index: {}]   ;;  %s6480_s1 = inlined_call_operand.vmem [shape: f32[4,144,360], index: 1, kind: input, shape index: {}]   ;;  %s6481_s2 = inlined_call_operand.vmem [shape: f32[360,8], index: 2, kind: input, shape index: {}]   ;;  %s6482_s3 = inlined_call_operand.vmem [shape: f32[8,360], index: 3, kind: input, shape index: {}]   ;;  %s6483_s4 = inlined_call_operand.vmem [shape: f32[1,8], index: 4, kind: input, shape index: {}]   ;;  %s6484_s5 = inlined_call_operand.vmem [shape: f32[1,8], index: 5, kind: input, shape index: {}]   ;;  %s6485_s6 = inlined_call_operand.vmem [shape: f32[80,64], index: 6, kind: input, shape index: {}]   ;;  %s6486_s7 = inlined_call_operand.vmem [shape: f32[64,16], index: 7, kind: input, shape index: {}]   ;;  %s6487_s8 = inlined_call_operand.vmem [shape: f32[16,64], index: 8, kind: input, shape index: {}]   ;;  %s6488_s9 = inlined_call_operand.vmem [shape: f32[1,16], index: 9, kind: input, shape index: {}]   ;;  %s6489_s10 = inlined_call_operand.vmem [shape: f32[1,16], index: 10, kind: input, shape index: {}]   ;;  %s6490_s11 = inlined_call_operand.vmem [shape: f32[16,10], index: 11, kind: input, shape index: {}]   ;;  %s6491_s12 = inlined_call_operand.vmem [shape: f32[1,10], index: 12, kind: input, shape index: {}]   ;;  %s6492_s13 = inlined_call_operand.hbm [shape: f32[2,10], index: 13, kind: output, shape index: {}]  }
   0x1   :  { %v3391_v0 = vld [vmem:[%s6480_s1 + $0x1b8] sm:$0xff]  ;;  %v3394_v1 = vld [vmem:[%s6480_s1 + $0x1d0] sm:$0xff]  ;;  %v3392_v2 = vld [vmem:[%s6480_s1 + $0x1c0] sm:$0xff]  ;;  %3859 = vmatprep.subr.bf16.mxu1 %v6493_v3  ;;  %vm81_vm3 = vcmask 1044480   ;;  %vm222_vm4 = vcmask 1043456   ;;  %vm1388_vm5 = vcmask 1041408  }
   0x2   :  { %v3823_v4 = vpack.c.bf16 %v3394_v1, %v3391_v0  ;;  %v3395_v5 = vld [vmem:[%s6480_s1 + $0x1d8] sm:$0xff]  ;;  %v3390_v6 = vld [vmem:[%s6480_s1 + $0x1b0] sm:$0xff]  ;;  %v3393_v7 = vld [vmem:[%s6480_s1 + $0x1c8] sm:$0xff] }
   0x3   :  { %v3860_v8 = vpack.c.bf16 %v3395_v5, %v3392_v2  ;;  %v3825_v9 = vpack.c.bf16 %v3393_v7, %v3390_v6  ;;  %v3397_v10 = vld [vmem:[%s6480_s1 + $0x1e8] sm:$0xff]  ;;  %v3400_v11 = vld [vmem:[%s6480_s1 + $0x200] sm:$0xff]  ;;  %v3398_v12 = vld [vmem:[%s6480_s1 + $0x1f0] sm:$0xff] }
   0x4   :  { %3824 = vmatprep.subr.bf16.mxu0 %v3823_v4  ;;  %v3827_v13 = vpack.c.bf16 %v3400_v11, %v3397_v10  ;;  %v3401_v14 = vld [vmem:[%s6480_s1 + $0x208] sm:$0xff]  ;;  %v3396_v15 = vld [vmem:[%s6480_s1 + $0x1e0] sm:$0xff]  ;;  %v3399_v16 = vld [vmem:[%s6480_s1 + $0x1f8] sm:$0xff] }
   0x5   :  { %3861 = vmatpush1.bf16.msra.mxu1 %v3860_v8  ;;  %3826 = vmatpush1.bf16.msra.mxu0 %v3825_v9  ;;  %v3863_v17 = vpack.c.bf16 %v3401_v14, %v3398_v12  ;;  %v3829_v18 = vpack.c.bf16 %v3399_v16, %v3396_v15  ;;  %v3403_v19 = vld [vmem:[%s6480_s1 + $0x218] sm:$0xff]  ;;  %v3406_v20 = vld [vmem:[%s6480_s1 + $0x230] sm:$0xff]  ;;  %v3404_v21 = vld [vmem:[%s6480_s1 + $0x220] sm:$0xff] }
   0x6   :  { %3862 = vmatprep.subr.bf16.mxu1 %v6493_v3  ;;  %3828 = vmatprep.subr.bf16.mxu0 %v3827_v13  ;;  %v3831_v22 = vpack.c.bf16 %v3406_v20, %v3403_v19  ;;  %v3407_v23 = vld [vmem:[%s6480_s1 + $0x238] sm:$0xff]  ;;  %v3402_v24 = vld [vmem:[%s6480_s1 + $0x210] sm:$0xff]  ;;  %v3405_v25 = vld [vmem:[%s6480_s1 + $0x228] sm:$0xff] }
   0x7   :  { %v3409_v26 = vld [vmem:[%s6480_s1 + $0x248] sm:$0xff]  ;;  %v3412_v27 = vld [vmem:[%s6480_s1 + $0x260] sm:$0xff]  ;;  %v3866_v28 = vpack.c.bf16 %v3407_v23, %v3404_v21  ;;  %v3833_v29 = vpack.c.bf16 %v3405_v25, %v3402_v24  ;;  %v3410_v30 = vld [vmem:[%s6480_s1 + $0x250] sm:$0xff] }
   0x8   :  { %v3835_v31 = vpack.c.bf16 %v3412_v27, %v3409_v26  ;;  %v3413_v32 = vld [vmem:[%s6480_s1 + $0x268] sm:$0xff]  ;;  %v3408_v33 = vld [vmem:[%s6480_s1 + $0x240] sm:$0xff]  ;;  %v3411_v34 = vld [vmem:[%s6480_s1 + $0x258] sm:$0xff] }
   0x9   :  { %3864 = vmatpush1.bf16.msra.mxu1 %v3863_v17  ;;  %3830 = vmatpush1.bf16.msra.mxu0 %v3829_v18  ;;  %v3415_v35 = vld [vmem:[%s6480_s1 + $0x278] sm:$0xff]  ;;  %v3418_v36 = vld [vmem:[%s6480_s1 + $0x290] sm:$0xff]  ;;  %v3869_v37 = vpack.c.bf16 %v3413_v32, %v3410_v30  ;;  %v3837_v38 = vpack.c.bf16 %v3411_v34, %v3408_v33  ;;  %v3416_v39 = vld [vmem:[%s6480_s1 + $0x280] sm:$0xff] }
   0xa   :  { %3865 = vmatprep.subr.bf16.mxu1 %v6493_v3  ;;  %3832 = vmatprep.subr.bf16.mxu0 %v3831_v22  ;;  %v3839_v40 = vpack.c.bf16 %v3418_v36, %v3415_v35  ;;  %v3419_v41 = vld [vmem:[%s6480_s1 + $0x298] sm:$0xff]  ;;  %v3414_v42 = vld [vmem:[%s6480_s1 + $0x270] sm:$0xff]  ;;  %v3417_v43 = vld [vmem:[%s6480_s1 + $0x288] sm:$0xff] }
   0xb   :  { %v3421_v44 = vld [vmem:[%s6480_s1 + $0x2a8] sm:$0xff]  ;;  %v3424_v45 = vld [vmem:[%s6480_s1 + $0x2c0] sm:$0xff]  ;;  %v3872_v46 = vpack.c.bf16 %v3419_v41, %v3416_v39  ;;  %v3841_v47 = vpack.c.bf16 %v3417_v43, %v3414_v42  ;;  %v3422_v48 = vld [vmem:[%s6480_s1 + $0x2b0] sm:$0xff] }
   0xc   :  { %v3425_v49 = vld [vmem:[%s6480_s1 + $0x2c8] sm:$0xff]  ;;  %v3843_v50 = vpack.c.bf16 %v3424_v45, %v3421_v44  ;;  %v3420_v51 = vld [vmem:[%s6480_s1 + $0x2a0] sm:$0xff]  ;;  %v3423_v52 = vld [vmem:[%s6480_s1 + $0x2b8] sm:$0xff] }
   0xd   :  { %3867 = vmatpush1.bf16.msra.mxu1 %v3866_v28  ;;  %3834 = vmatpush1.bf16.msra.mxu0 %v3833_v29  ;;  %v3427_v53 = vld [vmem:[%s6480_s1 + $0x2d8] sm:$0xff]  ;;  %v3430_v54 = vld [vmem:[%s6480_s1 + $0x2f0] sm:$0xff]  ;;  %v169_v56 = vld [vmem:[%s6479_s0 + $0x8] sm:$0xfe]  ;;  %v3875_v59 = vpack.c.bf16 %v3425_v49, %v3422_v48  ;;  %v3845_v60 = vpack.c.bf16 %v3423_v52, %v3420_v51 }
   0xe   :  { %3868 = vmatprep.subr.bf16.mxu1 %v6493_v3  ;;  %3836 = vmatprep.subr.bf16.mxu0 %v3835_v31  ;;  %v4560_v55 = vld [vmem:[%s6479_s0 + $0x18] sm:$0xff]  ;;  %v192_v57 = vrot.slane %v169_v56, 1  ;;  %v3428_v61 = vld [vmem:[%s6480_s1 + $0x2e0] sm:$0xff]  ;;  %v3847_v62 = vpack.c.bf16 %v3430_v54, %v3427_v53  ;;  %v3426_v0 = vld [vmem:[%s6480_s1 + $0x2d0] sm:$0xff] }
   0xf   :  { %v193_v58 = vrot.slane %v4560_v55, 1  ;;  %v3431_v63 = vld [vmem:[%s6480_s1 + $0x2f8] sm:$0xff]  ;;  %v3429_v1 = vld [vmem:[%s6480_s1 + $0x2e8] sm:$0xff]  ;;  %v3436_v5 = vld [vmem:[%s6480_s1 + $0x320] sm:$0xff] }
  0x10   :  { %v3433_v4 = vld [vmem:[%s6480_s1 + $0x308] sm:$0xff]  ;;  %v3878_v6 = vpack.c.bf16 %v3431_v63, %v3428_v61  ;;  %v3849_v7 = vpack.c.bf16 %v3429_v1, %v3426_v0  ;;  %v3434_v8 = vld [vmem:[%s6480_s1 + $0x310] sm:$0xff]  ;;  %v3432_v11 = vld [vmem:[%s6480_s1 + $0x300] sm:$0xff] }
  0x11   :  { %3870 = vmatpush1.bf16.msra.mxu1 %v3869_v37  ;;  %3838 = vmatpush1.bf16.msra.mxu0 %v3837_v38  ;;  %v194_v2 = vsel %vm188_vm0, %v192_v57, %v193_v58  ;;  %v3851_v9 = vpack.c.bf16 %v3436_v5, %v3433_v4  ;;  %v3437_v10 = vld [vmem:[%s6480_s1 + $0x328] sm:$0xff]  ;;  %v3435_v12 = vld [vmem:[%s6480_s1 + $0x318] sm:$0xff]  ;;  %v3442_v14 = vld [vmem:[%s6480_s1 + $0x350] sm:$0xff] }
  0x12   :  { %3871 = vmatprep.subr.bf16.mxu1 %v6493_v3  ;;  %3840 = vmatprep.subr.bf16.mxu0 %v3839_v40  ;;  %v3439_v13 = vld [vmem:[%s6480_s1 + $0x338] sm:$0xff]  ;;  %v3881_v15 = vpack.c.bf16 %v3437_v10, %v3434_v8  ;;  %v3853_v16 = vpack.c.bf16 %v3435_v12, %v3432_v11  ;;  %v3440_v17 = vld [vmem:[%s6480_s1 + $0x340] sm:$0xff]  ;;  %v3438_v19 = vld [vmem:[%s6480_s1 + $0x330] sm:$0xff] }
  0x13   :  { %3456 = vmatprep.mubr.msk.f32.mxu1 %vm310_vm1, %v194_v2  ;;  %3444 = vmatprep.mubr.msk.f32.mxu0 %vm310_vm1, %v194_v2  ;;  %v3443_v18 = vld [vmem:[%s6480_s1 + $0x358] sm:$0xff]  ;;  %v3855_v20 = vpack.c.bf16 %v3442_v14, %v3439_v13  ;;  %v3441_v21 = vld [vmem:[%s6480_s1 + $0x348] sm:$0xff]  ;;  %v4625_v22 = vld [vmem:[%s6479_s0 + $0x10] sm:$0xff] }
  0x14   :  { %v168_v23 = vld [vmem:[%s6479_s0] sm:$0xfe]  ;;  %v115_v24 = vld [vmem:[%s6480_s1 + $0x8] sm:$0xff]  ;;  %v3884_v27 = vpack.c.bf16 %v3443_v18, %v3440_v17  ;;  %v3857_v28 = vpack.c.bf16 %v3441_v21, %v3438_v19  ;;  %v190_v30 = vrot.slane %v4625_v22, 1  ;;  %v117_v33 = vld [vmem:[%s6480_s1 + $0x18] sm:$0xff] }
  0x15   :  { %3873 = vmatpush1.bf16.msra.mxu1 %v3872_v46  ;;  %3842 = vmatpush1.bf16.msra.mxu0 %v3841_v47  ;;  %v118_v25 = vld [vmem:[%s6480_s1 + $0x20] sm:$0xff]  ;;  %v4639_v26 = vld [vmem:[%s6479_s0 + $0x28] sm:$0xff]  ;;  %v189_v29 = vrot.slane %v168_v23, 1  ;;  %v4658_v36 = vld [vmem:[%s6479_s0 + $0x38] sm:$0xff] }
  0x16   :  { %3874 = vmatprep.subr.bf16.mxu1 %v6493_v3  ;;  %3844 = vmatprep.subr.bf16.mxu0 %v3843_v50  ;;  %v3886_v31 = vpack.c.bf16 %v118_v25, %v115_v24  ;;  %v114_v32 = vld [vmem:[%s6480_s1] sm:$0xff]  ;;  %v197_v34 = vrot.slane %v4639_v26, 1  ;;  %v121_v37 = vld [vmem:[%s6480_s1 + $0x38] sm:$0xff]  ;;  %v124_v38 = vld [vmem:[%s6480_s1 + $0x50] sm:$0xff]  ;;  %v201_v46 = vrot.slane %v4658_v36, 1 }
  0x17   :  { %v4653_v35 = vld [vmem:[%s6479_s0 + $0x20] sm:$0xff]  ;;  %v116_v39 = vld [vmem:[%s6480_s1 + $0x10] sm:$0xff]  ;;  %v119_v40 = vld [vmem:[%s6480_s1 + $0x28] sm:$0xff]  ;;  %v191_v41 = vsel %vm188_vm0, %v189_v29, %v190_v30  ;;  %v3888_v42 = vpack.c.bf16 %v117_v33, %v114_v32  ;;  %v3890_v47 = vpack.c.bf16 %v124_v38, %v121_v37 }
  0x18   :  { %v195_v43 = vrot.slane %v4653_v35, 1  ;;  %v4677_v44 = vld [vmem:[%s6479_s0 + $0x30] sm:$0xff]  ;;  %v198_v45 = vsel %vm188_vm0, %v193_v58, %v197_v34  ;;  %v4687_v48 = vld [vmem:[%s6479_s0 + $0x48] sm:$0xff]  ;;  %v3923_v49 = vpack.c.bf16 %v119_v40, %v116_v39  ;;  %v130_v54 = vld [vmem:[%s6480_s1 + $0x80] sm:$0xff]  ;;  %v202_v63 = vsel %vm188_vm0, %v197_v34, %v201_v46 }
  0x19   :  { %3876 = vmatpush1.bf16.msra.mxu1 %v3875_v59  ;;  %3846 = vmatpush1.bf16.msra.mxu0 %v3845_v60  ;;  %v120_v50 = vld [vmem:[%s6480_s1 + $0x30] sm:$0xff]  ;;  %v123_v51 = vld [vmem:[%s6480_s1 + $0x48] sm:$0xff]  ;;  %v199_v53 = vrot.slane %v4677_v44, 1  ;;  %v122_v56 = vld [vmem:[%s6480_s1 + $0x40] sm:$0xff]  ;;  %v205_v59 = vrot.slane %v4687_v48, 1 }
  0x1a   :  { %3877 = vmatprep.subr.bf16.mxu1 %v6493_v3  ;;  %3848 = vmatprep.subr.bf16.mxu0 %v3847_v62  ;;  %v127_v52 = vld [vmem:[%s6480_s1 + $0x68] sm:$0xff]  ;;  %v125_v57 = vld [vmem:[%s6480_s1 + $0x58] sm:$0xff]  ;;  %v196_v58 = vsel %vm188_vm0, %v190_v30, %v195_v43  ;;  %v4714_v60 = vld [vmem:[%s6479_s0 + $0x40] sm:$0xff]  ;;  %v3892_v0 = vpack.c.bf16 %v123_v51, %v120_v50 }
  0x1b   :  { %v4719_v61 = vld [vmem:[%s6480_s1 + $0x60] sm:$0xff]  ;;  %v4724_v62 = vld [vmem:[%s6480_s1 + $0x78] sm:$0xff]  ;;  %v4741_v4 = vld [vmem:[%s6480_s1 + $0xb0] sm:$0xff]  ;;  %v3894_v5 = vpack.c.bf16 %v130_v54, %v127_v52  ;;  %v200_v10 = vsel %vm188_vm0, %v195_v43, %v199_v53  ;;  %v203_v11 = vrot.slane %v4714_v60, 1 }
  0x1c   :  { %v4731_v1 = vld [vmem:[%s6479_s0 + $0x58] sm:$0x3f]  ;;  %v128_v8 = vld [vmem:[%s6480_s1 + $0x70] sm:$0xff]  ;;  %v4764_v13 = vld [vmem:[%s6480_s1 + $0xa8] sm:$0xff] }
  0x1d   :  { %3879 = vmatpush1.bf16.msra.mxu1 %v3878_v6  ;;  %3850 = vmatpush1.bf16.msra.mxu0 %v3849_v7  ;;  %v4736_v2 = vld [vmem:[%s6480_s1 + $0x98] sm:$0xff]  ;;  %v3926_v6 = vpack.c.bf16 %v125_v57, %v122_v56  ;;  %v4746_v7 = vld [vmem:[%s6479_s0 + $0x50] sm:$0x3f]  ;;  %v209_v17 = vrot.slane %v4731_v1, 1  ;;  %v4784_v19 = vld [vmem:[%s6479_s0 + $0x68] sm:$0xfe]  ;;  %v204_v39 = vsel %vm188_vm0, %v199_v53, %v203_v11 }
  0x1e   :  { %3880 = vmatprep.subr.bf16.mxu1 %v6493_v3  ;;  %3852 = vmatprep.subr.bf16.mxu0 %v3851_v9  ;;  %v131_v9 = vld [vmem:[%s6480_s1 + $0x88] sm:$0xff]  ;;  %v4759_v12 = vld [vmem:[%s6480_s1 + $0x90] sm:$0xff]  ;;  %v4769_v14 = vld [vmem:[%s6479_s0 + $0x78] sm:$0xff]  ;;  %v3898_v18 = vpack.c.bf16 %v4741_v4, %v4736_v2  ;;  %v207_v40 = vrot.slane %v4746_v7, 1  ;;  %v224_v53 = vrot.slane %v4784_v19, 4 }
  0x1f   :  { %v4794_v21 = vld [vmem:[%s6479_s0 + $0x70] sm:$0xff]  ;;  %v4799_v23 = vld [vmem:[%s6479_s0 + $0x88] sm:$0xff]  ;;  %v3929_v24 = vpack.c.bf16 %v131_v9, %v128_v8  ;;  %v4805_v25 = vld [vmem:[%s6479_s0 + $0x80] sm:$0xff]  ;;  %v937_v29 = vrot.slane %v4769_v14, 5  ;;  %v210_v52 = vsel %vm188_vm0, %v205_v59, %v209_v17  ;;  %v227_v9 = vrot.slane %v4769_v14, 4 }
  0x20   :  { %v941_v30 = vrot.slane %v4799_v23, 5  ;;  %v4825_v32 = vld [vmem:[%s6479_s0 + $0xa8] sm:$0xff]  ;;  %v935_v33 = vrot.slane %v4794_v21, 5  ;;  %v939_v34 = vrot.slane %v4805_v25, 5  ;;  %v4844_v43 = vld [vmem:[%s6479_s0 + $0xa0] sm:$0xff]  ;;  %v148_v2 = vld [vmem:[%s6480_s1 + $0x110] sm:$0xff]  ;;  %v254_v8 = vsel %vm81_vm3, %v209_v17, %v224_v53 }
  0x21   :  { %3882 = vmatpush1.bf16.msra.mxu1 %v3881_v15  ;;  %3854 = vmatpush1.bf16.msra.mxu0 %v3853_v16  ;;  %v206_v15 = vsel %vm188_vm0, %v201_v46, %v205_v59  ;;  %v3896_v16 = vpack.c.bf16 %v4724_v62, %v4719_v61  ;;  %v949_v46 = vrot.slane %v4825_v32, 5  ;;  %v947_v51 = vrot.slane %v4844_v43, 5  ;;  %v4875_v54 = vld [vmem:[%s6479_s0 + $0x60] sm:$0xfe]  ;;  %v141_v61 = vld [vmem:[%s6480_s1 + $0xd8] sm:$0xff]  ;;  %v140_v4 = vld [vmem:[%s6480_s1 + $0xd0] sm:$0xff] }
  0x22   :  { %3883 = vmatprep.subr.bf16.mxu1 %v6493_v3  ;;  %3856 = vmatprep.subr.bf16.mxu0 %v3855_v20  ;;  %v4789_v20 = vld [vmem:[%s6480_s1 + $0xc8] sm:$0xff]  ;;  %v138_v59 = vld [vmem:[%s6480_s1 + $0xc0] sm:$0xff]  ;;  %v145_v62 = vld [vmem:[%s6480_s1 + $0xf8] sm:$0xff]  ;;  %v223_v7 = vrot.slane %v4875_v54, 4 }
  0x23   :  { %v146_v17 = vld [vmem:[%s6480_s1 + $0x100] sm:$0xff] }
  0x24   :  { %v253_v19 = vsel %vm81_vm3, %v207_v40, %v223_v7 }
  0x25   :  { %3885 = vmatpush1.bf16.msra.mxu1 %v3884_v27  ;;  %3858 = vmatpush1.bf16.msra.mxu0 %v3857_v28  ;;  %v4810_v27 = vld [vmem:[%s6479_s0 + $0x98] sm:$0xff]  ;;  %v4815_v28 = vld [vmem:[%s6479_s0 + $0x90] sm:$0xff] }
  0x26   :  { %3887 = vmatprep.subr.bf16.mxu0 %v3886_v31  ;;  %3922 = vmatprep.subr.bf16.mxu1 %v6493_v3  ;;  %v142_v31 = vld [vmem:[%s6480_s1 + $0xe0] sm:$0xff]  ;;  %v945_v37 = vrot.slane %v4810_v27, 5  ;;  %v943_v38 = vrot.slane %v4815_v28, 5 }
  0x27   :  { %v3902_v56 = vpack.c.bf16 %v142_v31, %v4789_v20  ;;  %v225_v20 = vrot.slane %v4794_v21, 4 }
  0x28   :  { %538 = vmatmul.mubr.f32.vlgmr.msra.gmra.mrb[0].mxu1 %v191_v41  ;;  %401 = vmatmul.mubr.f32.vlgmr.msra.gmra.mrb[0].mxu0 %v191_v41  ;;  %v134_v41 = vld [vmem:[%s6480_s1 + $0xa0] sm:$0xff]  ;;  %v4862_v50 = vsel %vm932_vm2, %v941_v30, %v945_v37  ;;  %v4879_v57 = vsel %vm932_vm2, %v939_v34, %v943_v38 }
  0x29   :  { %3889 = vmatpush1.bf16.msra.mxu0 %v3888_v42  ;;  %3457 = vmatprep.mubr.msk.f32.mxu1 %vm310_vm1, %v198_v45  ;;  %v137_v42 = vld [vmem:[%s6480_s1 + $0xb8] sm:$0xff] }
  0x2a   :  { %3445 = vmatprep.mubr.msk.f32.mxu0 %vm310_vm1, %v198_v45  ;;  %3891 = vmatprep.subr.bf16.mxu0 %v3890_v47  ;;  %v4849_v45 = vsel %vm932_vm2, %v937_v29, %v941_v30  ;;  %v3900_v47 = vpack.c.bf16 %v4764_v13, %v4759_v12  ;;  %v3906_v12 = vpack.c.bf16 %v148_v2, %v145_v62  ;;  %v147_v13 = vld [vmem:[%s6480_s1 + $0x108] sm:$0xff]  ;;  %v231_v30 = vrot.slane %v4799_v23, 4  ;;  %v156_v62 = vld [vmem:[%s6480_s1 + $0x150] sm:$0xff] }
  0x2b   :  { %3924 = vmatpush1.bf16.msra.mxu1 %v3923_v49  ;;  %v4859_v49 = vsel %vm932_vm2, %v935_v33, %v939_v34  ;;  %v159_v2 = vld [vmem:[%s6480_s1 + $0x168] sm:$0xff] }
  0x2c   :  { %543 = vmatmul.mubr.f32.gmra.mrb[2].mxu1 %v196_v58  ;;  %407 = vmatmul.mubr.f32.gmra.mrb[2].mxu0 %v196_v58  ;;  %v3932_v58 = vpack.c.bf16 %v137_v42, %v134_v41  ;;  %v155_v41 = vld [vmem:[%s6480_s1 + $0x148] sm:$0xff]  ;;  %v157_v42 = vld [vmem:[%s6480_s1 + $0x158] sm:$0xff]  ;;  %v232_v54 = vsel %vm222_vm4, %v227_v9, %v231_v30 }
  0x2d   :  { %3458 = vmatprep.mubr.msk.f32.mxu1 %vm310_vm1, %v202_v63  ;;  %3446 = vmatprep.mubr.msk.f32.mxu0 %vm310_vm1, %v202_v63  ;;  %v4893_v63 = vsel %vm932_vm2, %v945_v37, %v949_v46 }
  0x2e   :  { %3893 = vmatpush1.bf16.msra.mxu0 %v3892_v0  ;;  %3925 = vmatprep.subr.bf16.mxu1 %v6493_v3  ;;  %v4898_v0 = vsel %vm932_vm2, %v943_v38, %v947_v51  ;;  %v150_v38 = vld [vmem:[%s6480_s1 + $0x120] sm:$0xff] }
  0x2f   :  { %3895 = vmatprep.subr.bf16.mxu0 %v3894_v5  ;;  %3927 = vmatpush1.bf16.msra.mxu1 %v3926_v6  ;;  %v143_v5 = vld [vmem:[%s6480_s1 + $0xe8] sm:$0xff]  ;;  %v208_v6 = vsel %vm188_vm0, %v203_v11, %v207_v40  ;;  %v144_v11 = vld [vmem:[%s6480_s1 + $0xf0] sm:$0xff] }
  0x30   :  { %548 = vmatmul.mubr.f32.gmra.mrb[4].mxu1 %v200_v10  ;;  %413 = vmatmul.mubr.f32.gmra.mrb[4].mxu0 %v200_v10  ;;  %v3904_v10 = vpack.c.bf16 %v141_v61, %v138_v59  ;;  %v3935_v1 = vpack.c.bf16 %v143_v5, %v140_v4  ;;  %v3908_v31 = vpack.c.bf16 %v147_v13, %v144_v11  ;;  %v152_v40 = vld [vmem:[%s6480_s1 + $0x130] sm:$0xff]  ;;  %v158_v4 = vld [vmem:[%s6480_s1 + $0x160] sm:$0xff]  ;;  %v161_v5 = vld [vmem:[%s6480_s1 + $0x178] sm:$0xff] }
  0x31   :  { %3459 = vmatprep.mubr.msk.f32.mxu1 %vm310_vm1, %v206_v15  ;;  %3447 = vmatprep.mubr.msk.f32.mxu0 %vm310_vm1, %v206_v15  ;;  %v151_v15 = vld [vmem:[%s6480_s1 + $0x128] sm:$0xff]  ;;  %v3941_v59 = vpack.c.bf16 %v155_v41, %v152_v40  ;;  %v175_v11 = vld [vmem:[%s6479_s0 + $0xb8] sm:$0x3f]  ;;  %v3916_v13 = vpack.c.bf16 %v159_v2, %v156_v62  ;;  %v3492_v62 = vld [vmem:[%s6480_s1 + $0x360] sm:$0xff] }
  0x32   :  { %3897 = vmatpush1.bf16.msra.mxu0 %v3896_v16  ;;  %3928 = vmatprep.subr.bf16.mxu1 %v6493_v3  ;;  %v154_v16 = vld [vmem:[%s6480_s1 + $0x140] sm:$0xff]  ;;  %v3495_v2 = vld [vmem:[%s6480_s1 + $0x378] sm:$0xff] }
  0x33   :  { %3899 = vmatprep.subr.bf16.mxu0 %v3898_v18  ;;  %3930 = vmatpush1.bf16.msra.mxu1 %v3929_v24  ;;  %v149_v18 = vld [vmem:[%s6480_s1 + $0x118] sm:$0xff]  ;;  %v228_v24 = vsel %vm222_vm4, %v224_v53, %v227_v9  ;;  %v3910_v34 = vpack.c.bf16 %v154_v16, %v151_v15  ;;  %v229_v53 = vrot.slane %v4805_v25, 4  ;;  %v233_v9 = vrot.slane %v4815_v28, 4  ;;  %v162_v16 = vld [vmem:[%s6480_s1 + $0x180] sm:$0xff] }
  0x34   :  { %553 = vmatmul.mubr.f32.gmra.mrb[6].mxu1 %v204_v39  ;;  %419 = vmatmul.mubr.f32.gmra.mrb[6].mxu0 %v204_v39  ;;  %v3938_v37 = vpack.c.bf16 %v149_v18, %v146_v17  ;;  %v153_v39 = vld [vmem:[%s6480_s1 + $0x138] sm:$0xff]  ;;  %v164_v18 = vld [vmem:[%s6480_s1 + $0x190] sm:$0xff] }
  0x35   :  { %3460 = vmatprep.mubr.msk.f32.mxu1 %vm310_vm1, %v210_v52  ;;  %3448 = vmatprep.mubr.msk.f32.mxu0 %vm310_vm1, %v210_v52  ;;  %v226_v52 = vsel %vm222_vm4, %v223_v7, %v225_v20  ;;  %v166_v7 = vld [vmem:[%s6480_s1 + $0x1a0] sm:$0xff]  ;;  %v165_v17 = vld [vmem:[%s6480_s1 + $0x198] sm:$0xff] }
  0x36   :  { %3901 = vmatpush1.bf16.msra.mxu0 %v3900_v47  ;;  %3931 = vmatprep.subr.bf16.mxu1 %v6493_v3  ;;  %v160_v47 = vld [vmem:[%s6480_s1 + $0x170] sm:$0xff] }
  0x37   :  { %3903 = vmatprep.subr.bf16.mxu0 %v3902_v56  ;;  %3933 = vmatpush1.bf16.msra.mxu1 %v3932_v58  ;;  %v235_v56 = vrot.slane %v4810_v27, 4  ;;  %v3912_v58 = vpack.c.bf16 %v153_v39, %v150_v38  ;;  %v3914_v61 = vpack.c.bf16 %v160_v47, %v157_v42  ;;  %v174_v38 = vld [vmem:[%s6479_s0 + $0xb0] sm:$0x3f]  ;;  %v3920_v39 = vpack.c.bf16 %v165_v17, %v162_v16 }
  0x38   :  { %558 = vmatmul.mubr.f32.gmra.mrb[8].mxu1 %v208_v6  ;;  %425 = vmatmul.mubr.f32.gmra.mrb[8].mxu0 %v208_v6  ;;  %v163_v6 = vld [vmem:[%s6480_s1 + $0x188] sm:$0xff]  ;;  %v241_v47 = vrot.slane %v174_v38, 4  ;;  %v3498_v17 = vld [vmem:[%s6480_s1 + $0x390] sm:$0xff] }
  0x39   :  { %3461 = vmatprep.mubr.msk.f32.mxu1 %vm310_vm1, %v254_v8  ;;  %3449 = vmatprep.mubr.msk.f32.mxu0 %vm310_vm1, %v254_v8  ;;  %v230_v8 = vsel %vm222_vm4, %v225_v20, %v229_v53  ;;  %v3918_v15 = vpack.c.bf16 %v166_v7, %v163_v6  ;;  %v3493_v20 = vld [vmem:[%s6480_s1 + $0x368] sm:$0xff]  ;;  %v3502_v6 = vld [vmem:[%s6480_s1 + $0x3b0] sm:$0xff] }
  0x3a   :  { %3905 = vmatpush1.bf16.msra.mxu0 %v3904_v10  ;;  %3934 = vmatprep.subr.bf16.mxu1 %v6493_v3  ;;  %v236_v10 = vsel %vm222_vm4, %v231_v30, %v235_v56  ;;  %v234_v30 = vsel %vm222_vm4, %v229_v53, %v233_v9 }
  0x3b   :  { %3907 = vmatprep.subr.bf16.mxu0 %v3906_v12  ;;  %3936 = vmatpush1.bf16.msra.mxu1 %v3935_v1  ;;  %v239_v12 = vrot.slane %v4825_v32, 4  ;;  %v3944_v1 = vpack.c.bf16 %v161_v5, %v158_v4  ;;  %v3499_v5 = vld [vmem:[%s6480_s1 + $0x398] sm:$0xff] }
  0x3c   :  { %563 = vmatmul.mubr.f32.gmra.mrb[10].mxu1 %v253_v19  ;;  %431 = vmatmul.mubr.f32.gmra.mrb[10].mxu0 %v253_v19  ;;  %v167_v19 = vld [vmem:[%s6480_s1 + $0x1a8] sm:$0xff] }
  0x3d   :  { %3462 = vmatprep.mubr.msk.f32.mxu1 %vm310_vm1, %v228_v24  ;;  %3450 = vmatprep.mubr.msk.f32.mxu0 %vm310_vm1, %v228_v24  ;;  %v3496_v24 = vld [vmem:[%s6480_s1 + $0x380] sm:$0xff]  ;;  %v3947_v40 = vpack.c.bf16 %v167_v19, %v164_v18  ;;  %v3501_v18 = vld [vmem:[%s6480_s1 + $0x3a8] sm:$0xff] }
  0x3e   :  { %3909 = vmatpush1.bf16.msra.mxu0 %v3908_v31  ;;  %3937 = vmatprep.subr.bf16.mxu1 %v6493_v3  ;;  %v237_v31 = vrot.slane %v4844_v43, 4  ;;  %v3949_v41 = vpack.c.bf16 %v3496_v24, %v3493_v20  ;;  %v3505_v19 = vld [vmem:[%s6480_s1 + $0x3c8] sm:$0xff]  ;;  %v3508_v24 = vld [vmem:[%s6480_s1 + $0x3e0] sm:$0xff] }
  0x3f   :  { %3911 = vmatprep.subr.bf16.mxu0 %v3910_v34  ;;  %3939 = vmatpush1.bf16.msra.mxu1 %v3938_v37  ;;  %v240_v34 = vsel %vm222_vm4, %v235_v56, %v239_v12  ;;  %v243_v37 = vrot.slane %v175_v11, 4  ;;  %v1397_v56 = vrot.slane %v4799_v23, 6  ;;  %v3951_v11 = vpack.c.bf16 %v3495_v2, %v3492_v62 }
  0x40   :  { %568 = vmatmul.mubr.f32.gmra.mrb[12].mxu1 %v226_v52  ;;  %437 = vmatmul.mubr.f32.gmra.mrb[12].mxu0 %v226_v52  ;;  %v238_v42 = vsel %vm222_vm4, %v233_v9, %v237_v31  ;;  %v242_v53 = vsel %vm222_vm4, %v237_v31, %v241_v47  ;;  %v3497_v9 = vld [vmem:[%s6480_s1 + $0x388] sm:$0xff]  ;;  %v3503_v31 = vld [vmem:[%s6480_s1 + $0x3b8] sm:$0xff] }
  0x41   :  { %3463 = vmatprep.mubr.msk.f32.mxu1 %vm310_vm1, %v232_v54  ;;  %3451 = vmatprep.mubr.msk.f32.mxu0 %vm310_vm1, %v232_v54  ;;  %v244_v52 = vsel %vm222_vm4, %v239_v12, %v243_v37  ;;  %v1393_v54 = vrot.slane %v4769_v14, 6  ;;  %v45_v12 = vld [vmem:[%s6479_s0] sm:$0xff] }
  0x42   :  { %3913 = vmatpush1.bf16.msra.mxu0 %v3912_v58  ;;  %3940 = vmatprep.subr.bf16.mxu1 %v6493_v3  ;;  %v1391_v58 = vrot.slane %v4794_v21, 6 }
  0x43   :  { %3942 = vmatpush1.bf16.msra.mxu1 %v3941_v59  ;;  %3915 = vmatprep.subr.bf16.mxu0 %v3914_v61  ;;  %v1395_v59 = vrot.slane %v4805_v25, 6  ;;  %v46_v61 = vld [vmem:[%s6479_s0 + $0x8] sm:$0xff]  ;;  %v5052_v4 = vsel %vm1388_vm5, %v1393_v54, %v1397_v56 }
  0x44   :  { %573 = vmatmul.mubr.f32.gmra.mrb[14].mxu1 %v230_v8  ;;  %443 = vmatmul.mubr.f32.gmra.mrb[14].mxu0 %v230_v8  ;;  %v3494_v8 = vld [vmem:[%s6480_s1 + $0x370] sm:$0xff] }
  0x45   :  { %3464 = vmatprep.mubr.msk.f32.mxu1 %vm310_vm1, %v236_v10  ;;  %3452 = vmatprep.mubr.msk.f32.mxu0 %vm310_vm1, %v236_v10  ;;  %v5063_v7 = vsel %vm1388_vm5, %v1391_v58, %v1395_v59  ;;  %v1401_v10 = vrot.slane %v4810_v27, 6  ;;  %v3986_v16 = vpack.c.bf16 %v3497_v9, %v3494_v8 }
  0x46   :  { %3917 = vmatpush1.bf16.msra.mxu0 %v3916_v13  ;;  %3943 = vmatprep.subr.bf16.mxu1 %v6493_v3  ;;  %v1399_v13 = vrot.slane %v4815_v28, 6 }
  0x47   :  { %3945 = vmatpush1.bf16.msra.mxu1 %v3944_v1  ;;  %3919 = vmatprep.subr.bf16.mxu0 %v3918_v15  ;;  %v3953_v1 = vpack.c.bf16 %v3502_v6, %v3499_v5  ;;  %v5079_v15 = vsel %vm1388_vm5, %v1397_v56, %v1401_v10 }
  0x48   :  { %578 = vmatmul.mubr.f32.gmra.mrb[16].mxu1 %v234_v30  ;;  %449 = vmatmul.mubr.f32.gmra.mrb[16].mxu0 %v234_v30  ;;  %v5091_v20 = vsel %vm1388_vm5, %v1395_v59, %v1399_v13  ;;  %v3500_v30 = vld [vmem:[%s6480_s1 + $0x3a0] sm:$0xff] }
  0x49   :  { %3465 = vmatprep.mubr.msk.f32.mxu1 %vm310_vm1, %v240_v34  ;;  %3453 = vmatprep.mubr.msk.f32.mxu0 %vm310_vm1, %v240_v34  ;;  %v1405_v34 = vrot.slane %v4825_v32, 6 }
  0x4a   :  { %3946 = vmatprep.subr.bf16.mxu1 %v6493_v3  ;;  %3921 = vmatpush1.bf16.msra.mxu0 %v3920_v39 }
  0x4b   :  { %3948 = vmatpush1.bf16.msra.mxu1 %v3947_v40  ;;  %3950 = vmatprep.subr.bf16.mxu0 %v3949_v41 }
  0x4c   :  { %583 = vmatmul.mubr.f32.gmra.mrb[18].mxu1 %v238_v42  ;;  %455 = vmatmul.mubr.f32.gmra.mrb[18].mxu0 %v238_v42 }
  0x4d   :  { %3466 = vmatprep.mubr.msk.f32.mxu1 %vm310_vm1, %v244_v52  ;;  %3454 = vmatprep.mubr.msk.f32.mxu0 %vm310_vm1, %v244_v52 }
  0x4e   :  { %3985 = vmatprep.subr.bf16.mxu1 %v6493_v3 }
  0x50   :  { %588 = vmatmul.mubr.f32.gmra.mrb[20].mxu1 %v242_v53  ;;  %461 = vmatmul.mubr.f32.gmra.mrb[20].mxu0 %v242_v53 }
  0x51   :  { %3467 = vmatprep.mubr.msk.f32.mxu1 %vm310_vm1, %v243_v37  ;;  %3455 = vmatprep.mubr.msk.f32.mxu0 %vm310_vm1, %v243_v37  ;;  %v1403_v37 = vrot.slane %v4844_v43, 6 }
  0x54   :  { %593 = vmatmul.mubr.f32.gmra.mrb[22].mxu1 %v241_v47  ;;  %467 = vmatmul.mubr.f32.gmra.mrb[22].mxu0 %v241_v47 }
  0x55   :  { %3480 = vmatprep.mubr.msk.f32.mxu1 %vm310_vm1, %v46_v61  ;;  %3468 = vmatprep.mubr.msk.f32.mxu0 %vm310_vm1, %v46_v61 }
  0x58   :  { %826 = vmatmul.mubr.f32.vlgmr.msra.gmra.mrb[0].mxu1 %v45_v12  ;;  %689 = vmatmul.mubr.f32.vlgmr.msra.gmra.mrb[0].mxu0 %v45_v12 }
  0x59   :  { %3952 = vmatpush1.bf16.msra.mxu0 %v3951_v11  ;;  %3481 = vmatprep.mubr.msk.f32.mxu1 %vm310_vm1, %v4560_v55 }
  0x5a   :  { %18 = vsyncpa [#allocation3], 0  ;;  %3469 = vmatprep.mubr.msk.f32.mxu0 %vm310_vm1, %v4560_v55  ;;  %3954 = vmatprep.subr.bf16.mxu0 %v3953_v1  ;;  %v3955_v38 = vpack.c.bf16 %v3501_v18, %v3498_v17  ;;  %v3957_v39 = vpack.c.bf16 %v3508_v24, %v3505_v19  ;;  %v3504_v40 = vld [vmem:[%s6480_s1 + $0x3c0] sm:$0xff]  ;;  %v3507_v41 = vld [vmem:[%s6480_s1 + $0x3d8] sm:$0xff]  ;;  %v3989_v42 = vpack.c.bf16 %v3503_v31, %v3500_v30  ;;  %vm898_vm6 = vcmask 1045504   ;;  %s4359_s25 = smov 104  }
  0x5b   :  { %3987 = vmatpush1.bf16.msra.mxu1 %v3986_v16  ;;  %v3511_v47 = vld [vmem:[%s6480_s1 + $0x3f8] sm:$0xff]  ;;  %v5120_v55 = vsel %vm1388_vm5, %v1401_v10, %v1405_v34  ;;  %v5125_v52 = vsel %vm1388_vm5, %v1399_v13, %v1403_v37  ;;  %v3514_v53 = vld [vmem:[%s6480_s1 + $0x410] sm:$0xff]  ;;  %v3509_v59 = vld [vmem:[%s6480_s1 + $0x3e8] sm:$0xff]  ;;  %v3959_v61 = vpack.c.bf16 %v3507_v41, %v3504_v40  ;;  %vm4355_vm7 = vmmov 0   ;;  %s4360_s26 = smov 96   ;;  %s4361_s27 = smov 88  }
  0x5c   :  { %831 = vmatmul.mubr.f32.gmra.mrb[2].mxu1 %v4625_v22  ;;  %695 = vmatmul.mubr.f32.gmra.mrb[2].mxu0 %v4625_v22  ;;  %v3506_v56 = vld [vmem:[%s6480_s1 + $0x3d0] sm:$0xff]  ;;  %v3961_v2 = vpack.c.bf16 %v3514_v53, %v3511_v47  ;;  %v3513_v5 = vld [vmem:[%s6480_s1 + $0x408] sm:$0xff]  ;;  %v3520_v10 = vld [vmem:[%s6480_s1 + $0x440] sm:$0xff]  ;;  %v86_v53 = vrot.slane %v4769_v14, 3  ;;  %vm1835_vm8 = vcmask 850944   ;;  %vm1857_vm9 = vcmask 844800  }
  0x5d   :  { %3482 = vmatprep.mubr.msk.f32.mxu1 %vm310_vm1, %v4639_v26  ;;  %3470 = vmatprep.mubr.msk.f32.mxu0 %vm310_vm1, %v4639_v26  ;;  %v3510_v62 = vld [vmem:[%s6480_s1 + $0x3f0] sm:$0xff]  ;;  %v3992_v6 = vpack.c.bf16 %v3509_v59, %v3506_v56  ;;  %v58_v8 = vld [vmem:[%s6479_s0 + $0x68] sm:$0xff]  ;;  %v3512_v12 = vld [vmem:[%s6480_s1 + $0x400] sm:$0xff]  ;;  %vm1967_vm10 = vcmask 1040384   ;;  %vm2199_vm11 = vcmask 64512   ;;  %vm2562_vm12 = vcmask 1047557  }
  0x5e   :  { %3956 = vmatpush1.bf16.msra.mxu0 %v3955_v38  ;;  %3988 = vmatprep.subr.bf16.mxu1 %v6493_v3  ;;  %v3517_v9 = vld [vmem:[%s6480_s1 + $0x428] sm:$0xff]  ;;  %v3515_v11 = vld [vmem:[%s6480_s1 + $0x418] sm:$0xff]  ;;  %v3963_v13 = vpack.c.bf16 %v3513_v5, %v3510_v62  ;;  %v83_v16 = vrot.slane %v58_v8, 3  ;;  %v57_v17 = vld [vmem:[%s6479_s0 + $0x60] sm:$0xff]  ;;  %vm2581_vm13 = vcmask 850949   ;;  %vm2583_vm14 = vcmask 847872  }
  0x5f   :  { %3958 = vmatprep.subr.bf16.mxu0 %v3957_v39  ;;  %3990 = vmatpush1.bf16.msra.mxu1 %v3989_v42  ;;  %v56_v1 = vld [vmem:[%s6479_s0 + $0x58] sm:$0x1f]  ;;  %v3965_v18 = vpack.c.bf16 %v3520_v10, %v3517_v9  ;;  %v3995_v19 = vpack.c.bf16 %v3515_v11, %v3512_v12  ;;  %v3516_v24 = vld [vmem:[%s6480_s1 + $0x420] sm:$0xff]  ;;  %v3526_v38 = vld [vmem:[%s6480_s1 + $0x470] sm:$0xff]  ;;  %v82_v41 = vrot.slane %v57_v17, 3  ;;  %v84_v12 = vrot.slane %v4794_v21, 3 }
  0x60   :  { %836 = vmatmul.mubr.f32.gmra.mrb[4].mxu1 %v4653_v35  ;;  %701 = vmatmul.mubr.f32.gmra.mrb[4].mxu0 %v4653_v35  ;;  %v3519_v30 = vld [vmem:[%s6480_s1 + $0x438] sm:$0xff]  ;;  %v3518_v39 = vld [vmem:[%s6480_s1 + $0x430] sm:$0xff]  ;;  %v3521_v40 = vld [vmem:[%s6480_s1 + $0x448] sm:$0xff]  ;;  %v113_v42 = vsel %vm81_vm3, %v56_v1, %v83_v16  ;;  %v87_v11 = vsel %vm81_vm3, %v83_v16, %v86_v53  ;;  %s4362_s28 = smov 80   ;;  %s4364_s29 = smov 16   ;;  %vm2932_vm15 = vcmask 195584  }
  0x61   :  { %3483 = vmatprep.mubr.msk.f32.mxu1 %vm310_vm1, %v4658_v36  ;;  %3471 = vmatprep.mubr.msk.f32.mxu0 %vm310_vm1, %v4658_v36  ;;  %v3523_v31 = vld [vmem:[%s6480_s1 + $0x458] sm:$0xff]  ;;  %v55_v47 = vld [vmem:[%s6479_s0 + $0x50] sm:$0x1f]  ;;  %v3967_v56 = vpack.c.bf16 %v3519_v30, %v3516_v24  ;;  %v3525_v62 = vld [vmem:[%s6480_s1 + $0x468] sm:$0xff]  ;;  %s4365_s20 = smov 32  }
  0x62   :  { %3960 = vmatpush1.bf16.msra.mxu0 %v3959_v61  ;;  %3991 = vmatprep.subr.bf16.mxu1 %v6493_v3  ;;  %v3969_v59 = vpack.c.bf16 %v3526_v38, %v3523_v31  ;;  %v3522_v61 = vld [vmem:[%s6480_s1 + $0x450] sm:$0xff]  ;;  %v3529_v5 = vld [vmem:[%s6480_s1 + $0x488] sm:$0xff]  ;;  %v3524_v8 = vld [vmem:[%s6480_s1 + $0x460] sm:$0xff]  ;;  %v112_v10 = vsel %vm81_vm3, %v55_v47, %v82_v41  ;;  %v85_v38 = vsel %vm81_vm3, %v82_v41, %v84_v12 }
  0x63   :  { %3962 = vmatprep.subr.bf16.mxu0 %v3961_v2  ;;  %3993 = vmatpush1.bf16.msra.mxu1 %v3992_v6  ;;  %v3998_v2 = vpack.c.bf16 %v3521_v40, %v3518_v39  ;;  %v3532_v6 = vld [vmem:[%s6480_s1 + $0x4a0] sm:$0xff]  ;;  %v3527_v9 = vld [vmem:[%s6480_s1 + $0x478] sm:$0xff]  ;;  %v3971_v1 = vpack.c.bf16 %v3525_v62, %v3522_v61  ;;  %v3530_v16 = vld [vmem:[%s6480_s1 + $0x490] sm:$0xff]  ;;  %v88_v39 = vrot.slane %v4805_v25, 3 }
  0x64   :  { %841 = vmatmul.mubr.f32.gmra.mrb[6].mxu1 %v4677_v44  ;;  %707 = vmatmul.mubr.f32.gmra.mrb[6].mxu0 %v4677_v44  ;;  %v3973_v17 = vpack.c.bf16 %v3532_v6, %v3529_v5  ;;  %v3531_v24 = vld [vmem:[%s6480_s1 + $0x498] sm:$0xff]  ;;  %v3538_v31 = vld [vmem:[%s6480_s1 + $0x4d0] sm:$0xff]  ;;  %v3537_v25 = vld [vmem:[%s6480_s1 + $0x4c8] sm:$0xff]  ;;  %v92_v5 = vrot.slane %v4815_v28, 3 }
  0x65   :  { %3484 = vmatprep.mubr.msk.f32.mxu1 %vm310_vm1, %v4687_v48  ;;  %3472 = vmatprep.mubr.msk.f32.mxu0 %vm310_vm1, %v4687_v48  ;;  %v3535_v30 = vld [vmem:[%s6480_s1 + $0x4b8] sm:$0xff]  ;;  %v3534_v61 = vld [vmem:[%s6480_s1 + $0x4b0] sm:$0xff]  ;;  %v3536_v41 = vld [vmem:[%s6480_s1 + $0x4c0] sm:$0xff] }
  0x66   :  { %3964 = vmatpush1.bf16.msra.mxu0 %v3963_v13  ;;  %3994 = vmatprep.subr.bf16.mxu1 %v6493_v3  ;;  %v90_v13 = vrot.slane %v4799_v23, 3  ;;  %v3533_v23 = vld [vmem:[%s6480_s1 + $0x4a8] sm:$0xff]  ;;  %v3544_v62 = vld [vmem:[%s6480_s1 + $0x500] sm:$0xff]  ;;  %v1350_v14 = vld [vmem:[%s6479_s0 + $0xb8] sm:$0xff] }
  0x67   :  { %3966 = vmatprep.subr.bf16.mxu0 %v3965_v18  ;;  %3996 = vmatpush1.bf16.msra.mxu1 %v3995_v19  ;;  %v4001_v18 = vpack.c.bf16 %v3527_v9, %v3524_v8  ;;  %v3528_v19 = vld [vmem:[%s6480_s1 + $0x480] sm:$0xff]  ;;  %v98_v8 = vrot.slane %v4825_v32, 3  ;;  %v68_v9 = vld [vmem:[%s6479_s0 + $0xb8] sm:$0x1f]  ;;  %v1409_v21 = vrot.slane %v1350_v14, 6 }
  0x68   :  { %846 = vmatmul.mubr.f32.gmra.mrb[8].mxu1 %v4714_v60  ;;  %713 = vmatmul.mubr.f32.gmra.mrb[8].mxu0 %v4714_v60  ;;  %v91_v40 = vsel %vm81_vm3, %v86_v53, %v90_v13  ;;  %v3975_v47 = vpack.c.bf16 %v3531_v24, %v3528_v19  ;;  %v3541_v53 = vld [vmem:[%s6480_s1 + $0x4e8] sm:$0xff]  ;;  %v3540_v28 = vld [vmem:[%s6480_s1 + $0x4e0] sm:$0xff]  ;;  %v3574_v19 = vld [vmem:[%s6480_s1 + $0x530] sm:$0xff]  ;;  %v93_v24 = vsel %vm81_vm3, %v88_v39, %v92_v5 }
  0x69   :  { %3485 = vmatprep.mubr.msk.f32.mxu1 %vm310_vm1, %v113_v42  ;;  %3473 = vmatprep.mubr.msk.f32.mxu0 %vm310_vm1, %v113_v42  ;;  %v94_v42 = vrot.slane %v4810_v27, 3  ;;  %v3539_v27 = vld [vmem:[%s6480_s1 + $0x4d8] sm:$0xff]  ;;  %v1987_v32 = vld [vmem:[%s6481_s2 + $0x80] sm:$0xff] }
  0x6a   :  { %3968 = vmatpush1.bf16.msra.mxu0 %v3967_v56  ;;  %3997 = vmatprep.subr.bf16.mxu1 %v6493_v3  ;;  %v4004_v56 = vpack.c.bf16 %v3533_v23, %v3530_v16  ;;  %v96_v16 = vrot.slane %v4844_v43, 3  ;;  %v1971_v43 = vld [vmem:[%s6481_s2] sm:$0xff]  ;;  %v2014_v14 = vld [vmem:[%s6481_s2 + $0x158] sm:$0xff] }
  0x6b   :  { %3970 = vmatprep.subr.bf16.mxu0 %v3969_v59  ;;  %3999 = vmatpush1.bf16.msra.mxu1 %v3998_v2  ;;  %v3977_v59 = vpack.c.bf16 %v3538_v31, %v3535_v30  ;;  %v89_v2 = vsel %vm81_vm3, %v84_v12, %v88_v39  ;;  %v95_v6 = vsel %vm81_vm3, %v90_v13, %v94_v42  ;;  %v3543_v12 = vld [vmem:[%s6480_s1 + $0x4f8] sm:$0xff]  ;;  %v3542_v13 = vld [vmem:[%s6480_s1 + $0x4f0] sm:$0xff]  ;;  %v102_v30 = vrot.slane %v68_v9, 3 }
  0x6c   :  { %851 = vmatmul.mubr.f32.gmra.mrb[10].mxu1 %v112_v10  ;;  %719 = vmatmul.mubr.f32.gmra.mrb[10].mxu0 %v112_v10  ;;  %v3979_v10 = vpack.c.bf16 %v3537_v25, %v3534_v61  ;;  %v99_v23 = vsel %vm81_vm3, %v94_v42, %v98_v8  ;;  %v67_v31 = vld [vmem:[%s6479_s0 + $0xb0] sm:$0x1f]  ;;  %v97_v39 = vsel %vm81_vm3, %v92_v5, %v96_v16  ;;  %v907_v9 = vrot.slane %v4639_v26, 2 }
  0x6d   :  { %3486 = vmatprep.mubr.msk.f32.mxu1 %vm310_vm1, %v87_v11  ;;  %3474 = vmatprep.mubr.msk.f32.mxu0 %vm310_vm1, %v87_v11  ;;  %v4007_v11 = vpack.c.bf16 %v3539_v27, %v3536_v41  ;;  %v100_v42 = vrot.slane %v67_v31, 3  ;;  %v5328_v41 = vld [vmem:[%s6479_s0 + $0x18] sm:$0xff] }
  0x6e   :  { %3972 = vmatpush1.bf16.msra.mxu0 %v3971_v1  ;;  %4000 = vmatprep.subr.bf16.mxu1 %v6493_v3  ;;  %v3981_v1 = vpack.c.bf16 %v3544_v62, %v3541_v53  ;;  %v903_v27 = vrot.slane %v5328_v41, 2  ;;  %v886_v53 = vld [vmem:[%s6479_s0] sm:$0xfc] }
  0x6f   :  { %3974 = vmatprep.subr.bf16.mxu0 %v3973_v17  ;;  %4002 = vmatpush1.bf16.msra.mxu1 %v4001_v18  ;;  %v3545_v17 = vld [vmem:[%s6480_s1 + $0x508] sm:$0xff]  ;;  %v3571_v18 = vld [vmem:[%s6480_s1 + $0x518] sm:$0xff]  ;;  %v101_v61 = vsel %vm81_vm3, %v96_v16, %v100_v42  ;;  %v899_v62 = vrot.slane %v886_v53, 2 }
  0x70   :  { %856 = vmatmul.mubr.f32.gmra.mrb[12].mxu1 %v85_v38  ;;  %725 = vmatmul.mubr.f32.gmra.mrb[12].mxu0 %v85_v38  ;;  %v3983_v38 = vpack.c.bf16 %v3543_v12, %v3540_v28  ;;  %v905_v12 = vrot.slane %v4653_v35, 2  ;;  %v3579_v16 = vld [vmem:[%s6480_s1 + $0x558] sm:$0xff]  ;;  %v3586_v35 = vld [vmem:[%s6480_s1 + $0x590] sm:$0xff] }
  0x71   :  { %3487 = vmatprep.mubr.msk.f32.mxu1 %vm310_vm1, %v91_v40  ;;  %3475 = vmatprep.mubr.msk.f32.mxu0 %vm310_vm1, %v91_v40  ;;  %v4010_v40 = vpack.c.bf16 %v3545_v17, %v3542_v13  ;;  %v908_v13 = vsel %vm898_vm6, %v903_v27, %v907_v9  ;;  %v911_v17 = vrot.slane %v4658_v36, 2  ;;  %v3578_v36 = vld [vmem:[%s6480_s1 + $0x550] sm:$0xff]  ;;  %v3587_v53 = vld [vmem:[%s6480_s1 + $0x598] sm:$0xff] }
  0x72   :  { %3976 = vmatpush1.bf16.msra.mxu0 %v3975_v47  ;;  %4003 = vmatprep.subr.bf16.mxu1 %v6493_v3  ;;  %v4012_v47 = vpack.c.bf16 %v3574_v19, %v3571_v18 }
  0x73   :  { %4005 = vmatpush1.bf16.msra.mxu1 %v4004_v56  ;;  %3978 = vmatprep.subr.bf16.mxu0 %v3977_v59  ;;  %v103_v56 = vsel %vm81_vm3, %v98_v8, %v102_v30  ;;  %v887_v59 = vld [vmem:[%s6479_s0 + $0x8] sm:$0xfc] }
  0x74   :  { %861 = vmatmul.mubr.f32.gmra.mrb[14].mxu1 %v89_v2  ;;  %731 = vmatmul.mubr.f32.gmra.mrb[14].mxu0 %v89_v2  ;;  %v902_v25 = vrot.slane %v887_v59, 2  ;;  %v900_v2 = vrot.slane %v4625_v22, 2  ;;  %v3573_v8 = vld [vmem:[%s6480_s1 + $0x528] sm:$0xff]  ;;  %v3580_v22 = vld [vmem:[%s6480_s1 + $0x560] sm:$0xff] }
  0x75   :  { %3488 = vmatprep.mubr.msk.f32.mxu1 %vm310_vm1, %v95_v6  ;;  %3476 = vmatprep.mubr.msk.f32.mxu0 %vm310_vm1, %v95_v6  ;;  %v3570_v6 = vld [vmem:[%s6480_s1 + $0x510] sm:$0xff]  ;;  %v3585_v59 = vld [vmem:[%s6480_s1 + $0x588] sm:$0xff] }
  0x76   :  { %3980 = vmatpush1.bf16.msra.mxu0 %v3979_v10  ;;  %4006 = vmatprep.subr.bf16.mxu1 %v6493_v3  ;;  %v904_v5 = vsel %vm898_vm6, %v902_v25, %v903_v27  ;;  %v3577_v10 = vld [vmem:[%s6480_s1 + $0x548] sm:$0xff]  ;;  %v901_v26 = vsel %vm898_vm6, %v899_v62, %v900_v2  ;;  %v4014_v28 = vpack.c.bf16 %v3573_v8, %v3570_v6  ;;  %v3584_v27 = vld [vmem:[%s6480_s1 + $0x580] sm:$0xff] }
  0x77   :  { %4008 = vmatpush1.bf16.msra.mxu1 %v4007_v11  ;;  %3982 = vmatprep.subr.bf16.mxu0 %v3981_v1  ;;  %v3572_v11 = vld [vmem:[%s6480_s1 + $0x520] sm:$0xff]  ;;  %v3575_v1 = vld [vmem:[%s6480_s1 + $0x538] sm:$0xff]  ;;  %v4016_v18 = vpack.c.bf16 %v3580_v22, %v3577_v10  ;;  %v906_v31 = vsel %vm898_vm6, %v900_v2, %v905_v12  ;;  %v3589_v25 = vld [vmem:[%s6480_s1 + $0x5a8] sm:$0xff]  ;;  %v913_v2 = vrot.slane %v4714_v60, 2 }
  0x78   :  { %866 = vmatmul.mubr.f32.gmra.mrb[16].mxu1 %v93_v24  ;;  %737 = vmatmul.mubr.f32.gmra.mrb[16].mxu0 %v93_v24  ;;  %v4049_v19 = vpack.c.bf16 %v3575_v1, %v3572_v11  ;;  %v3576_v24 = vld [vmem:[%s6480_s1 + $0x540] sm:$0xff]  ;;  %v3591_v60 = vld [vmem:[%s6480_s1 + $0x5b8] sm:$0xff]  ;;  %v4055_v11 = vpack.c.bf16 %v3587_v53, %v3584_v27  ;;  %v891_v1 = vld [vmem:[%s6479_s0 + $0x68] sm:$0xfc] }
  0x79   :  { %3489 = vmatprep.mubr.msk.f32.mxu1 %vm310_vm1, %v99_v23  ;;  %3477 = vmatprep.mubr.msk.f32.mxu0 %vm310_vm1, %v99_v23  ;;  %v3583_v23 = vld [vmem:[%s6480_s1 + $0x578] sm:$0xff]  ;;  %v3588_v10 = vld [vmem:[%s6480_s1 + $0x5a0] sm:$0xff] }
  0x7a   :  { %4009 = vmatprep.subr.bf16.mxu1 %v6493_v3  ;;  %3984 = vmatpush1.bf16.msra.mxu0 %v3983_v38  ;;  %v909_v38 = vrot.slane %v4677_v44, 2  ;;  %v889_v44 = vld [vmem:[%s6479_s0 + $0x58] sm:$0x7f] }
  0x7b   :  { %4011 = vmatpush1.bf16.msra.mxu1 %v4010_v40  ;;  %4013 = vmatprep.subr.bf16.mxu0 %v4012_v47  ;;  %v912_v40 = vsel %vm898_vm6, %v907_v9, %v911_v17  ;;  %v4018_v47 = vpack.c.bf16 %v3579_v16, %v3576_v24  ;;  %v919_v8 = vrot.slane %v889_v44, 2  ;;  %v888_v9 = vld [vmem:[%s6479_s0 + $0x50] sm:$0x7f]  ;;  %v4026_v24 = vpack.c.bf16 %v3591_v60, %v3588_v10  ;;  %v3607_v53 = vld [vmem:[%s6480_s1 + $0x638] sm:$0xff] }
  0x7c   :  { %871 = vmatmul.mubr.f32.gmra.mrb[18].mxu1 %v97_v39  ;;  %743 = vmatmul.mubr.f32.gmra.mrb[18].mxu0 %v97_v39  ;;  %v915_v39 = vrot.slane %v4687_v48, 2  ;;  %v3592_v48 = vld [vmem:[%s6480_s1 + $0x5c0] sm:$0xff]  ;;  %v910_v62 = vsel %vm898_vm6, %v905_v12, %v909_v38  ;;  %v3590_v12 = vld [vmem:[%s6480_s1 + $0x5b0] sm:$0xff]  ;;  %v934_v16 = vrot.slane %v891_v1, 5  ;;  %v3611_v1 = vld [vmem:[%s6480_s1 + $0x658] sm:$0xff] }
  0x7d   :  { %3490 = vmatprep.mubr.msk.f32.mxu1 %vm310_vm1, %v103_v56  ;;  %3478 = vmatprep.mubr.msk.f32.mxu0 %vm310_vm1, %v103_v56  ;;  %v4020_v56 = vpack.c.bf16 %v3586_v35, %v3583_v23  ;;  %v4024_v22 = vpack.c.bf16 %v3592_v48, %v3589_v25  ;;  %v890_v23 = vld [vmem:[%s6479_s0 + $0x60] sm:$0xfc]  ;;  %v3603_v48 = vld [vmem:[%s6480_s1 + $0x618] sm:$0xff]  ;;  %v3606_v60 = vld [vmem:[%s6480_s1 + $0x630] sm:$0xff] }
  0x7e   :  { %4048 = vmatprep.subr.bf16.mxu1 %v6493_v3  ;;  %v3600_v25 = vld [vmem:[%s6480_s1 + $0x600] sm:$0xff] }
  0x80   :  { %876 = vmatmul.mubr.f32.gmra.mrb[20].mxu1 %v101_v61  ;;  %749 = vmatmul.mubr.f32.gmra.mrb[20].mxu0 %v101_v61 }
  0x81   :  { %3491 = vmatprep.mubr.msk.f32.mxu1 %vm310_vm1, %v102_v30  ;;  %3479 = vmatprep.mubr.msk.f32.mxu0 %vm310_vm1, %v102_v30  ;;  %v3581_v30 = vld [vmem:[%s6480_s1 + $0x568] sm:$0xff] }
  0x82   :  { %v4052_v61 = vpack.c.bf16 %v3581_v30, %v3578_v36  ;;  %v3594_v30 = vld [vmem:[%s6480_s1 + $0x5d0] sm:$0xff] }
  0x84   :  { %881 = vmatmul.mubr.f32.gmra.mrb[22].mxu1 %v100_v42  ;;  %755 = vmatmul.mubr.f32.gmra.mrb[22].mxu0 %v100_v42  ;;  %v3582_v42 = vld [vmem:[%s6480_s1 + $0x570] sm:$0xff] }
  0x85   :  { %3558 = vmatprep.mubr.msk.f32.mxu1 %vm310_vm1, %v904_v5  ;;  %3546 = vmatprep.mubr.msk.f32.mxu0 %vm310_vm1, %v904_v5  ;;  %v916_v5 = vsel %vm898_vm6, %v911_v17, %v915_v39  ;;  %v4022_v6 = vpack.c.bf16 %v3585_v59, %v3582_v42  ;;  %v914_v17 = vsel %vm898_vm6, %v909_v38, %v913_v2  ;;  %v3601_v38 = vld [vmem:[%s6480_s1 + $0x608] sm:$0xff] }
  0x86   :  { %v964_v59 = vsel %vm81_vm3, %v919_v8, %v934_v16 }
  0x88   :  { %1247 = vmatmul.mubr.f32.vlgmr.msra.gmra.mrb[0].mxu1 %v901_v26  ;;  %1110 = vmatmul.mubr.f32.vlgmr.msra.gmra.mrb[0].mxu0 %v901_v26  ;;  %v3595_v26 = vld [vmem:[%s6480_s1 + $0x5d8] sm:$0xff] }
  0x89   :  { %4015 = vmatpush1.bf16.msra.mxu0 %v4014_v28  ;;  %3559 = vmatprep.mubr.msk.f32.mxu1 %vm310_vm1, %v908_v13  ;;  %v3598_v28 = vld [vmem:[%s6480_s1 + $0x5f0] sm:$0xff] }
  0x8a   :  { %3547 = vmatprep.mubr.msk.f32.mxu0 %vm310_vm1, %v908_v13  ;;  %4017 = vmatprep.subr.bf16.mxu0 %v4016_v18  ;;  %v3593_v13 = vld [vmem:[%s6480_s1 + $0x5c8] sm:$0xff]  ;;  %v917_v18 = vrot.slane %v888_v9, 2  ;;  %v4028_v35 = vpack.c.bf16 %v3598_v28, %v3595_v26  ;;  %v4034_v9 = vpack.c.bf16 %v3603_v48, %v3600_v25  ;;  %v3616_v28 = vld [vmem:[%s6480_s1 + $0x680] sm:$0xff] }
  0x8b   :  { %4050 = vmatpush1.bf16.msra.mxu1 %v4049_v19  ;;  %v920_v19 = vsel %vm898_vm6, %v915_v39, %v919_v8  ;;  %v4058_v36 = vpack.c.bf16 %v3593_v13, %v3590_v12  ;;  %v3599_v39 = vld [vmem:[%s6480_s1 + $0x5f8] sm:$0xff]  ;;  %v938_v8 = vsel %vm932_vm2, %v934_v16, %v937_v29  ;;  %v3608_v29 = vld [vmem:[%s6480_s1 + $0x640] sm:$0xff]  ;;  %v3613_v26 = vld [vmem:[%s6480_s1 + $0x668] sm:$0xff] }
  0x8c   :  { %1252 = vmatmul.mubr.f32.gmra.mrb[2].mxu1 %v906_v31  ;;  %1116 = vmatmul.mubr.f32.gmra.mrb[2].mxu0 %v906_v31  ;;  %v3597_v31 = vld [vmem:[%s6480_s1 + $0x5e8] sm:$0xff]  ;;  %v918_v42 = vsel %vm898_vm6, %v913_v2, %v917_v18  ;;  %v3602_v2 = vld [vmem:[%s6480_s1 + $0x610] sm:$0xff]  ;;  %v1343_v25 = vld [vmem:[%s6479_s0] sm:$0xf8] }
  0x8d   :  { %3560 = vmatprep.mubr.msk.f32.mxu1 %vm310_vm1, %v912_v40  ;;  %3548 = vmatprep.mubr.msk.f32.mxu0 %vm310_vm1, %v912_v40  ;;  %v3604_v40 = vld [vmem:[%s6480_s1 + $0x620] sm:$0xff]  ;;  %v3617_v16 = vld [vmem:[%s6480_s1 + $0x688] sm:$0xff] }
  0x8e   :  { %4019 = vmatpush1.bf16.msra.mxu0 %v4018_v47  ;;  %4051 = vmatprep.subr.bf16.mxu1 %v6493_v3  ;;  %v3596_v47 = vld [vmem:[%s6480_s1 + $0x5e0] sm:$0xff]  ;;  %v4032_v44 = vpack.c.bf16 %v3604_v40, %v3601_v38  ;;  %v3618_v40 = vld [vmem:[%s6480_s1 + $0x690] sm:$0xff] }
  0x8f   :  { %4021 = vmatprep.subr.bf16.mxu0 %v4020_v56  ;;  %4053 = vmatpush1.bf16.msra.mxu1 %v4052_v61  ;;  %v933_v56 = vrot.slane %v890_v23, 5  ;;  %v4030_v61 = vpack.c.bf16 %v3597_v31, %v3594_v30  ;;  %v4061_v27 = vpack.c.bf16 %v3599_v39, %v3596_v47  ;;  %v3619_v23 = vld [vmem:[%s6480_s1 + $0x698] sm:$0xff]  ;;  %v3620_v47 = vld [vmem:[%s6480_s1 + $0x6a0] sm:$0xff] }
  0x90   :  { %1257 = vmatmul.mubr.f32.gmra.mrb[4].mxu1 %v910_v62  ;;  %1122 = vmatmul.mubr.f32.gmra.mrb[4].mxu0 %v910_v62  ;;  %v3610_v62 = vld [vmem:[%s6480_s1 + $0x650] sm:$0xff]  ;;  %v893_v30 = vld [vmem:[%s6479_s0 + $0xb8] sm:$0x7f] }
  0x91   :  { %3561 = vmatprep.mubr.msk.f32.mxu1 %vm310_vm1, %v916_v5  ;;  %3549 = vmatprep.mubr.msk.f32.mxu0 %vm310_vm1, %v916_v5  ;;  %v3605_v5 = vld [vmem:[%s6480_s1 + $0x628] sm:$0xff]  ;;  %v4036_v10 = vpack.c.bf16 %v3610_v62, %v3607_v53  ;;  %v936_v12 = vsel %vm932_vm2, %v933_v56, %v935_v33  ;;  %v3614_v33 = vld [vmem:[%s6480_s1 + $0x670] sm:$0xff]  ;;  %v3623_v39 = vld [vmem:[%s6480_s1 + $0x6b8] sm:$0xff] }
  0x92   :  { %4023 = vmatpush1.bf16.msra.mxu0 %v4022_v6  ;;  %4054 = vmatprep.subr.bf16.mxu1 %v6493_v3  ;;  %v963_v6 = vsel %vm81_vm3, %v917_v18, %v933_v56  ;;  %v4040_v18 = vpack.c.bf16 %v3616_v28, %v3613_v26  ;;  %v4070_v31 = vpack.c.bf16 %v3617_v16, %v3614_v33  ;;  %v892_v56 = vld [vmem:[%s6479_s0 + $0xb0] sm:$0x7f]  ;;  %v1346_v26 = vld [vmem:[%s6479_s0 + $0x58] sm:$0xff] }
  0x93   :  { %4025 = vmatprep.subr.bf16.mxu0 %v4024_v22  ;;  %4056 = vmatpush1.bf16.msra.mxu1 %v4055_v11  ;;  %v4064_v22 = vpack.c.bf16 %v3605_v5, %v3602_v2  ;;  %v3609_v11 = vld [vmem:[%s6480_s1 + $0x648] sm:$0xff]  ;;  %v4324_v2 = vld [vmem:[%s6479_s0 + $0x20] sm:$0xff] }
  0x94   :  { %1262 = vmatmul.mubr.f32.gmra.mrb[6].mxu1 %v914_v17  ;;  %1128 = vmatmul.mubr.f32.gmra.mrb[6].mxu0 %v914_v17  ;;  %v4038_v13 = vpack.c.bf16 %v3609_v11, %v3606_v60  ;;  %v4067_v17 = vpack.c.bf16 %v3611_v1, %v3608_v29  ;;  %v1361_v5 = vrot.slane %v4324_v2, 3  ;;  %v4327_v29 = vld [vmem:[%s6479_s0 + $0x48] sm:$0xff] }
  0x95   :  { %3562 = vmatprep.mubr.msk.f32.mxu1 %vm310_vm1, %v920_v19  ;;  %3550 = vmatprep.mubr.msk.f32.mxu0 %vm310_vm1, %v920_v19  ;;  %v3612_v19 = vld [vmem:[%s6480_s1 + $0x660] sm:$0xff]  ;;  %v1371_v1 = vrot.slane %v4327_v29, 3 }
  0x96   :  { %4027 = vmatpush1.bf16.msra.mxu0 %v4026_v24  ;;  %4057 = vmatprep.subr.bf16.mxu1 %v6493_v3  ;;  %v3615_v24 = vld [vmem:[%s6480_s1 + $0x678] sm:$0xff] }
  0x97   :  { %4029 = vmatprep.subr.bf16.mxu0 %v4028_v35  ;;  %4059 = vmatpush1.bf16.msra.mxu1 %v4058_v36  ;;  %v3622_v35 = vld [vmem:[%s6480_s1 + $0x6b0] sm:$0xff]  ;;  %v4042_v36 = vpack.c.bf16 %v3615_v24, %v3612_v19  ;;  %v1348_v24 = vld [vmem:[%s6479_s0 + $0x68] sm:$0xf8] }
  0x98   :  { %1267 = vmatmul.mubr.f32.gmra.mrb[8].mxu1 %v918_v42  ;;  %1134 = vmatmul.mubr.f32.gmra.mrb[8].mxu0 %v918_v42  ;;  %v4044_v38 = vpack.c.bf16 %v3622_v35, %v3619_v23  ;;  %v953_v42 = vrot.slane %v893_v30, 5  ;;  %v1345_v19 = vld [vmem:[%s6479_s0 + $0x50] sm:$0xff]  ;;  %v1390_v35 = vrot.slane %v1348_v24, 6 }
  0x99   :  { %3563 = vmatprep.mubr.msk.f32.mxu1 %vm310_vm1, %v964_v59  ;;  %3551 = vmatprep.mubr.msk.f32.mxu0 %vm310_vm1, %v964_v59  ;;  %v4073_v59 = vpack.c.bf16 %v3623_v39, %v3620_v47  ;;  %v1373_v16 = vrot.slane %v1345_v19, 3  ;;  %v2011_v19 = vld [vmem:[%s6481_s2 + $0x140] sm:$0xff] }
  0x9a   :  { %4031 = vmatpush1.bf16.msra.mxu0 %v4030_v61  ;;  %4060 = vmatprep.subr.bf16.mxu1 %v6493_v3  ;;  %v954_v61 = vsel %vm932_vm2, %v949_v46, %v953_v42 }
  0x9b   :  { %4033 = vmatprep.subr.bf16.mxu0 %v4032_v44  ;;  %4062 = vmatpush1.bf16.msra.mxu1 %v4061_v27  ;;  %v1344_v44 = vld [vmem:[%s6479_s0 + $0x8] sm:$0xf8] }
  0x9c   :  { %1272 = vmatmul.mubr.f32.gmra.mrb[10].mxu1 %v963_v6  ;;  %1140 = vmatmul.mubr.f32.gmra.mrb[10].mxu0 %v963_v6  ;;  %v4323_v27 = vld [vmem:[%s6479_s0 + $0x28] sm:$0xff] }
  0x9d   :  { %3564 = vmatprep.mubr.msk.f32.mxu1 %vm310_vm1, %v938_v8  ;;  %3552 = vmatprep.mubr.msk.f32.mxu0 %vm310_vm1, %v938_v8  ;;  %v1363_v53 = vrot.slane %v4323_v27, 3  ;;  %v4325_v8 = vld [vmem:[%s6479_s0 + $0x38] sm:$0xff]  ;;  %v1993_v27 = vld [vmem:[%s6481_s2 + $0xb0] sm:$0xff] }
  0x9e   :  { %4035 = vmatpush1.bf16.msra.mxu0 %v4034_v9  ;;  %4063 = vmatprep.subr.bf16.mxu1 %v6493_v3  ;;  %v1367_v9 = vrot.slane %v4325_v8, 3  ;;  %v1978_v8 = vld [vmem:[%s6481_s2 + $0x38] sm:$0xff] }
  0x9f   :  { %4037 = vmatprep.subr.bf16.mxu0 %v4036_v10  ;;  %4065 = vmatpush1.bf16.msra.mxu1 %v4064_v22  ;;  %v4326_v22 = vld [vmem:[%s6479_s0 + $0x30] sm:$0xff] }
  0xa0   :  { %1277 = vmatmul.mubr.f32.gmra.mrb[12].mxu1 %v936_v12  ;;  %1146 = vmatmul.mubr.f32.gmra.mrb[12].mxu0 %v936_v12  ;;  %v1365_v60 = vrot.slane %v4326_v22, 3  ;;  %v1368_v11 = vsel %vm81_vm3, %v1363_v53, %v1367_v9  ;;  %v4328_v12 = vld [vmem:[%s6479_s0 + $0x40] sm:$0xff] }
  0xa1   :  { %3565 = vmatprep.mubr.msk.f32.mxu1 %vm310_vm1, %v4849_v45  ;;  %3553 = vmatprep.mubr.msk.f32.mxu0 %vm310_vm1, %v4849_v45  ;;  %v3621_v45 = vld [vmem:[%s6480_s1 + $0x6a8] sm:$0xff]  ;;  %v1995_v22 = vld [vmem:[%s6481_s2 + $0xc0] sm:$0xff]  ;;  %s4363_s1 = smov 72  }
  0xa2   :  { %4039 = vmatpush1.bf16.msra.mxu0 %v4038_v13  ;;  %4066 = vmatprep.subr.bf16.mxu1 %v6493_v3  ;;  %v1366_v28 = vsel %vm81_vm3, %v1361_v5, %v1365_v60  ;;  %v1369_v13 = vrot.slane %v4328_v12, 3 }
  0xa3   :  { %4068 = vmatpush1.bf16.msra.mxu1 %v4067_v17  ;;  %4041 = vmatprep.subr.bf16.mxu0 %v4040_v18  ;;  %v1372_v17 = vsel %vm81_vm3, %v1367_v9, %v1371_v1  ;;  %v1375_v18 = vrot.slane %v1346_v26, 3  ;;  %v2009_v26 = vld [vmem:[%s6481_s2 + $0x130] sm:$0xff] }
  0xa4   :  { %1282 = vmatmul.mubr.f32.gmra.mrb[14].mxu1 %v4859_v49  ;;  %1152 = vmatmul.mubr.f32.gmra.mrb[14].mxu0 %v4859_v49  ;;  %v4046_v49 = vpack.c.bf16 %v3621_v45, %v3618_v40  ;;  %v1370_v33 = vsel %vm81_vm3, %v1365_v60, %v1369_v13  ;;  %v1374_v30 = vsel %vm81_vm3, %v1369_v13, %v1373_v16  ;;  %v1996_v60 = vld [vmem:[%s6481_s2 + $0xc8] sm:$0xff] }
  0xa5   :  { %3566 = vmatprep.mubr.msk.f32.mxu1 %vm310_vm1, %v4862_v50  ;;  %3554 = vmatprep.mubr.msk.f32.mxu0 %vm310_vm1, %v4862_v50  ;;  %v951_v50 = vrot.slane %v892_v56, 5  ;;  %v1376_v23 = vsel %vm81_vm3, %v1371_v1, %v1375_v18  ;;  %v1394_v45 = vsel %vm1388_vm5, %v1390_v35, %v1393_v54  ;;  %v1349_v54 = vld [vmem:[%s6479_s0 + $0xb0] sm:$0xff]  ;;  %v1990_v56 = vld [vmem:[%s6481_s2 + $0x98] sm:$0xff]  ;;  %v4091_v29 = vpack.c.bf16 %v1996_v60, %v1995_v22  ;;  %v1980_v1 = vld [vmem:[%s6481_s2 + $0x48] sm:$0xff] }
  0xa6   :  { %4043 = vmatpush1.bf16.msra.mxu0 %v4042_v36  ;;  %4069 = vmatprep.subr.bf16.mxu1 %v6493_v3  ;;  %v1347_v36 = vld [vmem:[%s6479_s0 + $0x60] sm:$0xf8] }
  0xa7   :  { %4071 = vmatpush1.bf16.msra.mxu1 %v4070_v31  ;;  %4045 = vmatprep.subr.bf16.mxu0 %v4044_v38  ;;  %v952_v46 = vsel %vm932_vm2, %v947_v51, %v951_v50  ;;  %v4322_v51 = vld [vmem:[%s6479_s0 + $0x10] sm:$0xff]  ;;  %v1389_v31 = vrot.slane %v1347_v36, 6  ;;  %v1420_v38 = vsel %vm81_vm3, %v1375_v18, %v1390_v35  ;;  %v1998_v18 = vld [vmem:[%s6481_s2 + $0xd8] sm:$0xff] }
  0xa8   :  { %1287 = vmatmul.mubr.f32.gmra.mrb[16].mxu1 %v4879_v57  ;;  %1158 = vmatmul.mubr.f32.gmra.mrb[16].mxu0 %v4879_v57  ;;  %v1358_v57 = vrot.slane %v1344_v44, 3  ;;  %v1356_v48 = vrot.slane %v4322_v51, 3  ;;  %v2005_v44 = vld [vmem:[%s6481_s2 + $0x110] sm:$0xff]  ;;  %v1976_v51 = vld [vmem:[%s6481_s2 + $0x28] sm:$0xff] }
  0xa9   :  { %3567 = vmatprep.mubr.msk.f32.mxu1 %vm310_vm1, %v4893_v63  ;;  %3555 = vmatprep.mubr.msk.f32.mxu0 %vm310_vm1, %v4893_v63  ;;  %v1359_v63 = vrot.slane %v5328_v41, 3  ;;  %v1419_v40 = vsel %vm81_vm3, %v1373_v16, %v1389_v31  ;;  %v1392_v47 = vsel %vm1388_vm5, %v1389_v31, %v1391_v58  ;;  %v1407_v58 = vrot.slane %v1349_v54, 6  ;;  %v1982_v16 = vld [vmem:[%s6481_s2 + $0x58] sm:$0xff]  ;;  %v2000_v31 = vld [vmem:[%s6481_s2 + $0xe8] sm:$0xff] }
  0xaa   :  { %4072 = vmatprep.subr.bf16.mxu1 %v6493_v3  ;;  %4047 = vmatpush1.bf16.msra.mxu0 %v4046_v49  ;;  %v1362_v10 = vsel %vm81_vm3, %v1356_v48, %v1361_v5  ;;  %v1973_v49 = vld [vmem:[%s6481_s2 + $0x10] sm:$0xff]  ;;  %v2008_v5 = vld [vmem:[%s6481_s2 + $0x128] sm:$0xff] }
  0xab   :  { %4074 = vmatpush1.bf16.msra.mxu1 %v4073_v59  ;;  %v1360_v41 = vsel %vm81_vm3, %v1358_v57, %v1359_v63  ;;  %v1364_v6 = vsel %vm81_vm3, %v1359_v63, %v1363_v53  ;;  %v1991_v57 = vld [vmem:[%s6481_s2 + $0xa0] sm:$0xff]  ;;  %v1994_v53 = vld [vmem:[%s6481_s2 + $0xb8] sm:$0xff] }
  0xac   :  { %1292 = vmatmul.mubr.f32.gmra.mrb[18].mxu1 %v4898_v0  ;;  %1164 = vmatmul.mubr.f32.gmra.mrb[18].mxu0 %v4898_v0  ;;  %v1355_v0 = vrot.slane %v1343_v25, 3  ;;  %v1992_v25 = vld [vmem:[%s6481_s2 + $0xa8] sm:$0xff]  ;;  %v4087_v2 = vpack.c.bf16 %v1994_v53, %v1993_v27 }
  0xad   :  { %3568 = vmatprep.mubr.msk.f32.mxu1 %vm310_vm1, %v954_v61  ;;  %3556 = vmatprep.mubr.msk.f32.mxu0 %vm310_vm1, %v954_v61 }
  0xae   :  { %4107 = vmatprep.subr.bf16.mxu1 %v6493_v3  ;;  %v1357_v62 = vsel %vm81_vm3, %v1355_v0, %v1356_v48  ;;  %v1975_v0 = vld [vmem:[%s6481_s2 + $0x20] sm:$0xff]  ;;  %v4083_v48 = vpack.c.bf16 %v1992_v25, %v1991_v57 }
  0xb0   :  { %1297 = vmatmul.mubr.f32.gmra.mrb[20].mxu1 %v952_v46  ;;  %1170 = vmatmul.mubr.f32.gmra.mrb[20].mxu0 %v952_v46  ;;  %v2006_v46 = vld [vmem:[%s6481_s2 + $0x118] sm:$0xff] }
  0xb1   :  { %3569 = vmatprep.mubr.msk.f32.mxu1 %vm310_vm1, %v953_v42  ;;  %3557 = vmatprep.mubr.msk.f32.mxu0 %vm310_vm1, %v953_v42  ;;  %v1989_v42 = vld [vmem:[%s6481_s2 + $0x90] sm:$0xff]  ;;  %v4111_v63 = vpack.c.bf16 %v2006_v46, %v2005_v44 }
  0xb2   :  { %v4079_v59 = vpack.c.bf16 %v1990_v56, %v1989_v42 }
  0xb4   :  { %1302 = vmatmul.mubr.f32.gmra.mrb[22].mxu1 %v951_v50  ;;  %1176 = vmatmul.mubr.f32.gmra.mrb[22].mxu0 %v951_v50  ;;  %v1974_v50 = vld [vmem:[%s6481_s2 + $0x18] sm:$0xff] }
  0xb5   :  { %3636 = vmatprep.mubr.msk.f32.mxu1 %vm310_vm1, %v1360_v41  ;;  %3624 = vmatprep.mubr.msk.f32.mxu0 %vm310_vm1, %v1360_v41  ;;  %v4081_v61 = vpack.c.bf16 %v1974_v50, %v1973_v49  ;;  %v4085_v41 = vpack.c.bf16 %v1976_v51, %v1975_v0 }
  0xb8   :  { %1703 = vmatmul.mubr.f32.vlgmr.msra.gmra.mrb[0].mxu1 %v1357_v62  ;;  %1566 = vmatmul.mubr.f32.vlgmr.msra.gmra.mrb[0].mxu0 %v1357_v62  ;;  %v2007_v62 = vld [vmem:[%s6481_s2 + $0x120] sm:$0xff] }
  0xb9   :  { %3637 = vmatprep.mubr.msk.f32.mxu1 %vm310_vm1, %v1364_v6  ;;  %3625 = vmatprep.mubr.msk.f32.mxu0 %vm310_vm1, %v1364_v6  ;;  %v1977_v6 = vld [vmem:[%s6481_s2 + $0x30] sm:$0xff]  ;;  %v4114_v9 = vpack.c.bf16 %v2008_v5, %v2007_v62 }
  0xbc   :  { %1708 = vmatmul.mubr.f32.gmra.mrb[2].mxu1 %v1362_v10  ;;  %1572 = vmatmul.mubr.f32.gmra.mrb[2].mxu0 %v1362_v10  ;;  %v4089_v10 = vpack.c.bf16 %v1978_v8, %v1977_v6 }
  0xbd   :  { %3638 = vmatprep.mubr.msk.f32.mxu1 %vm310_vm1, %v1368_v11  ;;  %3626 = vmatprep.mubr.msk.f32.mxu0 %vm310_vm1, %v1368_v11  ;;  %v1979_v11 = vld [vmem:[%s6481_s2 + $0x40] sm:$0xff] }
  0xbe   :  { %v4093_v12 = vpack.c.bf16 %v1980_v1, %v1979_v11 }
  0xc0   :  { %1713 = vmatmul.mubr.f32.gmra.mrb[4].mxu1 %v1366_v28  ;;  %1578 = vmatmul.mubr.f32.gmra.mrb[4].mxu0 %v1366_v28  ;;  %v2010_v28 = vld [vmem:[%s6481_s2 + $0x138] sm:$0xff] }
  0xc1   :  { %3639 = vmatprep.mubr.msk.f32.mxu1 %vm310_vm1, %v1372_v17  ;;  %3627 = vmatprep.mubr.msk.f32.mxu0 %vm310_vm1, %v1372_v17  ;;  %v4117_v13 = vpack.c.bf16 %v2010_v28, %v2009_v26  ;;  %v1997_v17 = vld [vmem:[%s6481_s2 + $0xd0] sm:$0xff] }
  0xc2   :  { %v4095_v24 = vpack.c.bf16 %v1998_v18, %v1997_v17 }
  0xc4   :  { %1718 = vmatmul.mubr.f32.gmra.mrb[6].mxu1 %v1370_v33  ;;  %1584 = vmatmul.mubr.f32.gmra.mrb[6].mxu0 %v1370_v33  ;;  %v1981_v33 = vld [vmem:[%s6481_s2 + $0x50] sm:$0xff] }
  0xc5   :  { %3640 = vmatprep.mubr.msk.f32.mxu1 %vm310_vm1, %v1376_v23  ;;  %3628 = vmatprep.mubr.msk.f32.mxu0 %vm310_vm1, %v1376_v23  ;;  %v2012_v23 = vld [vmem:[%s6481_s2 + $0x148] sm:$0xff]  ;;  %v4097_v35 = vpack.c.bf16 %v1982_v16, %v1981_v33 }
  0xc6   :  { %v4120_v36 = vpack.c.bf16 %v2012_v23, %v2011_v19 }
  0xc8   :  { %1723 = vmatmul.mubr.f32.gmra.mrb[8].mxu1 %v1374_v30  ;;  %1590 = vmatmul.mubr.f32.gmra.mrb[8].mxu0 %v1374_v30  ;;  %v1999_v30 = vld [vmem:[%s6481_s2 + $0xe0] sm:$0xff] }
  0xc9   :  { %3641 = vmatprep.mubr.msk.f32.mxu1 %vm310_vm1, %v1420_v38  ;;  %3629 = vmatprep.mubr.msk.f32.mxu0 %vm310_vm1, %v1420_v38  ;;  %v2013_v38 = vld [vmem:[%s6481_s2 + $0x150] sm:$0xff] }
  0xca   :  { %v4123_v54 = vpack.c.bf16 %v2014_v14, %v2013_v38 }
  0xcc   :  { %1728 = vmatmul.mubr.f32.gmra.mrb[10].mxu1 %v1419_v40  ;;  %1596 = vmatmul.mubr.f32.gmra.mrb[10].mxu0 %v1419_v40  ;;  %v4099_v40 = vpack.c.bf16 %v2000_v31, %v1999_v30 }
  0xcd   :  { %3642 = vmatprep.mubr.msk.f32.mxu1 %vm310_vm1, %v1394_v45  ;;  %3630 = vmatprep.mubr.msk.f32.mxu0 %vm310_vm1, %v1394_v45  ;;  %v1983_v45 = vld [vmem:[%s6481_s2 + $0x60] sm:$0xff] }
  0xd0   :  { %1733 = vmatmul.mubr.f32.gmra.mrb[12].mxu1 %v1392_v47  ;;  %1602 = vmatmul.mubr.f32.gmra.mrb[12].mxu0 %v1392_v47  ;;  %v1984_v47 = vld [vmem:[%s6481_s2 + $0x68] sm:$0xff] }
  0xd1   :  { %3643 = vmatprep.mubr.msk.f32.mxu1 %vm310_vm1, %v5052_v4  ;;  %3631 = vmatprep.mubr.msk.f32.mxu0 %vm310_vm1, %v5052_v4  ;;  %v1410_v4 = vsel %vm1388_vm5, %v1405_v34, %v1409_v21  ;;  %v1972_v34 = vld [vmem:[%s6481_s2 + $0x8] sm:$0xff] }
  0xd4   :  { %1738 = vmatmul.mubr.f32.gmra.mrb[14].mxu1 %v5063_v7  ;;  %1608 = vmatmul.mubr.f32.gmra.mrb[14].mxu0 %v5063_v7  ;;  %v1408_v7 = vsel %vm1388_vm5, %v1403_v37, %v1407_v58  ;;  %v4077_v37 = vpack.c.bf16 %v1972_v34, %v1971_v43  ;;  %v6495_v43 = vmov 0.0  }
  0xd5   :  { %3644 = vmatprep.mubr.msk.f32.mxu1 %vm310_vm1, %v5079_v15  ;;  %3632 = vmatprep.mubr.msk.f32.mxu0 %vm310_vm1, %v5079_v15  ;;  %v1988_v15 = vld [vmem:[%s6481_s2 + $0x88] sm:$0xff] }
  0xd8   :  { %1743 = vmatmul.mubr.f32.gmra.mrb[16].mxu1 %v5091_v20  ;;  %1614 = vmatmul.mubr.f32.gmra.mrb[16].mxu0 %v5091_v20  ;;  %v4075_v20 = vpack.c.bf16 %v1988_v15, %v1987_v32  ;;  %v1986_v15 = vld [vmem:[%s6481_s2 + $0x78] sm:$0xff] }
  0xd9   :  { %3645 = vmatprep.mubr.msk.f32.mxu1 %vm310_vm1, %v5120_v55  ;;  %3633 = vmatprep.mubr.msk.f32.mxu0 %vm310_vm1, %v5120_v55  ;;  %v2003_v55 = vld [vmem:[%s6481_s2 + $0x100] sm:$0xff] }
  0xda   :  { %4076 = vmatprep.subr.bf16.mxu0 %v4075_v20  ;;  %v2015_v20 = vld [vmem:[%s6481_s2 + $0x160] sm:$0xff] }
  0xdb   :  { %4078 = vmatpush3.bf16.msra.mxu0 %v4077_v37 }
  0xdc   :  { %1748 = vmatmul.mubr.f32.gmra.mrb[18].mxu1 %v5125_v52  ;;  %1620 = vmatmul.mubr.f32.gmra.mrb[18].mxu0 %v5125_v52  ;;  %v2004_v52 = vld [vmem:[%s6481_s2 + $0x108] sm:$0xff] }
  0xdd   :  { %3646 = vmatprep.mubr.msk.f32.mxu1 %vm310_vm1, %v1410_v4  ;;  %3634 = vmatprep.mubr.msk.f32.mxu0 %vm310_vm1, %v1410_v4  ;;  %v4108_v39 = vpack.c.bf16 %v2004_v52, %v2003_v55  ;;  %v2002_v4 = vld [vmem:[%s6481_s2 + $0xf8] sm:$0xff] }
  0xde   :  { %4080 = vmatprep.subr.bf16.mxu0 %v4079_v59 }
  0xdf   :  { %4109 = vmatpush3.bf16.msra.mxu1 %v4108_v39  ;;  %4082 = vmatpush3.bf16.msra.mxu0 %v4081_v61 }
  0xe0   :  { %1753 = vmatmul.mubr.f32.gmra.mrb[20].mxu1 %v1408_v7  ;;  %1626 = vmatmul.mubr.f32.gmra.mrb[20].mxu0 %v1408_v7  ;;  %v1985_v7 = vld [vmem:[%s6481_s2 + $0x70] sm:$0xff] }
  0xe1   :  { %3647 = vmatprep.mubr.msk.f32.mxu1 %vm310_vm1, %v1409_v21  ;;  %3635 = vmatprep.mubr.msk.f32.mxu0 %vm310_vm1, %v1409_v21  ;;  %v4101_v21 = vpack.c.bf16 %v1984_v47, %v1983_v45  ;;  %v4105_v34 = vpack.c.bf16 %v1986_v15, %v1985_v7 }
  0xe2   :  { %4110 = vmatprep.subr.bf16.mxu1 %v6493_v3  ;;  %4084 = vmatprep.subr.bf16.mxu0 %v4083_v48 }
  0xe3   :  { %4112 = vmatpush3.bf16.msra.mxu1 %v4111_v63  ;;  %4086 = vmatpush3.bf16.msra.mxu0 %v4085_v41 }
  0xe4   :  { %1758 = vmatmul.mubr.f32.gmra.mrb[22].mxu1 %v1407_v58  ;;  %1632 = vmatmul.mubr.f32.gmra.mrb[22].mxu0 %v1407_v58  ;;  %v2001_v58 = vld [vmem:[%s6481_s2 + $0xf0] sm:$0xff]  ;;  %s4367_s2 = smov [#allocation2]  }
  0xe5   :  { %4113 = vmatprep.subr.bf16.mxu1 %v6493_v3  ;;  %4088 = vmatprep.subr.bf16.mxu0 %v4087_v2  ;;  %v4103_v32 = vpack.c.bf16 %v2002_v4, %v2001_v58  ;;  %s3382_s18 = sshll.u32 %s4367_s2, 4  ;;  %s3383_s18 = int_to_ptr.vmem [resolvable:$true] %s3382_s18 }
  0xe6   :  { %3759 = vmatprep.mubr.msk.f32.mxu1 %vm4355_vm7, %v6495_v43  ;;  %p4334_p1 = scmp.lt.s32.totalorder %s3383_s18, %s3383_s18 }
  0xe7   :  { %4115 = vmatpush3.bf16.msra.mxu1 %v4114_v9  ;;  %4090 = vmatpush3.bf16.msra.mxu0 %v4089_v10 }
  0xe8   :  { %4116 = vmatprep.subr.bf16.mxu1 %v6493_v3  ;;  %4092 = vmatprep.subr.bf16.mxu0 %v4091_v29 }
  0xeb   :  { %4094 = vmatpush3.bf16.msra.mxu0 %v4093_v12  ;;  %4118 = vmatpush3.bf16.msra.mxu1 %v4117_v13 }
  0xec   :  { %4119 = vmatprep.subr.bf16.mxu1 %v6493_v3  ;;  %4096 = vmatprep.subr.bf16.mxu0 %v4095_v24 }
  0xef   :  { %4098 = vmatpush3.bf16.msra.mxu0 %v4097_v35  ;;  %4121 = vmatpush3.bf16.msra.mxu1 %v4120_v36 }
  0xf0   :  { %4122 = vmatprep.subr.bf16.mxu1 %v6493_v3  ;;  %4100 = vmatprep.subr.bf16.mxu0 %v4099_v40 }
  0xf3   :  { %4102 = vmatpush3.bf16.msra.mxu0 %v4101_v21  ;;  %4124 = vmatpush3.bf16.msra.mxu1 %v4123_v54 }
  0xf4   :  { %3757 = vmatprep.subr.mxu1 %v6495_v43  ;;  %4104 = vmatprep.subr.bf16.mxu0 %v4103_v32 }
  0xf7   :  { %4106 = vmatpush3.bf16.msra.mxu0 %v4105_v34  ;;  %3758 = vmatpush3.msra.mxu1 %v2015_v20 }
  0xf8   :  { %3762 = vmatprep.subr.mxu1 %v6495_v43 }
 0x18b   :  { %v5837_v37 = vpop.f32.mrb[0].mxu1  ;;  %v5839_v55 = vpop.f32.mrb[0].mxu0 }
 0x18c   :  { %v1706_v52 = vpop.f32.mrb[1].mxu1  ;;  %v5841_v39 = vpop.f32.mrb[1].mxu0  ;;  %v1868_v42 = vmul.f32 %v5837_v37, %v5837_v37  ;;  %v1836_v56 = vsel %vm1835_vm8, %v5837_v37, 0.0  ;;  %v1866_v49 = vmul.f32 %v5839_v55, %v5839_v55 }
 0x18d   :  { %v1867_v0 = vmul.f32 %v5841_v39, %v5841_v39 }
 0x18e   :  { %v1938_v27 = vsel %vm1835_vm8, %v1868_v42, 0.0 }
 0x18f   :  { %v5849_v59 = vpop.f32.mrb[2].mxu1  ;;  %v5851_v50 = vpop.f32.mrb[2].mxu0 }
 0x190   :  { %v1837_v61 = vsel %vm1835_vm8, %v5849_v59, 0.0  ;;  %v1871_v44 = vmul.f32 %v5849_v59, %v5849_v59  ;;  %v1799_v46 = vadd.f32 %v5851_v50, %v5839_v55  ;;  %v1869_v57 = vmul.f32 %v5851_v50, %v5851_v50  ;;  %v1711_v63 = vpop.f32.mrb[3].mxu1  ;;  %v5861_v25 = vpop.f32.mrb[3].mxu0 }
 0x191   :  { %v1838_v51 = vadd.f32 %v1837_v61, %v1836_v56  ;;  %v1817_v48 = vadd.f32 %v5861_v25, %v5841_v39  ;;  %v1870_v41 = vmul.f32 %v5861_v25, %v5861_v25 }
 0x192   :  { %v1939_v53 = vsel %vm1835_vm8, %v1871_v44, 0.0  ;;  %v1902_v62 = vadd.f32 %v1869_v57, %v1866_v49 }
 0x193   :  { %v1940_v2 = vadd.f32 %v1939_v53, %v1938_v27  ;;  %v1920_v5 = vadd.f32 %v1870_v41, %v1867_v0  ;;  %v5871_v6 = vpop.f32.mrb[4].mxu1  ;;  %v5873_v8 = vpop.f32.mrb[4].mxu0 }
 0x194   :  { %v1839_v9 = vsel %vm1835_vm8, %v5871_v6, 0.0  ;;  %v1874_v10 = vmul.f32 %v5871_v6, %v5871_v6  ;;  %v1800_v22 = vadd.f32 %v1799_v46, %v5873_v8  ;;  %v1872_v60 = vmul.f32 %v5873_v8, %v5873_v8  ;;  %v1716_v11 = vpop.f32.mrb[5].mxu1  ;;  %v5882_v29 = vpop.f32.mrb[5].mxu0 }
 0x195   :  { %v1840_v1 = vadd.f32 %v1839_v9, %v1838_v51  ;;  %v1818_v26 = vadd.f32 %v1817_v48, %v5882_v29  ;;  %v1873_v28 = vmul.f32 %v5882_v29, %v5882_v29 }
 0x196   :  { %v1941_v12 = vsel %vm1835_vm8, %v1874_v10, 0.0  ;;  %v1903_v13 = vadd.f32 %v1902_v62, %v1872_v60 }
 0x197   :  { %v1942_v17 = vadd.f32 %v1941_v12, %v1940_v2  ;;  %v1921_v18 = vadd.f32 %v1920_v5, %v1873_v28  ;;  %v5888_v19 = vpop.f32.mrb[6].mxu1  ;;  %v5890_v24 = vpop.f32.mrb[6].mxu0 }
 0x198   :  { %v1841_v33 = vsel %vm1835_vm8, %v5888_v19, 0.0  ;;  %v1877_v16 = vmul.f32 %v5888_v19, %v5888_v19  ;;  %v1801_v23 = vadd.f32 %v1800_v22, %v5890_v24  ;;  %v1875_v35 = vmul.f32 %v5890_v24, %v5890_v24  ;;  %v1721_v36 = vpop.f32.mrb[7].mxu1  ;;  %v5899_v30 = vpop.f32.mrb[7].mxu0 }
 0x199   :  { %v1842_v31 = vadd.f32 %v1841_v33, %v1840_v1  ;;  %v1819_v38 = vadd.f32 %v1818_v26, %v5899_v30  ;;  %v1876_v40 = vmul.f32 %v5899_v30, %v5899_v30 }
 0x19a   :  { %v1943_v45 = vsel %vm1835_vm8, %v1877_v16, 0.0  ;;  %v1904_v47 = vadd.f32 %v1903_v13, %v1875_v35 }
 0x19b   :  { %v1944_v14 = vadd.f32 %v1943_v45, %v1942_v17  ;;  %v1922_v21 = vadd.f32 %v1921_v18, %v1876_v40  ;;  %v5905_v54 = vpop.f32.mrb[8].mxu1  ;;  %v5907_v58 = vpop.f32.mrb[8].mxu0 }
 0x19c   :  { %v1843_v4 = vsel %vm1835_vm8, %v5905_v54, 0.0  ;;  %v1880_v7 = vmul.f32 %v5905_v54, %v5905_v54  ;;  %v1802_v32 = vadd.f32 %v1801_v23, %v5907_v58  ;;  %v1878_v15 = vmul.f32 %v5907_v58, %v5907_v58  ;;  %v1726_v20 = vpop.f32.mrb[9].mxu1  ;;  %v5916_v34 = vpop.f32.mrb[9].mxu0 }
 0x19d   :  { %v1844_v52 = vadd.f32 %v1843_v4, %v1842_v31  ;;  %v1820_v42 = vadd.f32 %v1819_v38, %v5916_v34  ;;  %v1879_v56 = vmul.f32 %v5916_v34, %v5916_v34 }
 0x19e   :  { %v1945_v49 = vsel %vm1835_vm8, %v1880_v7, 0.0  ;;  %v1905_v61 = vadd.f32 %v1904_v47, %v1878_v15 }
 0x19f   :  { %v1946_v44 = vadd.f32 %v1945_v49, %v1944_v14  ;;  %v1923_v46 = vadd.f32 %v1922_v21, %v1879_v56  ;;  %v5922_v57 = vpop.f32.mrb[10].mxu1  ;;  %v5924_v63 = vpop.f32.mrb[10].mxu0 }
 0x1a0   :  { %v1845_v0 = vsel %vm1835_vm8, %v5922_v57, 0.0  ;;  %v1883_v51 = vmul.f32 %v5922_v57, %v5922_v57  ;;  %v1803_v48 = vadd.f32 %v1802_v32, %v5924_v63  ;;  %v1881_v41 = vmul.f32 %v5924_v63, %v5924_v63  ;;  %v1731_v27 = vpop.f32.mrb[11].mxu1  ;;  %v5933_v53 = vpop.f32.mrb[11].mxu0 }
 0x1a1   :  { %v1846_v62 = vadd.f32 %v1845_v0, %v1844_v52  ;;  %v1821_v2 = vadd.f32 %v1820_v42, %v5933_v53  ;;  %v1882_v5 = vmul.f32 %v5933_v53, %v5933_v53 }
 0x1a2   :  { %v1947_v9 = vsel %vm1835_vm8, %v1883_v51, 0.0  ;;  %v1906_v10 = vadd.f32 %v1905_v61, %v1881_v41 }
 0x1a3   :  { %v1948_v22 = vadd.f32 %v1947_v9, %v1946_v44  ;;  %v1924_v60 = vadd.f32 %v1923_v46, %v1882_v5  ;;  %v5939_v11 = vpop.f32.mrb[12].mxu1  ;;  %v5941_v1 = vpop.f32.mrb[12].mxu0 }
 0x1a4   :  { %v1847_v26 = vsel %vm1835_vm8, %v5939_v11, 0.0  ;;  %v1886_v28 = vmul.f32 %v5939_v11, %v5939_v11  ;;  %v1804_v12 = vadd.f32 %v1803_v48, %v5941_v1  ;;  %v1884_v13 = vmul.f32 %v5941_v1, %v5941_v1  ;;  %v1736_v17 = vpop.f32.mrb[13].mxu1  ;;  %v5950_v18 = vpop.f32.mrb[13].mxu0 }
 0x1a5   :  { %v1848_v33 = vadd.f32 %v1847_v26, %v1846_v62  ;;  %v1822_v16 = vadd.f32 %v1821_v2, %v5950_v18  ;;  %v1885_v23 = vmul.f32 %v5950_v18, %v5950_v18 }
 0x1a6   :  { %v1949_v35 = vsel %vm1835_vm8, %v1886_v28, 0.0  ;;  %v1907_v36 = vadd.f32 %v1906_v10, %v1884_v13 }
 0x1a7   :  { %v1950_v31 = vadd.f32 %v1949_v35, %v1948_v22  ;;  %v1925_v38 = vadd.f32 %v1924_v60, %v1885_v23  ;;  %v5956_v40 = vpop.f32.mrb[14].mxu1  ;;  %v5958_v45 = vpop.f32.mrb[14].mxu0 }
 0x1a8   :  { %v1849_v47 = vsel %vm1835_vm8, %v5956_v40, 0.0  ;;  %v1889_v14 = vmul.f32 %v5956_v40, %v5956_v40  ;;  %v1805_v21 = vadd.f32 %v1804_v12, %v5958_v45  ;;  %v1887_v4 = vmul.f32 %v5958_v45, %v5958_v45  ;;  %v1741_v7 = vpop.f32.mrb[15].mxu1  ;;  %v5967_v32 = vpop.f32.mrb[15].mxu0 }
 0x1a9   :  { %v1850_v15 = vadd.f32 %v1849_v47, %v1848_v33  ;;  %v1823_v20 = vadd.f32 %v1822_v16, %v5967_v32  ;;  %v1888_v52 = vmul.f32 %v5967_v32, %v5967_v32 }
 0x1aa   :  { %v1951_v42 = vsel %vm1835_vm8, %v1889_v14, 0.0  ;;  %v1908_v56 = vadd.f32 %v1907_v36, %v1887_v4 }
 0x1ab   :  { %v1952_v49 = vadd.f32 %v1951_v42, %v1950_v31  ;;  %v1926_v61 = vadd.f32 %v1925_v38, %v1888_v52  ;;  %v5973_v44 = vpop.f32.mrb[16].mxu1  ;;  %v5975_v46 = vpop.f32.mrb[16].mxu0 }
 0x1ac   :  { %v1851_v0 = vsel %vm1835_vm8, %v5973_v44, 0.0  ;;  %v1892_v51 = vmul.f32 %v5973_v44, %v5973_v44  ;;  %v1806_v48 = vadd.f32 %v1805_v21, %v5975_v46  ;;  %v1890_v41 = vmul.f32 %v5975_v46, %v5975_v46  ;;  %v1746_v27 = vpop.f32.mrb[17].mxu1  ;;  %v5984_v62 = vpop.f32.mrb[17].mxu0 }
 0x1ad   :  { %v1852_v2 = vadd.f32 %v1851_v0, %v1850_v15  ;;  %v1824_v5 = vadd.f32 %v1823_v20, %v5984_v62  ;;  %v1891_v9 = vmul.f32 %v5984_v62, %v5984_v62 }
 0x1ae   :  { %v1953_v10 = vsel %vm1835_vm8, %v1892_v51, 0.0  ;;  %v1909_v22 = vadd.f32 %v1908_v56, %v1890_v41 }
 0x1af   :  { %v1954_v60 = vadd.f32 %v1953_v10, %v1952_v49  ;;  %v1927_v26 = vadd.f32 %v1926_v61, %v1891_v9  ;;  %v5990_v28 = vpop.f32.mrb[18].mxu1  ;;  %v5992_v12 = vpop.f32.mrb[18].mxu0 }
 0x1b0   :  { %v1853_v13 = vsel %vm1835_vm8, %v5990_v28, 0.0  ;;  %v1895_v17 = vmul.f32 %v5990_v28, %v5990_v28  ;;  %v1807_v33 = vadd.f32 %v1806_v48, %v5992_v12  ;;  %v1893_v16 = vmul.f32 %v5992_v12, %v5992_v12  ;;  %v1751_v23 = vpop.f32.mrb[19].mxu1  ;;  %v6001_v35 = vpop.f32.mrb[19].mxu0 }
 0x1b1   :  { %v1854_v36 = vadd.f32 %v1853_v13, %v1852_v2  ;;  %v1825_v31 = vadd.f32 %v1824_v5, %v6001_v35  ;;  %v1894_v38 = vmul.f32 %v6001_v35, %v6001_v35 }
 0x1b2   :  { %v1955_v47 = vsel %vm1835_vm8, %v1895_v17, 0.0  ;;  %v1910_v14 = vadd.f32 %v1909_v22, %v1893_v16 }
 0x1b3   :  { %v1956_v21 = vadd.f32 %v1955_v47, %v1954_v60  ;;  %v1928_v4 = vadd.f32 %v1927_v26, %v1894_v38  ;;  %v6007_v7 = vpop.f32.mrb[20].mxu1  ;;  %v6009_v15 = vpop.f32.mrb[20].mxu0 }
 0x1b4   :  { %v1855_v20 = vsel %vm1835_vm8, %v6007_v7, 0.0  ;;  %v1898_v52 = vmul.f32 %v6007_v7, %v6007_v7  ;;  %v1808_v42 = vadd.f32 %v1807_v33, %v6009_v15  ;;  %v1896_v56 = vmul.f32 %v6009_v15, %v6009_v15  ;;  %v1756_v49 = vpop.f32.mrb[21].mxu1  ;;  %v6018_v61 = vpop.f32.mrb[21].mxu0 }
 0x1b5   :  { %v1856_v0 = vadd.f32 %v1855_v20, %v1854_v36  ;;  %v1826_v51 = vadd.f32 %v1825_v31, %v6018_v61  ;;  %v1897_v48 = vmul.f32 %v6018_v61, %v6018_v61 }
 0x1b6   :  { %v1957_v41 = vsel %vm1835_vm8, %v1898_v52, 0.0  ;;  %v1911_v27 = vadd.f32 %v1910_v14, %v1896_v56 }
 0x1b7   :  { %v1958_v2 = vadd.f32 %v1957_v41, %v1956_v21  ;;  %v1929_v5 = vadd.f32 %v1928_v4, %v1897_v48  ;;  %v1759_v9 = vpop.f32.mrb[22].mxu1  ;;  %v1633_v10 = vpop.f32.mrb[22].mxu0 }
 0x1b8   :  { %v1858_v22 = vsel %vm1857_vm9, %v1759_v9, 0.0  ;;  %v1901_v60 = vmul.f32 %v1759_v9, %v1759_v9  ;;  %v1809_v26 = vsel %vm1388_vm5, %v1633_v10, 0.0  ;;  %v1899_v13 = vmul.f32 %v1633_v10, %v1633_v10  ;;  %v1761_v17 = vpop.f32.mrb[23].mxu1  ;;  %v1635_v33 = vpop.f32.mrb[23].mxu0 }
 0x1b9   :  { %v1859_v16 = vadd.f32 %v1858_v22, %v1856_v0  ;;  %v1810_v23 = vadd.f32 %v1809_v26, %v1808_v42  ;;  %v1827_v36 = vsel %vm1388_vm5, %v1635_v33, 0.0  ;;  %v1900_v31 = vmul.f32 %v1635_v33, %v1635_v33 }
 0x1ba   :  { %v1959_v38 = vsel %vm1857_vm9, %v1901_v60, 0.0  ;;  %v1912_v47 = vsel %vm1388_vm5, %v1899_v13, 0.0  ;;  %v1828_v14 = vadd.f32 %v1827_v36, %v1826_v51 }
 0x1bb   :  { %v1860_v21 = vrot.slane %v1859_v16, 4  ;;  %v1960_v4 = vadd.f32 %v1959_v38, %v1958_v2  ;;  %v1811_v20 = vrot.slane %v1810_v23, 4  ;;  %v1913_v52 = vadd.f32 %v1912_v47, %v1911_v27 }
 0x1bc   :  { %v1829_v56 = vrot.slane %v1828_v14, 4  ;;  %v1930_v49 = vsel %vm1388_vm5, %v1900_v31, 0.0 }
 0x1bd   :  { %v1861_v48 = vadd.f32 %v1860_v21, %v1859_v16  ;;  %v1961_v41 = vrot.slane %v1960_v4, 4  ;;  %v1812_v9 = vadd.f32 %v1811_v20, %v1810_v23  ;;  %v1914_v0 = vrot.slane %v1913_v52, 4 }
 0x1be   :  { %v1830_v42 = vadd.f32 %v1829_v56, %v1828_v14  ;;  %v1931_v10 = vadd.f32 %v1930_v49, %v1929_v5 }
 0x1bf   :  { %v1862_v22 = vrot.slane %v1861_v48, 2  ;;  %v1962_v26 = vadd.f32 %v1961_v41, %v1960_v4  ;;  %v1813_v17 = vrot.slane %v1812_v9, 2  ;;  %v1915_v60 = vadd.f32 %v1914_v0, %v1913_v52 }
 0x1c0   :  { %v1831_v33 = vrot.slane %v1830_v42, 2  ;;  %v1932_v13 = vrot.slane %v1931_v10, 4 }
 0x1c1   :  { %v1863_v51 = vadd.f32 %v1862_v22, %v1861_v48  ;;  %v1963_v36 = vrot.slane %v1962_v26, 2  ;;  %v1814_v2 = vadd.f32 %v1813_v17, %v1812_v9  ;;  %v1916_v38 = vrot.slane %v1915_v60, 2  ;;  %v2198_v17 = vld [vmem:[%s6482_s3 + $0x10] sm:$0xff] }
 0x1c2   :  { %v1832_v27 = vadd.f32 %v1831_v33, %v1830_v42  ;;  %v1933_v47 = vadd.f32 %v1932_v13, %v1931_v10 }
 0x1c3   :  { %v1864_v3 = vrot.slane %v1863_v51, 1  ;;  %v1964_v31 = vadd.f32 %v1963_v36, %v1962_v26  ;;  %v1815_v16 = vrot.slane %v1814_v2, 1  ;;  %v1917_v21 = vadd.f32 %v1916_v38, %v1915_v60  ;;  %v2196_v26 = vld [vmem:[%s6482_s3] sm:$0xff] }
 0x1c4   :  { %v1934_v23 = vrot.slane %v1933_v47, 2  ;;  %v1833_v5 = vrot.slane %v1832_v27, 1  ;;  %v6500_v60 = vmov 0.0|0.0  }
 0x1c5   :  { %v1965_v20 = vrot.slane %v1964_v31, 1  ;;  %v1918_v14 = vrot.slane %v1917_v21, 1  ;;  %v1865_v56 = vadd.f32 %v1864_v3, %v1863_v51  ;;  %v1816_v49 = vadd.f32 %v1815_v16, %v1814_v2  ;;  %v2197_v3 = vld [vmem:[%s6482_s3 + $0x8] sm:$0xff] }
 0x1c6   :  { %v1935_v4 = vadd.f32 %v1934_v23, %v1933_v47  ;;  %v1834_v42 = vadd.f32 %v1833_v5, %v1832_v27  ;;  %2203 = vmatprep.subr.mxu0 %v2197_v3  ;;  %v4356_v23 = vmov 1966171168  }
 0x1c7   :  { %v1966_v52 = vadd.f32 %v1965_v20, %v1964_v31  ;;  %v1919_v41 = vadd.f32 %v1918_v14, %v1917_v21  ;;  %v2170_v20 = vunpack.c.l.s4 %v4356_v23  ;;  %v2172_v14 = vlaneseq }
 0x1c8   :  { %v1936_v48 = vrot.slane %v1935_v4, 1 }
 0x1c9   :  { %v1970_v9 = vsel %vm1967_vm10, %v1865_v56, %v1966_v52  ;;  %v1968_v0 = vsel %vm1967_vm10, %v1816_v49, %v1919_v41  ;;  %v2171_v5 = vunpack.c.0.s8 %v2170_v20 }
 0x1ca   :  { %3760 = vmatmul.mubr.msk.f32.vlgmr.msra.gmra.mrb[24].mxu1 %vm1835_vm8, %v1970_v9  ;;  %v1937_v10 = vadd.f32 %v1936_v48, %v1935_v4  ;;  %v2173_v4 = vshrl.u32 %v2172_v14, 7  ;;  %v2165_v48 = vld [vmem:[%s6483_s4] sm:$0x1]  ;;  %s4357_s4 = smov 112  }
 0x1cb   :  { %3764 = vmatprep.mubr.msk.f32.mxu1 %vm4355_vm7, %v6495_v43  ;;  %3763 = vmatpush3.msra.mxu1 %v2198_v17 }
 0x1cc   :  { %v1969_v22 = vsel %vm1967_vm10, %v1834_v42, %v1937_v10  ;;  %4140 = vmatprep.subr.bf16.mxu1 %v6500_v60  ;;  %v6048_v56 = vsub.s32 %v2171_v5, %v2173_v4  ;;  %v2186_v42 = vld [vmem:[%s6484_s5] sm:$0x1]  ;;  %s4358_s5 = smov 120  }
 0x1cd   :  { %2083 = vmatprep.mubr.f32.mxu0 %v1969_v22  ;;  %v6058_v22 = vsub.s32 0, %v2173_v4 }
 0x1ce   :  { %2084 = vmatmul.mubr.f32.vlgmr.msra.gmra.mrb[24].mxu0 %v1968_v0 }
 0x1cf   :  { %2267 = vmatprep.mubr.f32.mxu0 %v6495_v43  ;;  %2204 = vmatpush1.msra.mxu0 %v2196_v26 }
 0x1d0   :  { %4125 = vmatprep.subr.bf16.mxu0 %v6500_v60 }
 0x29d   :  { %v2155_v33 = vpop.f32.mrb[24].mxu1 }
 0x29e   :  { %v3761_v13 = vpop.f32.mrb[25].mxu1 }
 0x2a1   :  { %v3688_v51 = vpop.f32.mrb[24].mxu0 }
 0x2a2   :  { %v3689_v36 = vpop.f32.mrb[25].mxu0 }
 0x2a3   :  { %v3690_v2 = vadd.f32 %v3689_v36, %v3688_v51 }
 0x2a5   :  { %v2156_v38 = vadd.f32 %v3690_v2, %v2155_v33  ;;  %v6068_v33 = vsub.s32 1, %v2173_v4 }
 0x2a7   :  { %v2159_v27 = vmul.f32 0.00024691358, %v2156_v38  ;;  %6501 = vst [vmem:[#allocation5_spill] sm:$0xff] %v6068_v33 }
 0x2a9   :  { %v2160_v47 = vmul.f32 %v2159_v27, %v2159_v27 }
 0x2ab   :  { %v2162_v31 = vrot.slane %v2160_v47, 7 }
 0x2ad   :  { %v2164_v16 = vsub.f32 %v2159_v27, %v2162_v31 }
 0x2af   :  { %v2166_v21 = vadd.f32 1e-05, %v2164_v16 }
 0x2b1   :  { %4317 = vrsqrt.f32 %v2166_v21 }
 0x2bb   :  { %v4318_v52 = vpop.eup %4317 }
 0x2bc   :  { %v2175_v49 = vrot.slane %v4318_v52, %v6048_v56 }
 0x2be   :  { %v2176_v41 = vcombine.high %v2175_v49, %v2175_v49 }
 0x2c0   :  { %v2183_v9 = vrot.slane %v2176_v41, %v6048_v56 }
 0x2c2   :  { %v2185_v0 = vmul.f32 %v2183_v9, %v2165_v48 }
 0x2c4   :  { %v2187_v10 = vmul.f32 %v2185_v0, %v2159_v27 }
 0x2c6   :  { %v2188_v3 = vsub.f32 %v2186_v42, %v2187_v10 }
 0x2c8   :  { %v2193_v26 = vrot.slane %v2188_v3, %v6058_v22 }
 0x2ca   :  { %v2195_v17 = vsel %vm1967_vm10, %v2185_v0, %v2193_v26 }
 0x2cb   :  { %3649 = vmatmul.mubr.msk.f32.vlgmr.msra.gmra.mrb[26].mxu0 %vm2199_vm11, %v2195_v17  ;;  %3765 = vmatmul.mubr.msk.f32.vlgmr.msra.gmra.mrb[26].mxu1 %vm2199_vm11, %v2195_v17 }
 0x2cc   :  { %3787 = vmatprep.mubr.msk.f32.mxu0 %vm4355_vm7, %v6495_v43  ;;  %3806 = vmatprep.mubr.msk.f32.mxu1 %vm4355_vm7, %v6495_v43 }
 0x39e   :  { %v2269_v13 = vpop.f32.mrb[26].mxu0  ;;  %v2340_v51 = vpop.f32.mrb[26].mxu1 }
 0x39f   :  { %v2347_v36 = vrot.slane %v2269_v13, %v6058_v22  ;;  %v6072_v2 = vrot.slane %v2340_v51, %v6058_v22  ;;  %v2271_v38 = vpop.f32.mrb[27].mxu0  ;;  %v3766_v27 = vpop.f32.mrb[27].mxu1  ;;  %v2392_v47 = vrot.slane %v2269_v13, %v6068_v33  ;;  %v6076_v31 = vrot.slane %v2340_v51, %v6068_v33 }
 0x3a0   :  { %v6079_v16 = vrot.slane %v2271_v38, %v6058_v22  ;;  %v6082_v21 = vrot.slane %v2271_v38, %v6068_v33 }
 0x3a1   :  { %v2380_v23 = vmul.f32 %v2347_v36, %v5975_v46  ;;  %v2383_v20 = vmul.f32 %v2347_v36, %v5992_v12  ;;  %v2386_v14 = vmul.f32 %v2347_v36, %v6009_v15  ;;  %v2382_v5 = vmul.f32 %v6072_v2, %v5973_v44 }
 0x3a2   :  { %v2385_v4 = vmul.f32 %v6072_v2, %v5990_v28  ;;  %v2388_v52 = vmul.f32 %v6072_v2, %v6007_v7  ;;  %v2356_v49 = vmul.f32 %v2347_v36, %v5839_v55  ;;  %v2359_v41 = vmul.f32 %v2347_v36, %v5851_v50 }
 0x3a3   :  { %v6095_v48 = vadd.f32 %v2392_v47, %v2380_v23  ;;  %v2428_v46 = vadd.f32 %v2392_v47, %v2383_v20  ;;  %v2431_v9 = vadd.f32 %v2392_v47, %v2386_v14  ;;  %v6098_v12 = vadd.f32 %v6076_v31, %v2382_v5 }
 0x3a4   :  { %v2430_v15 = vadd.f32 %v6076_v31, %v2385_v4  ;;  %v2433_v44 = vadd.f32 %v6076_v31, %v2388_v52  ;;  %v2362_v28 = vmul.f32 %v2347_v36, %v5873_v8  ;;  %v2365_v0 = vmul.f32 %v2347_v36, %v5890_v24 }
 0x3a5   :  { %v6498_v7 = vmax.f32 %v6095_v48, 0.0  ;;  %v2461_v55 = vmax.f32 %v2428_v46, 0.0  ;;  %v2464_v42 = vmax.f32 %v2431_v9, 0.0  ;;  %v6497_v50 = vmax.f32 %v6098_v12, 0.0 }
 0x3a6   :  { %v2463_v10 = vmax.f32 %v2430_v15, 0.0  ;;  %v2466_v3 = vmax.f32 %v2433_v44, 0.0  ;;  %v2368_v26 = vmul.f32 %v2347_v36, %v5907_v58  ;;  %v2371_v17 = vmul.f32 %v2347_v36, %v5924_v63 }
 0x3a7   :  { %v2646_v13 = vsel %vm2562_vm12, %v6498_v7, -inf  ;;  %v2647_v8 = vsel %vm81_vm3, %v2461_v55, -inf  ;;  %v2673_v24 = vsel %vm2562_vm12, %v2461_v55, -inf  ;;  %v2674_v51 = vsel %vm81_vm3, %v2464_v42, -inf }
 0x3a8   :  { %v2648_v38 = vmax.f32 %v2646_v13, %v2647_v8  ;;  %v2675_v27 = vmax.f32 %v2673_v24, %v2674_v51  ;;  %v2664_v23 = vsel %vm2581_vm13, %v6497_v50, -inf  ;;  %v2665_v58 = vsel %vm2583_vm14, %v2463_v10, -inf }
 0x3a9   :  { %v2666_v20 = vmax.f32 %v2664_v23, %v2665_v58  ;;  %v2691_v63 = vsel %vm2581_vm13, %v2463_v10, -inf  ;;  %v2692_v14 = vsel %vm2583_vm14, %v2466_v3, -inf  ;;  %v2374_v5 = vmul.f32 %v2347_v36, %v5941_v1 }
 0x3aa   :  { %v2649_v4 = vrot.slane %v2648_v38, 4  ;;  %v2676_v52 = vrot.slane %v2675_v27, 4  ;;  %v2693_v46 = vmax.f32 %v2691_v63, %v2692_v14  ;;  %v2377_v9 = vmul.f32 %v2347_v36, %v5958_v45 }
 0x3ab   :  { %v2667_v15 = vrot.slane %v2666_v20, 4  ;;  %v2401_v44 = vadd.f32 %v2392_v47, %v2356_v49  ;;  %v2404_v55 = vadd.f32 %v2392_v47, %v2359_v41  ;;  %v2407_v42 = vadd.f32 %v2392_v47, %v2362_v28 }
 0x3ac   :  { %v2650_v13 = vmax.f32 %v2648_v38, %v2649_v4  ;;  %v2677_v8 = vmax.f32 %v2675_v27, %v2676_v52  ;;  %v2694_v24 = vrot.slane %v2693_v46, 4  ;;  %v2410_v51 = vadd.f32 %v2392_v47, %v2365_v0 }
 0x3ad   :  { %v2668_v23 = vmax.f32 %v2666_v20, %v2667_v15  ;;  %v2413_v58 = vadd.f32 %v2392_v47, %v2368_v26  ;;  %v2416_v10 = vadd.f32 %v2392_v47, %v2371_v17  ;;  %v2419_v43 = vadd.f32 %v2392_v47, %v2374_v5 }
 0x3ae   :  { %v2651_v3 = vrot.slane %v2650_v13, 2  ;;  %v2678_v50 = vrot.slane %v2677_v8, 2  ;;  %v2695_v1 = vmax.f32 %v2693_v46, %v2694_v24  ;;  %v2422_v7 = vadd.f32 %v2392_v47, %v2377_v9 }
 0x3af   :  { %v2669_v33 = vrot.slane %v2668_v23, 2  ;;  %v2434_v63 = vmax.f32 %v2401_v44, 0.0  ;;  %v2437_v14 = vmax.f32 %v2404_v55, 0.0  ;;  %v2440_v45 = vmax.f32 %v2407_v42, 0.0 }
 0x3b0   :  { %v2652_v36 = vmax.f32 %v2650_v13, %v2651_v3  ;;  %v2679_v49 = vmax.f32 %v2677_v8, %v2678_v50  ;;  %v2696_v41 = vrot.slane %v2695_v1, 2  ;;  %v2443_v28 = vmax.f32 %v2410_v51, 0.0 }
 0x3b1   :  { %v2670_v38 = vmax.f32 %v2668_v23, %v2669_v33  ;;  %v2446_v27 = vmax.f32 %v2413_v58, 0.0  ;;  %v2449_v4 = vmax.f32 %v2416_v10, 0.0  ;;  %v2452_v0 = vmax.f32 %v2419_v43, 0.0 }
 0x3b2   :  { %v2653_v20 = vrot.slane %v2652_v36, 1  ;;  %v2680_v26 = vrot.slane %v2679_v49, 1  ;;  %v2697_v17 = vmax.f32 %v2695_v1, %v2696_v41  ;;  %v2455_v5 = vmax.f32 %v2422_v7, 0.0 }
 0x3b3   :  { %v2671_v52 = vrot.slane %v2670_v38, 1  ;;  %v2467_v15 = vrot.slane %v2434_v63, 4  ;;  %v2486_v46 = vrot.slane %v2437_v14, 4  ;;  %v2505_v47 = vrot.slane %v2440_v45, 4 }
 0x3b4   :  { %v2654_v9 = vmax.f32 %v2652_v36, %v2653_v20  ;;  %v2681_v44 = vmax.f32 %v2679_v49, %v2680_v26  ;;  %v2698_v55 = vrot.slane %v2697_v17, 1  ;;  %v2524_v42 = vrot.slane %v2443_v28, 4 }
 0x3b5   :  { %v2672_v13 = vmax.f32 %v2670_v38, %v2671_v52  ;;  %v2468_v50 = vmax.f32 %v2434_v63, %v2467_v15  ;;  %v2487_v8 = vmax.f32 %v2437_v14, %v2486_v46  ;;  %v2506_v24 = vmax.f32 %v2440_v45, %v2505_v47 }
 0x3b6   :  { %v6123_v33 = vsel %vm1967_vm10, %v2654_v9, %v2681_v44  ;;  %v2699_v43 = vmax.f32 %v2697_v17, %v2698_v55  ;;  %v2525_v51 = vmax.f32 %v2443_v28, %v2524_v42  ;;  %v2543_v23 = vrot.slane %v2446_v27, 4 }
 0x3b7   :  { %2736 = vrot.lane.b32.xlu1 %v6123_v33, %s4357_s4  ;;  %2728 = vrot.lane.b32.xlu0 %v6123_v33, %s4358_s5  ;;  %v2469_v7 = vrot.slane %v2468_v50, 2  ;;  %v2488_v58 = vrot.slane %v2487_v8, 2  ;;  %v2507_v10 = vrot.slane %v2506_v24, 2  ;;  %v2563_v3 = vsel %vm2562_vm12, %v2449_v4, -inf }
 0x3b8   :  { %v6131_v1 = vsel %vm1967_vm10, %v2672_v13, %v2699_v43  ;;  %v2526_v63 = vrot.slane %v2525_v51, 2  ;;  %v2544_v14 = vmax.f32 %v2446_v27, %v2543_v23  ;;  %v2564_v45 = vsel %vm81_vm3, %v2452_v0, -inf }
 0x3b9   :  { %v2470_v36 = vmax.f32 %v2468_v50, %v2469_v7  ;;  %v2489_v49 = vmax.f32 %v2487_v8, %v2488_v58  ;;  %v2508_v41 = vmax.f32 %v2506_v24, %v2507_v10  ;;  %v2565_v28 = vmax.f32 %v2563_v3, %v2564_v45 }
 0x3ba   :  { %v2527_v38 = vmax.f32 %v2525_v51, %v2526_v63  ;;  %v2545_v20 = vrot.slane %v2544_v14, 2  ;;  %v2592_v26 = vsel %vm2562_vm12, %v2452_v0, -inf  ;;  %v2593_v17 = vsel %vm81_vm3, %v2455_v5, -inf }
 0x3bb   :  { %2844 = vrot.lane.b32.xlu1 %v6131_v1, %s4358_s5  ;;  %v2471_v4 = vrot.slane %v2470_v36, 1  ;;  %v2490_v52 = vrot.slane %v2489_v49, 1  ;;  %v2509_v15 = vrot.slane %v2508_v41, 1  ;;  %v2566_v46 = vrot.slane %v2565_v28, 4 }
 0x3bc   :  { %v2528_v27 = vrot.slane %v2527_v38, 1  ;;  %v2546_v47 = vmax.f32 %v2544_v14, %v2545_v20  ;;  %v2594_v9 = vmax.f32 %v2592_v26, %v2593_v17  ;;  %v2619_v44 = vsel %vm2562_vm12, %v2455_v5, -inf }
 0x3bd   :  { %v2472_v55 = vmax.f32 %v2470_v36, %v2471_v4  ;;  %v2491_v42 = vmax.f32 %v2489_v49, %v2490_v52  ;;  %v2510_v13 = vmax.f32 %v2508_v41, %v2509_v15  ;;  %v2567_v50 = vmax.f32 %v2565_v28, %v2566_v46 }
 0x3be   :  { %v2529_v8 = vmax.f32 %v2527_v38, %v2528_v27  ;;  %v2547_v0 = vrot.slane %v2546_v47, 1  ;;  %v2595_v24 = vrot.slane %v2594_v9, 4  ;;  %v6502_v43 = vmax.f32 %v6095_v48, 0.0 }
 0x3bf   :  { %v2568_v23 = vrot.slane %v2567_v50, 2  ;;  %v2700_v58 = vsel %vm1967_vm10, %v2472_v55, %v2491_v42  ;;  %2744 = vrot.lane.b32.xlu1 %v6123_v33, %s4359_s25  ;;  %v2357_v5 = vmul.f32 %v6079_v16, %v5841_v39  ;;  %v2360_v48 = vmul.f32 %v6079_v16, %v5861_v25 }
 0x3c0   :  { %v2620_v51 = vsel %vm81_vm3, %v6502_v43, -inf  ;;  %v2548_v10 = vmax.f32 %v2546_v47, %v2547_v0  ;;  %v2596_v3 = vmax.f32 %v2594_v9, %v2595_v24  ;;  %v2703_v63 = vsel %vm1388_vm5, %v2700_v58, %v2510_v13 }
 0x3c1   :  { %v2621_v7 = vmax.f32 %v2619_v44, %v2620_v51  ;;  %v2569_v14 = vmax.f32 %v2567_v50, %v2568_v23  ;;  %v2706_v36 = vsel %vm932_vm2, %v2703_v63, %v2529_v8  ;;  %v2363_v49 = vmul.f32 %v6079_v16, %v5882_v29 }
 0x3c2   :  { %v2597_v41 = vrot.slane %v2596_v3, 2  ;;  %v2709_v28 = vsel %vm222_vm4, %v2706_v36, %v2548_v10  ;;  %v2366_v39 = vmul.f32 %v6079_v16, %v5899_v30  ;;  %v2369_v38 = vmul.f32 %v6079_v16, %v5916_v34 }
 0x3c3   :  { %v2622_v45 = vrot.slane %v2621_v7, 4  ;;  %v2570_v20 = vrot.slane %v2569_v14, 1  ;;  %2852 = vrot.lane.b32.xlu1 %v6131_v1, %s4357_s4  ;;  %v2372_v25 = vmul.f32 %v6079_v16, %v5933_v53  ;;  %v2375_v29 = vmul.f32 %v6079_v16, %v5950_v18 }
 0x3c4   :  { %v2598_v17 = vmax.f32 %v2596_v3, %v2597_v41  ;;  %v2378_v4 = vmul.f32 %v6079_v16, %v5967_v32  ;;  %v2381_v30 = vmul.f32 %v6079_v16, %v5984_v62  ;;  %v2402_v34 = vadd.f32 %v6082_v21, %v2357_v5 }
 0x3c5   :  { %v2623_v26 = vmax.f32 %v2621_v7, %v2622_v45  ;;  %v2571_v52 = vmax.f32 %v2569_v14, %v2570_v20  ;;  %v2405_v46 = vadd.f32 %v6082_v21, %v2360_v48  ;;  %v2408_v27 = vadd.f32 %v6082_v21, %v2363_v49 }
 0x3c6   :  { %v2599_v47 = vrot.slane %v2598_v17, 1  ;;  %v2411_v53 = vadd.f32 %v6082_v21, %v2366_v39  ;;  %v2414_v18 = vadd.f32 %v6082_v21, %v2369_v38  ;;  %v2417_v9 = vadd.f32 %v6082_v21, %v2372_v25 }
 0x3c7   :  { %v2624_v15 = vrot.slane %v2623_v26, 2  ;;  %v2712_v32 = vsel %vm81_vm3, %v2709_v28, %v2571_v52  ;;  %2752 = vrot.lane.b32.xlu1 %v6123_v33, %s4360_s26  ;;  %v2420_v62 = vadd.f32 %v6082_v21, %v2375_v29  ;;  %v2423_v55 = vadd.f32 %v6082_v21, %v2378_v4 }
 0x3c8   :  { %v2600_v42 = vmax.f32 %v2598_v17, %v2599_v47  ;;  %v6180_v13 = vadd.f32 %v6082_v21, %v2381_v30  ;;  %v2435_v50 = vmax.f32 %v2402_v34, 0.0  ;;  %v2438_v8 = vmax.f32 %v2405_v46, 0.0 }
 0x3c9   :  { %v2625_v44 = vmax.f32 %v2623_v26, %v2624_v15  ;;  %v2441_v24 = vmax.f32 %v2408_v27, 0.0  ;;  %v2444_v43 = vmax.f32 %v2411_v53, 0.0  ;;  %v2447_v51 = vmax.f32 %v2414_v18, 0.0 }
 0x3ca   :  { %v2715_v23 = vsel %vm898_vm6, %v2712_v32, %v2600_v42  ;;  %v2450_v7 = vmax.f32 %v2417_v9, 0.0  ;;  %v2453_v58 = vmax.f32 %v2420_v62, 0.0  ;;  %v2456_v5 = vmax.f32 %v2423_v55, 0.0 }
 0x3cb   :  { %v2626_v0 = vrot.slane %v2625_v44, 1  ;;  %2860 = vrot.lane.b32.xlu1 %v6131_v1, %s4359_s25  ;;  %v2459_v3 = vmax.f32 %v6180_v13, 0.0  ;;  %v2473_v63 = vrot.slane %v2435_v50, 4  ;;  %v2492_v48 = vrot.slane %v2438_v8, 4 }
 0x3cc   :  { %v2511_v14 = vrot.slane %v2441_v24, 4  ;;  %v2530_v45 = vrot.slane %v2444_v43, 4  ;;  %v2549_v36 = vrot.slane %v2447_v51, 4  ;;  %v2572_v49 = vsel %vm2562_vm12, %v2450_v7, -inf }
 0x3cd   :  { %v2627_v10 = vmax.f32 %v2625_v44, %v2626_v0  ;;  %v2474_v28 = vmax.f32 %v2435_v50, %v2473_v63  ;;  %v2493_v39 = vmax.f32 %v2438_v8, %v2492_v48  ;;  %v2573_v38 = vsel %vm81_vm3, %v2453_v58, -inf }
 0x3ce   :  { %v2512_v20 = vmax.f32 %v2441_v24, %v2511_v14  ;;  %v2531_v26 = vmax.f32 %v2444_v43, %v2530_v45  ;;  %v2550_v25 = vmax.f32 %v2447_v51, %v2549_v36  ;;  %v2574_v29 = vmax.f32 %v2572_v49, %v2573_v38 }
 0x3cf   :  { %v6188_v41 = vsel %vm188_vm0, %v2715_v23, %v2627_v10  ;;  %2760 = vrot.lane.b32.xlu1 %v6123_v33, %s4361_s27  ;;  %v2475_v17 = vrot.slane %v2474_v28, 2  ;;  %v2494_v4 = vrot.slane %v2493_v39, 2  ;;  %v2601_v30 = vsel %vm2562_vm12, %v2453_v58, -inf }
 0x3d0   :  { %2726 = vrot.lane.b32.xlu0 %v6188_v41, %s4358_s5  ;;  %v2602_v34 = vsel %vm81_vm3, %v2456_v5, -inf  ;;  %v2513_v52 = vrot.slane %v2512_v20, 2  ;;  %v2532_v15 = vrot.slane %v2531_v26, 2  ;;  %v2551_v46 = vrot.slane %v2550_v25, 2 }
 0x3d1   :  { %v2575_v27 = vrot.slane %v2574_v29, 4  ;;  %v2476_v47 = vmax.f32 %v2474_v28, %v2475_v17  ;;  %v2495_v53 = vmax.f32 %v2493_v39, %v2494_v4  ;;  %v2603_v18 = vmax.f32 %v2601_v30, %v2602_v34 }
 0x3d2   :  { %v2628_v9 = vsel %vm2562_vm12, %v2456_v5, -inf  ;;  %v2514_v44 = vmax.f32 %v2512_v20, %v2513_v52  ;;  %v2533_v32 = vmax.f32 %v2531_v26, %v2532_v15  ;;  %v2552_v62 = vmax.f32 %v2550_v25, %v2551_v46 }
 0x3d3   :  { %v2576_v55 = vmax.f32 %v2574_v29, %v2575_v27  ;;  %2868 = vrot.lane.b32.xlu1 %v6131_v1, %s4360_s26  ;;  %v2477_v42 = vrot.slane %v2476_v47, 1  ;;  %v2496_v50 = vrot.slane %v2495_v53, 1  ;;  %v2604_v8 = vrot.slane %v2603_v18, 4 }
 0x3d4   :  { %2734 = vrot.lane.b32.xlu0 %v6188_v41, %s4357_s4  ;;  %v2629_v0 = vsel %vm81_vm3, %v2459_v3, -inf  ;;  %v2515_v24 = vrot.slane %v2514_v44, 1  ;;  %v2534_v43 = vrot.slane %v2533_v32, 1  ;;  %v2553_v51 = vrot.slane %v2552_v62, 1 }
 0x3d5   :  { %v2577_v23 = vrot.slane %v2576_v55, 2  ;;  %v2478_v7 = vmax.f32 %v2476_v47, %v2477_v42  ;;  %v2497_v58 = vmax.f32 %v2495_v53, %v2496_v50  ;;  %v2605_v5 = vmax.f32 %v2603_v18, %v2604_v8 }
 0x3d6   :  { %v2630_v10 = vmax.f32 %v2628_v9, %v2629_v0  ;;  %v2516_v63 = vmax.f32 %v2514_v44, %v2515_v24  ;;  %v2535_v48 = vmax.f32 %v2533_v32, %v2534_v43  ;;  %v2554_v14 = vmax.f32 %v2552_v62, %v2553_v51 }
 0x3d7   :  { %v2578_v45 = vmax.f32 %v2576_v55, %v2577_v23  ;;  %2768 = vrot.lane.b32.xlu1 %v6123_v33, %s4362_s28  ;;  %v2606_v36 = vrot.slane %v2605_v5, 2  ;;  %v2701_v28 = vsel %vm1967_vm10, %v2478_v7, %v2497_v58  ;;  %v2358_v39 = vmul.f32 %v6072_v2, %v5837_v37 }
 0x3d8   :  { %2742 = vrot.lane.b32.xlu0 %v6188_v41, %s4359_s25  ;;  %v2631_v49 = vrot.slane %v2630_v10, 4  ;;  %v2704_v20 = vsel %vm1388_vm5, %v2701_v28, %v2516_v63  ;;  %v2361_v26 = vmul.f32 %v6072_v2, %v5849_v59  ;;  %v2364_v25 = vmul.f32 %v6072_v2, %v5871_v6 }
 0x3d9   :  { %v2579_v38 = vrot.slane %v2578_v45, 1  ;;  %v2607_v29 = vmax.f32 %v2605_v5, %v2606_v36  ;;  %v2707_v4 = vsel %vm932_vm2, %v2704_v20, %v2535_v48  ;;  %v2367_v30 = vmul.f32 %v6072_v2, %v5888_v19 }
 0x3da   :  { %v2632_v17 = vmax.f32 %v2630_v10, %v2631_v49  ;;  %v2710_v34 = vsel %vm222_vm4, %v2707_v4, %v2554_v14  ;;  %v2370_v52 = vmul.f32 %v6072_v2, %v5905_v54  ;;  %v2373_v59 = vmul.f32 %v6072_v2, %v5922_v57 }
 0x3db   :  { %v2580_v37 = vmax.f32 %v2578_v45, %v2579_v38  ;;  %v2608_v6 = vrot.slane %v2607_v29, 1  ;;  %2876 = vrot.lane.b32.xlu1 %v6131_v1, %s4361_s27  ;;  %v2376_v19 = vmul.f32 %v6072_v2, %v5939_v11  ;;  %v2379_v46 = vmul.f32 %v6072_v2, %v5956_v40 }
 0x3dc   :  { %2750 = vrot.lane.b32.xlu0 %v6188_v41, %s4360_s26  ;;  %v2633_v15 = vrot.slane %v2632_v17, 2  ;;  %v2403_v47 = vadd.f32 %v6076_v31, %v2358_v39  ;;  %v2406_v54 = vadd.f32 %v6076_v31, %v2361_v26  ;;  %v2409_v53 = vadd.f32 %v6076_v31, %v2364_v25 }
 0x3dd   :  { %v2713_v27 = vsel %vm81_vm3, %v2710_v34, %v2580_v37  ;;  %v2609_v57 = vmax.f32 %v2607_v29, %v2608_v6  ;;  %v2412_v9 = vadd.f32 %v6076_v31, %v2367_v30  ;;  %v2415_v44 = vadd.f32 %v6076_v31, %v2370_v52 }
 0x3de   :  { %v2634_v18 = vmax.f32 %v2632_v17, %v2633_v15  ;;  %v2418_v11 = vadd.f32 %v6076_v31, %v2373_v59  ;;  %v2421_v40 = vadd.f32 %v6076_v31, %v2376_v19  ;;  %v2424_v2 = vadd.f32 %v6076_v31, %v2379_v46 }
 0x3df   :  { %v2436_v32 = vmax.f32 %v2403_v47, 0.0  ;;  %v2716_v55 = vsel %vm898_vm6, %v2713_v27, %v2609_v57  ;;  %v2439_v42 = vmax.f32 %v2406_v54, 0.0  ;;  %v2442_v50 = vmax.f32 %v2409_v53, 0.0 }
 0x3e0   :  { %2758 = vrot.lane.b32.xlu0 %v6188_v41, %s4361_s27  ;;  %v2635_v62 = vrot.slane %v2634_v18, 1  ;;  %v2445_v8 = vmax.f32 %v2412_v9, 0.0  ;;  %v2448_v0 = vmax.f32 %v2415_v44, 0.0  ;;  %v2451_v24 = vmax.f32 %v2418_v11, 0.0 }
 0x3e1   :  { %v2454_v43 = vmax.f32 %v2421_v40, 0.0  ;;  %v2457_v23 = vmax.f32 %v2424_v2, 0.0  ;;  %v2479_v7 = vsel %vm1835_vm8, %v2436_v32, -inf  ;;  %v2498_v58 = vsel %vm1835_vm8, %v2439_v42, -inf }
 0x3e2   :  { %v2636_v51 = vmax.f32 %v2634_v18, %v2635_v62  ;;  %v2480_v31 = vrot.slane %v2479_v7, 4  ;;  %v2499_v5 = vrot.slane %v2498_v58, 4  ;;  %v2517_v10 = vsel %vm1835_vm8, %v2442_v50, -inf }
 0x3e3   :  { %v2536_v63 = vsel %vm1835_vm8, %v2445_v8, -inf  ;;  %v2518_v14 = vrot.slane %v2517_v10, 4  ;;  %v2555_v36 = vsel %vm1835_vm8, %v2448_v0, -inf  ;;  %v2582_v38 = vsel %vm2581_vm13, %v2451_v24, -inf }
 0x3e4   :  { %2766 = vrot.lane.b32.xlu0 %v6188_v41, %s4362_s28  ;;  %v6252_v48 = vsel %vm188_vm0, %v2716_v55, %v2636_v51  ;;  %v2537_v45 = vrot.slane %v2536_v63, 4  ;;  %v2481_v49 = vmax.f32 %v2479_v7, %v2480_v31  ;;  %v2500_v28 = vmax.f32 %v2498_v58, %v2499_v5 }
 0x3e5   :  { %v2556_v39 = vrot.slane %v2555_v36, 4  ;;  %v2519_v20 = vmax.f32 %v2517_v10, %v2518_v14  ;;  %v2584_v25 = vsel %vm2583_vm14, %v2454_v43, -inf  ;;  %v2610_v29 = vsel %vm2581_vm13, %v2454_v43, -inf }
 0x3e6   :  { %v2538_v26 = vmax.f32 %v2536_v63, %v2537_v45  ;;  %v2482_v17 = vrot.slane %v2481_v49, 2  ;;  %v2501_v4 = vrot.slane %v2500_v28, 2  ;;  %v2585_v37 = vmax.f32 %v2582_v38, %v2584_v25 }
 0x3e7   :  { %v2557_v30 = vmax.f32 %v2555_v36, %v2556_v39  ;;  %v2520_v34 = vrot.slane %v2519_v20, 2  ;;  %v2611_v59 = vsel %vm2583_vm14, %v2457_v23, -inf  ;;  %v2637_v6 = vsel %vm2581_vm13, %v2457_v23, -inf }
 0x3e8   :  { %2774 = vrot.lane.b32.xlu0 %v6188_v41, %s4363_s1  ;;  %v2539_v52 = vrot.slane %v2538_v26, 2  ;;  %v2483_v15 = vmax.f32 %v2481_v49, %v2482_v17  ;;  %v2502_v19 = vmax.f32 %v2500_v28, %v2501_v4  ;;  %v2586_v27 = vrot.slane %v2585_v37, 4 }
 0x3e9   :  { %v2558_v46 = vrot.slane %v2557_v30, 2  ;;  %v2521_v47 = vmax.f32 %v2519_v20, %v2520_v34  ;;  %v2612_v53 = vmax.f32 %v2610_v29, %v2611_v59  ;;  %v6503_v57 = vmax.f32 %v6098_v12, 0.0 }
 0x3ea   :  { %v2540_v54 = vmax.f32 %v2538_v26, %v2539_v52  ;;  %v2484_v9 = vrot.slane %v2483_v15, 1  ;;  %v2503_v44 = vrot.slane %v2502_v19, 1  ;;  %v2587_v40 = vmax.f32 %v2585_v37, %v2586_v27 }
 0x3eb   :  { %v2638_v18 = vsel %vm2583_vm14, %v6503_v57, -inf  ;;  %v2559_v11 = vmax.f32 %v2557_v30, %v2558_v46  ;;  %v2522_v2 = vrot.slane %v2521_v47, 1  ;;  %v2613_v62 = vrot.slane %v2612_v53, 4 }
 0x3ec   :  { %2792 = vrot.lane.b32.xlu0 %v6252_v48, %s4357_s4  ;;  %v2541_v32 = vrot.slane %v2540_v54, 1  ;;  %v2639_v55 = vmax.f32 %v2637_v6, %v2638_v18  ;;  %v2485_v42 = vmax.f32 %v2483_v15, %v2484_v9  ;;  %v2504_v50 = vmax.f32 %v2502_v19, %v2503_v44 }
 0x3ed   :  { %v2560_v8 = vrot.slane %v2559_v11, 1  ;;  %v2588_v0 = vrot.slane %v2587_v40, 2  ;;  %v2523_v24 = vmax.f32 %v2521_v47, %v2522_v2  ;;  %v2614_v12 = vmax.f32 %v2612_v53, %v2613_v62 }
 0x3ee   :  { %v2542_v43 = vmax.f32 %v2540_v54, %v2541_v32  ;;  %v2640_v51 = vrot.slane %v2639_v55, 4  ;;  %v2702_v58 = vsel %vm1967_vm10, %v2485_v42, %v2504_v50  ;;  %v2384_v31 = vmul.f32 %v6079_v16, %v6001_v35 }
 0x3ef   :  { %v2561_v23 = vmax.f32 %v2559_v11, %v2560_v8  ;;  %v2589_v7 = vmax.f32 %v2587_v40, %v2588_v0  ;;  %v2615_v5 = vrot.slane %v2614_v12, 2  ;;  %v2705_v63 = vsel %vm1388_vm5, %v2702_v58, %v2523_v24 }
 0x3f0   :  { %v2641_v10 = vmax.f32 %v2639_v55, %v2640_v51  ;;  %v2387_v14 = vmul.f32 %v6079_v16, %v6018_v61  ;;  %v2708_v36 = vsel %vm932_vm2, %v2705_v63, %v2542_v43  ;;  %v2429_v49 = vadd.f32 %v6082_v21, %v2384_v31 }
 0x3f1   :  { %v2590_v45 = vrot.slane %v2589_v7, 1  ;;  %v2616_v28 = vmax.f32 %v2614_v12, %v2615_v5  ;;  %v2711_v38 = vsel %vm222_vm4, %v2708_v36, %v2561_v23  ;;  %v2655_v25 = vsel %vm2562_vm12, %v2459_v3, -inf }
 0x3f2   :  { %v2642_v39 = vrot.slane %v2641_v10, 2  ;;  %v2432_v20 = vadd.f32 %v6082_v21, %v2387_v14  ;;  %v2462_v35 = vmax.f32 %v2429_v49, 0.0  ;;  %vm2935_vm2 = vcmask 261120  }
 0x3f3   :  { %v2591_v26 = vmax.f32 %v2589_v7, %v2590_v45  ;;  %v2617_v29 = vrot.slane %v2616_v28, 1  ;;  %vm2967_vm5 = vcmask 654336  }
 0x3f4   :  { %v2643_v17 = vmax.f32 %v2641_v10, %v2642_v39  ;;  %v2465_v61 = vmax.f32 %v2432_v20, 0.0  ;;  %v2656_v4 = vsel %vm81_vm3, %v2462_v35, -inf  ;;  %v2682_v30 = vsel %vm2562_vm12, %v2462_v35, -inf }
 0x3f5   :  { %v2714_v16 = vsel %vm81_vm3, %v2711_v38, %v2591_v26  ;;  %v2618_v37 = vmax.f32 %v2616_v28, %v2617_v29  ;;  %v2657_v52 = vmax.f32 %v2655_v25, %v2656_v4 }
 0x3f6   :  { %v2644_v34 = vrot.slane %v2643_v17, 1  ;;  %v2683_v21 = vsel %vm81_vm3, %v2465_v61, -inf  ;;  %vm2955_vm3 = vcmask 326656  }
 0x3f7   :  { %v2684_v59 = vmax.f32 %v2682_v30, %v2683_v21  ;;  %v2717_v13 = vsel %vm898_vm6, %v2714_v16, %v2618_v37  ;;  %v2658_v15 = vrot.slane %v2657_v52, 4 }
 0x3f8   :  { %v2645_v6 = vmax.f32 %v2643_v17, %v2644_v34 }
 0x3f9   :  { %v2685_v3 = vrot.slane %v2684_v59, 4  ;;  %v2659_v46 = vmax.f32 %v2657_v52, %v2658_v15 }
 0x3fa   :  { %v6286_v19 = vsel %vm188_vm0, %v2717_v13, %v2645_v6 }
 0x3fb   :  { %2842 = vrot.lane.b32.xlu0 %v6286_v19, %s4358_s5  ;;  %v2686_v27 = vmax.f32 %v2684_v59, %v2685_v3  ;;  %v2660_v47 = vrot.slane %v2659_v46, 2 }
 0x3fd   :  { %v2687_v54 = vrot.slane %v2686_v27, 2  ;;  %v2661_v53 = vmax.f32 %v2659_v46, %v2660_v47 }
 0x3ff   :  { %v2688_v57 = vmax.f32 %v2686_v27, %v2687_v54  ;;  %2800 = vrot.lane.b32.xlu0 %v6252_v48, %s4359_s25  ;;  %v2662_v18 = vrot.slane %v2661_v53, 1 }
 0x401   :  { %v2689_v9 = vrot.slane %v2688_v57, 1  ;;  %v2663_v44 = vmax.f32 %v2661_v53, %v2662_v18 }
 0x403   :  { %v2690_v11 = vmax.f32 %v2688_v57, %v2689_v9  ;;  %2850 = vrot.lane.b32.xlu0 %v6286_v19, %s4357_s4 }
 0x405   :  { %v6295_v40 = vsel %vm1967_vm10, %v2663_v44, %v2690_v11 }
 0x406   :  { %2786 = vrot.lane.b32.xlu1 %v6295_v40, %s4358_s5 }
 0x407   :  { %2808 = vrot.lane.b32.xlu0 %v6252_v48, %s4360_s26 }
 0x40a   :  { %2794 = vrot.lane.b32.xlu1 %v6295_v40, %s4357_s4 }
 0x40b   :  { %2858 = vrot.lane.b32.xlu0 %v6286_v19, %s4359_s25 }
 0x40e   :  { %2802 = vrot.lane.b32.xlu1 %v6295_v40, %s4359_s25 }
 0x40f   :  { %2816 = vrot.lane.b32.xlu0 %v6252_v48, %s4361_s27 }
 0x412   :  { %2810 = vrot.lane.b32.xlu1 %v6295_v40, %s4360_s26 }
 0x413   :  { %2866 = vrot.lane.b32.xlu0 %v6286_v19, %s4360_s26 }
 0x416   :  { %2818 = vrot.lane.b32.xlu1 %v6295_v40, %s4361_s27 }
 0x417   :  { %2824 = vrot.lane.b32.xlu0 %v6252_v48, %s4362_s28 }
 0x41a   :  { %2826 = vrot.lane.b32.xlu1 %v6295_v40, %s4362_s28 }
 0x41b   :  { %2874 = vrot.lane.b32.xlu0 %v6286_v19, %s4361_s27 }
 0x41e   :  { %2784 = vrot.lane.b32.xlu1 %v6252_v48, %s4358_s5 }
 0x41f   :  { %2832 = vrot.lane.b32.xlu0 %v6252_v48, %s4363_s1 }
 0x422   :  { %2776 = vrot.lane.b32.xlu1 %v6123_v33, %s4363_s1 }
 0x423   :  { %2882 = vrot.lane.b32.xlu0 %v6286_v19, %s4362_s28 }
 0x426   :  { %2834 = vrot.lane.b32.xlu1 %v6295_v40, %s4363_s1 }
 0x427   :  { %2890 = vrot.lane.b32.xlu0 %v6286_v19, %s4363_s1 }
 0x429   :  { %v2729_v2 = vpop.permute.xlu0 %2728  ;;  %v2737_v32 = vpop.permute.xlu1 %2736 }
 0x42a   :  { %2884 = vrot.lane.b32.xlu1 %v6131_v1, %s4362_s28  ;;  %v2733_v37 = vmax.f32 %v6123_v33, %v2729_v2 }
 0x42c   :  { %v2741_v21 = vmax.f32 %v2733_v37, %v2737_v32  ;;  %v2966_v37 = vld [vmem:[%s6485_s6 + $0x48] sm:$0xff] }
 0x42d   :  { %v2845_v55 = vpop.permute.xlu1 %2844 }
 0x42e   :  { %2892 = vrot.lane.b32.xlu1 %v6131_v1, %s4363_s1  ;;  %v2849_v33 = vmax.f32 %v6131_v1, %v2845_v55 }
 0x431   :  { %v2745_v50 = vpop.permute.xlu1 %2744 }
 0x432   :  { %v2749_v6 = vmax.f32 %v2741_v21, %v2745_v50 }
 0x435   :  { %v2853_v43 = vpop.permute.xlu1 %2852 }
 0x439   :  { %v2753_v7 = vpop.permute.xlu1 %2752 }
 0x43a   :  { %v2757_v15 = vmax.f32 %v2749_v6, %v2753_v7 }
 0x43d   :  { %v2861_v14 = vpop.permute.xlu1 %2860 }
 0x441   :  { %v2761_v36 = vpop.permute.xlu1 %2760 }
 0x442   :  { %v2727_v62 = vpop.permute.xlu0 %2726  ;;  %v2765_v47 = vmax.f32 %v2757_v15, %v2761_v36 }
 0x443   :  { %v2732_v24 = vmax.f32 %v6188_v41, %v2727_v62 }
 0x445   :  { %v2869_v49 = vpop.permute.xlu1 %2868 }
 0x446   :  { %v2735_v42 = vpop.permute.xlu0 %2734 }
 0x447   :  { %v2740_v12 = vmax.f32 %v2732_v24, %v2735_v42 }
 0x449   :  { %v2769_v41 = vpop.permute.xlu1 %2768 }
 0x44a   :  { %v2743_v8 = vpop.permute.xlu0 %2742  ;;  %v2773_v57 = vmax.f32 %v2765_v47, %v2769_v41 }
 0x44b   :  { %v2748_v23 = vmax.f32 %v2740_v12, %v2743_v8 }
 0x44d   :  { %v2877_v20 = vpop.permute.xlu1 %2876 }
 0x44e   :  { %v2751_v0 = vpop.permute.xlu0 %2750 }
 0x44f   :  { %v2756_v58 = vmax.f32 %v2748_v23, %v2751_v0 }
 0x452   :  { %v2759_v51 = vpop.permute.xlu0 %2758 }
 0x453   :  { %v2764_v5 = vmax.f32 %v2756_v58, %v2759_v51 }
 0x456   :  { %v2767_v31 = vpop.permute.xlu0 %2766 }
 0x457   :  { %v2772_v10 = vmax.f32 %v2764_v5, %v2767_v31 }
 0x45a   :  { %v2775_v63 = vpop.permute.xlu0 %2774 }
 0x45b   :  { %v6338_v45 = vmax.f32 %v2772_v10, %v2775_v63  ;;  %v2958_v63 = vld [vmem:[%s6485_s6 + $0x8] sm:$0xff] }
 0x45d   :  { %2900 = vrot.lane.b32.xlu0 %v6338_v45, %s4363_s1 }
 0x45e   :  { %v2793_v28 = vpop.permute.xlu0 %2792 }
 0x46d   :  { %v2843_v39 = vpop.permute.xlu0 %2842 }
 0x471   :  { %v2801_v38 = vpop.permute.xlu0 %2800 }
 0x475   :  { %v2851_v26 = vpop.permute.xlu0 %2850 }
 0x478   :  { %v2787_v35 = vpop.permute.xlu1 %2786 }
 0x479   :  { %v2809_v25 = vpop.permute.xlu0 %2808  ;;  %v2791_v13 = vmax.f32 %v6295_v40, %v2787_v35  ;;  %v2857_v40 = vmax.f32 %v2849_v33, %v2853_v43  ;;  %v2961_v35 = vld [vmem:[%s6485_s6 + $0x20] sm:$0xff] }
 0x47b   :  { %v2865_v0 = vmax.f32 %v2857_v40, %v2861_v14 }
 0x47c   :  { %v2795_v29 = vpop.permute.xlu1 %2794 }
 0x47d   :  { %v2859_v17 = vpop.permute.xlu0 %2858  ;;  %v2799_v3 = vmax.f32 %v2791_v13, %v2795_v29  ;;  %v2873_v51 = vmax.f32 %v2865_v0, %v2869_v49  ;;  %v2959_v49 = vld [vmem:[%s6485_s6 + $0x10] sm:$0xff]  ;;  %v6504_v0 = vmov 0.0  }
 0x47f   :  { %v2881_v58 = vmax.f32 %v2873_v51, %v2877_v20 }
 0x480   :  { %v2803_v61 = vpop.permute.xlu1 %2802 }
 0x481   :  { %v2817_v16 = vpop.permute.xlu0 %2816  ;;  %v2807_v54 = vmax.f32 %v2799_v3, %v2803_v61  ;;  %v2963_v61 = vld [vmem:[%s6485_s6 + $0x30] sm:$0xff] }
 0x484   :  { %v2811_v4 = vpop.permute.xlu1 %2810 }
 0x485   :  { %v2867_v30 = vpop.permute.xlu0 %2866  ;;  %v2815_v18 = vmax.f32 %v2807_v54, %v2811_v4 }
 0x488   :  { %v2819_v34 = vpop.permute.xlu1 %2818 }
 0x489   :  { %v2825_v52 = vpop.permute.xlu0 %2824  ;;  %v2823_v11 = vmax.f32 %v2815_v18, %v2819_v34 }
 0x48c   :  { %v2827_v59 = vpop.permute.xlu1 %2826 }
 0x48d   :  { %v2875_v27 = vpop.permute.xlu0 %2874  ;;  %v2831_v42 = vmax.f32 %v2823_v11, %v2827_v59 }
 0x490   :  { %v2785_v46 = vpop.permute.xlu1 %2784 }
 0x491   :  { %v2790_v53 = vmax.f32 %v6252_v48, %v2785_v46  ;;  %v2833_v62 = vpop.permute.xlu0 %2832  ;;  %v2848_v48 = vmax.f32 %v6286_v19, %v2843_v39  ;;  %v2957_v19 = vld [vmem:[%s6485_s6] sm:$0xff] }
 0x492   :  { %v4126_v36 = vpack.c.bf16 %v2958_v63, %v2957_v19 }
 0x493   :  { %v2798_v9 = vmax.f32 %v2790_v53, %v2793_v28  ;;  %v2856_v23 = vmax.f32 %v2848_v48, %v2851_v26  ;;  %v2960_v28 = vld [vmem:[%s6485_s6 + $0x18] sm:$0xff]  ;;  %v3058_v48 = vld [vmem:[%s6486_s7] sm:$0xff] }
 0x494   :  { %v2777_v44 = vpop.permute.xlu1 %2776  ;;  %4127 = vmatpush3.bf16.msra.mxu0 %v4126_v36  ;;  %v4129_v20 = vpack.c.bf16 %v2960_v28, %v2959_v49 }
 0x495   :  { %v2806_v2 = vmax.f32 %v2798_v9, %v2801_v38  ;;  %v6346_v32 = vmax.f32 %v2773_v57, %v2777_v44  ;;  %v2883_v55 = vpop.permute.xlu0 %2882  ;;  %v2864_v43 = vmax.f32 %v2856_v23, %v2859_v17  ;;  %4128 = vmatprep.subr.bf16.mxu0 %v6500_v60  ;;  %v3061_v23 = vld [vmem:[%s6486_s7 + $0x18] sm:$0xff] }
 0x497   :  { %2902 = vrot.lane.b32.xlu1 %v6346_v32, %s4363_s1  ;;  %v2814_v50 = vmax.f32 %v2806_v2, %v2809_v25  ;;  %v2872_v5 = vmax.f32 %v2864_v43, %v2867_v30  ;;  %v2962_v25 = vld [vmem:[%s6485_s6 + $0x28] sm:$0xff]  ;;  %v2965_v30 = vld [vmem:[%s6485_s6 + $0x40] sm:$0xff]  ;;  %v3064_v43 = vld [vmem:[%s6486_s7 + $0x30] sm:$0xff] }
 0x498   :  { %v2835_v8 = vpop.permute.xlu1 %2834  ;;  %4130 = vmatpush3.bf16.msra.mxu0 %v4129_v20  ;;  %v4132_v17 = vpack.c.bf16 %v2962_v25, %v2961_v35  ;;  %v4138_v34 = vpack.c.bf16 %v2966_v37, %v2965_v30 }
 0x499   :  { %v2822_v24 = vmax.f32 %v2814_v50, %v2817_v16  ;;  %v2839_v12 = vmax.f32 %v2831_v42, %v2835_v8  ;;  %v2880_v41 = vmax.f32 %v2872_v5, %v2875_v27  ;;  %v2891_v38 = vpop.permute.xlu0 %2890  ;;  %4131 = vmatprep.subr.bf16.mxu0 %v6500_v60  ;;  %v2964_v16 = vld [vmem:[%s6485_s6 + $0x38] sm:$0xff]  ;;  %s4366_s6 = smov 40  }
 0x49a   :  { %v4135_v4 = vpack.c.bf16 %v2964_v16, %v2963_v61  ;;  %v3176_v16 = vld [vmem:[%s6487_s8] sm:$0xff] }
 0x49b   :  { %v2830_v1 = vmax.f32 %v2822_v24, %v2825_v52  ;;  %2910 = vrot.lane.b32.xlu1 %v2839_v12, %s4364_s29  ;;  %v2888_v26 = vmax.f32 %v2880_v41, %v2883_v55  ;;  %v3059_v24 = vld [vmem:[%s6486_s7 + $0x8] sm:$0xff]  ;;  %v3062_v55 = vld [vmem:[%s6486_s7 + $0x20] sm:$0xff] }
 0x49c   :  { %v2885_v7 = vpop.permute.xlu1 %2884  ;;  %4133 = vmatpush3.bf16.msra.mxu0 %v4132_v17  ;;  %v4141_v51 = vpack.c.bf16 %v3059_v24, %v3058_v48  ;;  %v3292_v48 = vld [vmem:[%s6490_s11] sm:$0xff] }
 0x49d   :  { %v2838_v31 = vmax.f32 %v2830_v1, %v2833_v62  ;;  %v2889_v10 = vmax.f32 %v2881_v58, %v2885_v7  ;;  %v2896_v29 = vmax.f32 %v2888_v26, %v2891_v38  ;;  %4134 = vmatprep.subr.bf16.mxu0 %v6500_v60  ;;  %v3063_v7 = vld [vmem:[%s6486_s7 + $0x28] sm:$0xff] }
 0x49e   :  { %4142 = vmatpush3.bf16.msra.mxu1 %v4141_v51  ;;  %v4147_v58 = vpack.c.bf16 %v3063_v7, %v3062_v55 }
 0x49f   :  { %2908 = vrot.lane.b32.xlu0 %v2838_v31, %s4364_s29  ;;  %2916 = vrot.lane.b32.xlu1 %v2839_v12, %s4361_s27  ;;  %v3060_v12 = vld [vmem:[%s6486_s7 + $0x10] sm:$0xff] }
 0x4a0   :  { %v2893_v14 = vpop.permute.xlu1 %2892  ;;  %4136 = vmatpush3.bf16.msra.mxu0 %v4135_v4  ;;  %v4144_v1 = vpack.c.bf16 %v3061_v23, %v3060_v12  ;;  %4143 = vmatprep.subr.bf16.mxu1 %v6500_v60  ;;  %v3177_v4 = vld [vmem:[%s6487_s8 + $0x8] sm:$0xff] }
 0x4a1   :  { %v2897_v39 = vmax.f32 %v2889_v10, %v2893_v14  ;;  %4137 = vmatprep.subr.bf16.mxu0 %v6500_v60  ;;  %v4153_v30 = vpack.c.bf16 %v3177_v4, %v3176_v16 }
 0x4a2   :  { %4145 = vmatpush3.bf16.msra.mxu1 %v4144_v1 }
 0x4a3   :  { %2914 = vrot.lane.b32.xlu0 %v2838_v31, %s4361_s27  ;;  %2924 = vrot.lane.b32.xlu1 %v2897_v39, %s4365_s20  ;;  %v3065_v31 = vld [vmem:[%s6486_s7 + $0x38] sm:$0xff] }
 0x4a4   :  { %4139 = vmatpush3.bf16.msra.mxu0 %v4138_v34  ;;  %4146 = vmatprep.subr.bf16.mxu1 %v6500_v60  ;;  %v4150_v5 = vpack.c.bf16 %v3065_v31, %v3064_v43 }
 0x4a5   :  { %4155 = vmatprep.subr.bf16.mxu0 %v6500_v60 }
 0x4a6   :  { %4148 = vmatpush3.bf16.msra.mxu1 %v4147_v58 }
 0x4a7   :  { %2922 = vrot.lane.b32.xlu0 %v2896_v29, %s4365_s20  ;;  %4149 = vmatprep.subr.bf16.mxu1 %v6500_v60 }
 0x4aa   :  { %4151 = vmatpush3.bf16.msra.mxu1 %v4150_v5 }
 0x4ab   :  { %4152 = vmatprep.subr.bf16.mxu1 %v6500_v60 }
 0x4cf   :  { %v2901_v21 = vpop.permute.xlu0 %2900 }
 0x4d0   :  { %v2928_v47 = vsel %vm2199_vm11, %v6338_v45, %v2901_v21 }
 0x509   :  { %v2903_v52 = vpop.permute.xlu1 %2902 }
 0x50a   :  { %v2929_v15 = vsel %vm2199_vm11, %v6346_v32, %v2903_v52 }
 0x50d   :  { %v2911_v59 = vpop.permute.xlu1 %2910 }
 0x50e   :  { %v2931_v27 = vsel %vm310_vm1, %v2929_v15, %v2911_v59 }
 0x511   :  { %v2909_v6 = vpop.permute.xlu0 %2908  ;;  %v2917_v13 = vpop.permute.xlu1 %2916 }
 0x512   :  { %v2934_v54 = vsel %vm2932_vm15, %v2931_v27, %v2917_v13  ;;  %v2930_v53 = vsel %vm310_vm1, %v2928_v47, %v2909_v6  ;;  %v3145_v27 = vld [vmem:[%s6488_s9] sm:$0x1] }
 0x515   :  { %v2915_v3 = vpop.permute.xlu0 %2914  ;;  %v2925_v46 = vpop.permute.xlu1 %2924 }
 0x516   :  { %v2937_v57 = vsel %vm2935_vm2, %v2934_v54, %v2925_v46  ;;  %v2933_v18 = vsel %vm2932_vm15, %v2930_v53, %v2915_v3  ;;  %v3166_v53 = vld [vmem:[%s6489_s10] sm:$0x1] }
 0x517   :  { %v2941_v33 = vrot.slane %v2937_v57, 1  ;;  %v2947_v11 = vrot.slane %v2937_v57, 2 }
 0x519   :  { %v2923_v9 = vpop.permute.xlu0 %2922 }
 0x51a   :  { %v2936_v44 = vsel %vm2935_vm2, %v2933_v18, %v2923_v9 }
 0x51b   :  { %v2940_v2 = vrot.slane %v2936_v44, 1  ;;  %v2946_v62 = vrot.slane %v2936_v44, 2 }
 0x51d   :  { %v2948_v32 = vsel %vm898_vm6, %v2946_v62, %v2947_v11  ;;  %v2942_v40 = vsel %vm188_vm0, %v2940_v2, %v2941_v33  ;;  %vm3041_vm0 = vcmask 523264   ;;  %vm3270_vm6 = vcmask 523268  }
 0x51e   :  { %v2950_v42 = vsel %vm222_vm4, %v2940_v2, %v2948_v32  ;;  %v2944_v50 = vsel %vm222_vm4, %v2936_v44, %v2942_v40  ;;  %v6505_v32 = vld [vmem:[#allocation5_spill] sm:$0xff]  ;;  %vm3262_vm4 = vcmask 519168  }
 0x51f   :  { %2952 = vrot.lane.b32.xlu0 %v2950_v42, %s4366_s6 }
 0x591   :  { %v2953_v45 = vpop.permute.xlu0 %2952 }
 0x592   :  { %v2956_v8 = vsel %vm2955_vm3, %v2944_v50, %v2953_v45 }
 0x593   :  { %3788 = vmatmul.mubr.msk.f32.vlgmr.msra.gmra.mrb[28].mxu0 %vm2967_vm5, %v2956_v8 }
 0x594   :  { %3820 = vmatprep.mubr.msk.f32.mxu0 %vm4355_vm7, %v6504_v0 }
 0x666   :  { %v3037_v10 = vpop.f32.mrb[28].mxu0 }
 0x667   :  { %v3042_v19 = vsel %vm3041_vm0, %v3037_v10, 0.0  ;;  %v3049_v63 = vmul.f32 %v3037_v10, %v3037_v10  ;;  %v3789_v14 = vpop.f32.mrb[29].mxu0 }
 0x668   :  { %v3043_v36 = vrot.slane %v3042_v19, 4 }
 0x669   :  { %v3050_v49 = vsel %vm3041_vm0, %v3049_v63, 0.0 }
 0x66a   :  { %v3044_v28 = vadd.f32 %v3043_v36, %v3042_v19  ;;  %v3051_v41 = vrot.slane %v3050_v49, 4 }
 0x66c   :  { %v3045_v39 = vrot.slane %v3044_v28, 2  ;;  %v3052_v38 = vadd.f32 %v3051_v41, %v3050_v49  ;;  %v3654_v41 = vld [vmem:[%s6491_s12] ss:$0 sm:$0xff] }
 0x66e   :  { %v3046_v20 = vadd.f32 %v3045_v39, %v3044_v28  ;;  %v3053_v26 = vrot.slane %v3052_v38, 2 }
 0x670   :  { %v3047_v35 = vrot.slane %v3046_v20, 1  ;;  %v3054_v25 = vadd.f32 %v3053_v26, %v3052_v38 }
 0x672   :  { %v3055_v29 = vrot.slane %v3054_v25, 1  ;;  %v3048_v17 = vadd.f32 %v3047_v35, %v3046_v20 }
 0x674   :  { %v3056_v60 = vadd.f32 %v3055_v29, %v3054_v25 }
 0x676   :  { %v3057_v61 = vsel %vm1967_vm10, %v3048_v17, %v3056_v60 }
 0x677   :  { %3807 = vmatmul.mubr.msk.f32.vlgmr.msra.gmra.mrb[28].mxu1 %vm3041_vm0, %v3057_v61 }
 0x678   :  { %3813 = vmatprep.mubr.msk.f32.mxu1 %vm4355_vm7, %v6504_v0  ;;  %4154 = vmatpush3.bf16.msra.mxu1 %v4153_v30  ;;  %vm3374_vm7 = vcmask 74752  }
 0x74a   :  { %v3135_v37 = vpop.f32.mrb[28].mxu1 }
 0x74b   :  { %v3139_v34 = vmul.f32 0.03125, %v3135_v37  ;;  %v3808_v52 = vpop.f32.mrb[29].mxu1 }
 0x74d   :  { %v3140_v21 = vmul.f32 %v3139_v34, %v3139_v34 }
 0x74f   :  { %v3142_v59 = vrot.slane %v3140_v21, 7 }
 0x751   :  { %v3144_v6 = vsub.f32 %v3139_v34, %v3142_v59 }
 0x753   :  { %v3146_v13 = vadd.f32 1e-05, %v3144_v6 }
 0x755   :  { %4319 = vrsqrt.f32 %v3146_v13 }
 0x75f   :  { %v4320_v15 = vpop.eup %4319 }
 0x760   :  { %v3155_v3 = vrot.slane %v4320_v15, %v6048_v56 }
 0x762   :  { %v3156_v46 = vcombine.high %v3155_v3, %v3155_v3 }
 0x764   :  { %v3163_v47 = vrot.slane %v3156_v46, %v6048_v56 }
 0x766   :  { %v3165_v54 = vmul.f32 %v3163_v47, %v3145_v27 }
 0x768   :  { %v3167_v57 = vmul.f32 %v3165_v54, %v3139_v34 }
 0x76a   :  { %v3168_v18 = vsub.f32 %v3166_v53, %v3167_v57 }
 0x76c   :  { %v3173_v9 = vrot.slane %v3168_v18, %v6058_v22 }
 0x76e   :  { %v3175_v44 = vsel %vm1967_vm10, %v3165_v54, %v3173_v9 }
 0x76f   :  { %3814 = vmatmul.mubr.msk.f32.vlgmr.msra.gmra.mrb[30].mxu1 %vm310_vm1, %v3175_v44 }
 0x842   :  { %v3247_v33 = vpop.f32.mrb[30].mxu1 }
 0x843   :  { %v3254_v11 = vrot.slane %v3247_v33, %v6058_v22  ;;  %v3815_v2 = vpop.f32.mrb[31].mxu1  ;;  %v3259_v56 = vrot.slane %v3247_v33, %v6505_v32  ;;  %v3293_v22 = vld [vmem:[%s6490_s11 + $0x8] sm:$0xff] }
 0x844   :  { %v4156_v24 = vpack.c.bf16 %v3293_v22, %v3292_v48 }
 0x845   :  { %v3255_v62 = vmul.f32 %v3254_v11, %v3037_v10 }
 0x846   :  { %4157 = vmatpush3.bf16.msra.mxu0 %v4156_v24 }
 0x847   :  { %v3260_v40 = vadd.f32 %v3259_v56, %v3255_v62 }
 0x849   :  { %v3261_v42 = vmax.f32 %v3260_v40, 0.0 }
 0x84b   :  { %v3263_v50 = vsel %vm3262_vm4, %v3261_v42, -inf  ;;  %v3271_v45 = vsel %vm3270_vm6, %v3261_v42, -inf }
 0x84c   :  { %v3264_v8 = vrot.slane %v3263_v50, 4  ;;  %v3272_v0 = vrot.slane %v3271_v45, 4 }
 0x84e   :  { %v3265_v12 = vmax.f32 %v3263_v50, %v3264_v8  ;;  %v3273_v51 = vmax.f32 %v3271_v45, %v3272_v0 }
 0x850   :  { %v3266_v23 = vrot.slane %v3265_v12, 2  ;;  %v3274_v1 = vrot.slane %v3273_v51, 2 }
 0x852   :  { %v3267_v55 = vmax.f32 %v3265_v12, %v3266_v23  ;;  %v3275_v7 = vmax.f32 %v3273_v51, %v3274_v1 }
 0x854   :  { %v3268_v58 = vrot.slane %v3267_v55, 1  ;;  %v3276_v43 = vrot.slane %v3275_v7, 1 }
 0x856   :  { %v3269_v31 = vmax.f32 %v3267_v55, %v3268_v58  ;;  %v3277_v5 = vmax.f32 %v3275_v7, %v3276_v43 }
 0x858   :  { %v3278_v10 = vsel %vm1967_vm10, %v3269_v31, %v3277_v5 }
 0x859   :  { %3284 = vrot.lane.b32.xlu0 %v3278_v10, %s4360_s26  ;;  %3280 = vrot.lane.b32.xlu1 %v3278_v10, %s4357_s4  ;;  %s4329_s4 = scalar_lea.vmem %s3383_s18, 32 }
 0x85a   :  { %p4330_p0 = scmp.ne.s32.totalorder %s3383_s18, %s4329_s4  ;;  %p4335_p2 = scmp.lt.s32.totalorder %s4329_s4, %s4329_s4 }
 0x85c   :  { %p4336_p3 = por %p4335_p2, %p4334_p1 }
 0x85d   :  { %3288 = vrot.lane.b32.xlu1 %v3278_v10, %s4362_s28 }
 0x85e   :  { %p4337_p4 = pnand %p4336_p3, %p4330_p0 }
 0x8cb   :  { %v3281_v19 = vpop.permute.xlu1 %3280  ;;  %v3285_v14 = vpop.permute.xlu0 %3284 }
 0x8cc   :  { %v3283_v63 = vmax.f32 %v3278_v10, %v3281_v19 }
 0x8ce   :  { %v3287_v36 = vmax.f32 %v3283_v63, %v3285_v14 }
 0x8cf   :  { %v3289_v49 = vpop.permute.xlu1 %3288 }
 0x8d0   :  { %v3291_v28 = vmax.f32 %v3287_v36, %v3289_v49 }
 0x8d2   :  { %3821 = vmatmul.mubr.msk.f32.vlgmr.msra.gmra.mrb[30].mxu0 %vm310_vm1, %v3291_v28 }
 0x9a5   :  { %v3370_v39 = vpop.f32.mrb[30].mxu0 }
 0x9a6   :  { %v3371_v38 = vadd.f32 %v3654_v41, %v3370_v39  ;;  %v3822_v20 = vpop.f32.mrb[31].mxu0 }
 0x9a8   :  { %3375 = vst.msk [vmem:[#allocation2] sm:$0x3] %vm3374_vm7, %v3371_v38 }
 0x9a9   :  { %4340 = shalt.err (!%p4337_p4)
}
 0x9aa   :  { %s4341_s19 = scalar_lea.hbm %s6492_s13, 32 }
 0x9ab   :  { %p4342_p5 = scmp.ne.s32.totalorder %s6492_s13, %s4341_s19  ;;  %p4345_p6 = scmp.lt.u32.totalorder %s4341_s19, %s6492_s13 }
 0x9ad   :  { %p4347_p7 = pnand %p4345_p6, %p4342_p5 }
 0x9af   :  { %4350 = shalt.err (!%p4347_p7)
}
 0x9b0   :  { %3385 = dma.vmem_to_hbm [thread:$0]  %s3383_s18, 32, %s6492_s13, [#allocation3]  }
 0x9b1   :  { %4351 = dma.done.wait [#allocation3], 32  }
 0x9b2   :  { %4352 = vsyncadd [#allocation3], 4294967264 }
 0x9b3   :  { %3389 = vsyncpa [#allocation3], 1 }

</bundles_post_ra>
